<compile_context>
chip_gen: v6e
topology: v6e:2x2x1
jax: 0.10.0
libtpu: 0.0.40
codegen_flags: <defaults>
</compile_context>

<pallas_src>
import functools
import math

import jax
import jax.numpy as jnp
from jax.experimental import pallas as pl
from jax.experimental.pallas import tpu as pltpu


def _layernorm(x, gamma, beta, eps=1e-5):
    """Row-wise LayerNorm over the last dim (f32 math)."""
    mu = jnp.mean(x, axis=-1, keepdims=True)
    xc = x - mu
    var = jnp.mean(xc * xc, axis=-1, keepdims=True)
    return xc * jax.lax.rsqrt(var + eps) * gamma + beta


# ---------------------------------------------------------------------------
# Single fused kernel: embedding gather + N EncodeLayers + final LayerNorm.
# ---------------------------------------------------------------------------
def _encoder_kernel(ids_ref, tok_ref, pos_ref, wqkv_ref, wo_ref, w1_ref, w2_ref,
                    rows_ref, lnf_ref, o_ref, x_scr,
                    *, batch, seq, n_heads, n_layers, emb_scale):
    bs, d = x_scr.shape
    hd = d // n_heads

    # ---- Embedding: exact f32 row gather (both tables indexed by token id,
    # matching the original PyTorch: embedding(input), pos_embedding.absolute(input)).
    for i in range(bs):
        tid = ids_ref[i]
        x_scr[pl.ds(i, 1), :] = (tok_ref[pl.ds(tid, 1), :] * emb_scale
                                 + pos_ref[pl.ds(tid, 1), :])
    x = x_scr[...]                                                  # (BS, D) f32

    for l in range(n_layers):
        rows = rows_ref[l]                                          # (9, D) f32
        ln1g, ln1b = rows[0:1, :], rows[1:2, :]
        bq, bv, bo = rows[2:3, :], rows[3:4, :], rows[4:5, :]
        ln2g, ln2b = rows[5:6, :], rows[6:7, :]
        b1, b2 = rows[7:8, :], rows[8:9, :]

        # ---------------- MultiHeadAttention (pre-LN) ----------------
        h = _layernorm(x, ln1g, ln1b)
        qkv = jnp.dot(h.astype(jnp.bfloat16), wqkv_ref[l],
                      preferred_element_type=jnp.float32)           # (BS, 3D)
        # 1/sqrt(head_len) is folded into Wq / bq; K bias cancels in row softmax.
        q = (qkv[:, 0:d] + bq).reshape(batch, seq, d).astype(jnp.bfloat16)
        k = qkv[:, d:2 * d].reshape(batch, seq, d).astype(jnp.bfloat16)
        v = (qkv[:, 2 * d:3 * d] + bv).reshape(batch, seq, d).astype(jnp.bfloat16)

        # Scores for every (head, batch) block; contract the LAST dim of Q and K
        # (no K transpose). Heads stacked along axis 0 so softmax runs once.
        scores = []
        for hh in range(n_heads):
            lo, hi = hh * hd, (hh + 1) * hd
            scores.append(jax.lax.dot_general(
                q[:, :, lo:hi], k[:, :, lo:hi],
                dimension_numbers=(((2,), (2,)), ((0,), (0,))),
                preferred_element_type=jnp.float32))                # (B, S, S)
        s_all = jnp.concatenate(scores, axis=0)                     # (H*B, S, S)
        # TODO(synk): nn.Dropout(0.2) on scores is identity in eval mode; the
        # mask != None post-softmax masked_fill path is not implemented.
        m = jnp.max(s_all, axis=-1, keepdims=True)
        e = jnp.exp(s_all - m)
        att = (e * pl.reciprocal(jnp.sum(e, axis=-1, keepdims=True), approx=True)
               ).astype(jnp.bfloat16)                               # ~1e-3 rel err

        head_outs = []
        for hh in range(n_heads):
            lo, hi = hh * hd, (hh + 1) * hd
            head_outs.append(jax.lax.dot_general(
                att[hh * batch:(hh + 1) * batch], v[:, :, lo:hi],
                dimension_numbers=(((2,), (1,)), ((0,), (0,))),
                preferred_element_type=jnp.float32))                # (B, S, hd)
        att_cat = jnp.concatenate(head_outs, axis=-1).reshape(bs, d)

        mh = jnp.dot(att_cat.astype(jnp.bfloat16), wo_ref[l],
                     preferred_element_type=jnp.float32) + bo
        x = x + mh                         # residual (dropout identity in eval)

        # ---------------- Feedforward (pre-LN) ----------------
        h2 = _layernorm(x, ln2g, ln2b)
        a = jnp.maximum(jnp.dot(h2.astype(jnp.bfloat16), w1_ref[l],
                                preferred_element_type=jnp.float32) + b1, 0.0)
        f = jnp.dot(a.astype(jnp.bfloat16), w2_ref[l],
                    preferred_element_type=jnp.float32) + b2
        x = x + f

    # ---------------- final LayerNorm ----------------
    o_ref[...] = _layernorm(x, lnf_ref[0:1, :], lnf_ref[1:2, :]).astype(o_ref.dtype)


# ---------------------------------------------------------------------------
# One-time weight preparation (hoisted out of the forward path).
# ---------------------------------------------------------------------------
def prepare_params(params, n_heads):
    d = params["tok_emb"].shape[1]
    hd = d // n_heads
    scale = 1.0 / math.sqrt(hd)

    wqkv_l, wo_l, w1_l, w2_l, rows_l = [], [], [], [], []
    for lp in params["layers"]:
        # Fuse per-head W_Q/W_K/W_V (H, D, hd) into one lane-dense (D, 3D) bf16
        # weight, folding 1/sqrt(head_len) into the Q columns.
        wq = jnp.transpose(lp["wq"], (1, 0, 2)).reshape(d, d) * scale
        wk = jnp.transpose(lp["wk"], (1, 0, 2)).reshape(d, d)
        wv = jnp.transpose(lp["wv"], (1, 0, 2)).reshape(d, d)
        wqkv_l.append(jnp.concatenate([wq, wk, wv], axis=1).astype(jnp.bfloat16))
        wo_l.append(lp["wo"].astype(jnp.bfloat16))
        w1_l.append(lp["w1"].astype(jnp.bfloat16))
        w2_l.append(lp["w2"].astype(jnp.bfloat16))
        # Pack all (D,)-vectors into one (9, D) block (K bias dropped: it cancels
        # exactly in the row softmax).
        rows_l.append(jnp.stack([
            lp["ln1_g"], lp["ln1_b"],
            lp["bq"].reshape(d) * scale, lp["bv"].reshape(d), lp["bo"],
            lp["ln2_g"], lp["ln2_b"], lp["b1"], lp["b2"]], axis=0))

    return dict(
        tok_emb=params["tok_emb"].astype(jnp.float32),
        pos_emb=params["pos_emb"].astype(jnp.float32),
        wqkv=jnp.stack(wqkv_l),                       # (L, D, 3D) bf16
        wo=jnp.stack(wo_l),                           # (L, D, D)  bf16
        w1=jnp.stack(w1_l),                           # (L, D, D)  bf16
        w2=jnp.stack(w2_l),                           # (L, D, D)  bf16
        rows=jnp.stack(rows_l).astype(jnp.float32),   # (L, 9, D)  f32
        lnf=jnp.stack([params["ln_g"], params["ln_b"]]).astype(jnp.float32),
    )


def encoder_forward(ids, prepped, n_heads):
    """Pallas forward pass of Encoder (eval mode, mask=None path)."""
    b, s = ids.shape
    bs = b * s
    d = prepped["tok_emb"].shape[1]
    n_layers = prepped["wqkv"].shape[0]

    kernel = functools.partial(
        _encoder_kernel, batch=b, seq=s, n_heads=n_heads, n_layers=n_layers,
        emb_scale=float(math.sqrt(d)))

    vmem = pl.BlockSpec(memory_space=pltpu.MemorySpace.VMEM)
    smem = pl.BlockSpec(memory_space=pltpu.MemorySpace.SMEM)

    out = pl.pallas_call(
        kernel,
        out_shape=jax.ShapeDtypeStruct((bs, d), jnp.float32),
        in_specs=[smem, vmem, vmem, vmem, vmem, vmem, vmem, vmem, vmem],
        out_specs=vmem,
        scratch_shapes=[pltpu.VMEM((bs, d), jnp.float32)],
    )(ids.reshape(bs).astype(jnp.int32),
      prepped["tok_emb"], prepped["pos_emb"],
      prepped["wqkv"], prepped["wo"], prepped["w1"], prepped["w2"],
      prepped["rows"], prepped["lnf"])
    return out.reshape(b, s, d)


# ---------------------------------------------------------------------------
# Pure-JAX reference (PyTorch eval semantics; mirrors the kernel's bf16-input /
# f32-accumulation matmul numerics so the check stays tight).
# ---------------------------------------------------------------------------
def _mm(a, w):
    return jnp.dot(a.astype(jnp.bfloat16), w.astype(jnp.bfloat16),
                   preferred_element_type=jnp.float32)


def _ref_encoder(ids, params, n_heads):
    d = params["tok_emb"].shape[1]
    x = params["tok_emb"][ids] * jnp.float32(math.sqrt(d)) + params["pos_emb"][ids]
    for lp in params["layers"]:
        hd = d // n_heads
        # MultiHeadAttention (reference keeps the K bias; it cancels in softmax)
        h = _layernorm(x, lp["ln1_g"], lp["ln1_b"])
        heads = []
        for i in range(n_heads):
            q = _mm(h, lp["wq"][i]) + lp["bq"][i]
            k = _mm(h, lp["wk"][i]) + lp["bk"][i]
            v = _mm(h, lp["wv"][i]) + lp["bv"][i]
            s = jnp.einsum("bqd,bkd->bqk", q.astype(jnp.bfloat16),
                           k.astype(jnp.bfloat16),
                           preferred_element_type=jnp.float32) / math.sqrt(hd)
            att = jax.nn.softmax(s, axis=-1)
            heads.append(jnp.einsum("bqk,bkd->bqd", att.astype(jnp.bfloat16),
                                    v.astype(jnp.bfloat16),
                                    preferred_element_type=jnp.float32))
        x = x + (_mm(jnp.concatenate(heads, axis=-1), lp["wo"]) + lp["bo"])
        # Feedforward
        h2 = _layernorm(x, lp["ln2_g"], lp["ln2_b"])
        a = jnp.maximum(_mm(h2, lp["w1"]) + lp["b1"], 0.0)
        x = x + (_mm(a, lp["w2"]) + lp["b2"])
    return _layernorm(x, params["ln_g"], params["ln_b"])


if __name__ == "__main__":
    B, S = 2, 8
    VOCAB, MAX_LEN = 64, 64
    D_MODEL, N_HEADS, N_LAYERS = 128, 4, 2
    HD = D_MODEL // N_HEADS

    key = jax.random.PRNGKey(0)

    def uni(k, shape, fan_in):
        bound = 1.0 / math.sqrt(fan_in)
        return jax.random.uniform(k, shape, minval=-bound, maxval=bound,
                                  dtype=jnp.float32)

    key, k_ids, k_tok, k_pos = jax.random.split(key, 4)
    ids = jax.random.randint(k_ids, (B, S), 0, VOCAB, dtype=jnp.int32)
    tok_emb = jax.random.normal(k_tok, (VOCAB, D_MODEL), dtype=jnp.float32)
    pos_emb = jax.random.normal(k_pos, (MAX_LEN, D_MODEL), dtype=jnp.float32)

    layers = []
    for _ in range(N_LAYERS):
        key, *ks = jax.random.split(key, 17)
        layers.append(dict(
            ln1_g=1.0 + 0.1 * jax.random.normal(ks[0], (D_MODEL,), dtype=jnp.float32),
            ln1_b=0.1 * jax.random.normal(ks[1], (D_MODEL,), dtype=jnp.float32),
            wq=uni(ks[2], (N_HEADS, D_MODEL, HD), D_MODEL),
            bq=uni(ks[3], (N_HEADS, HD), D_MODEL),
            wk=uni(ks[4], (N_HEADS, D_MODEL, HD), D_MODEL),
            bk=uni(ks[5], (N_HEADS, HD), D_MODEL),
            wv=uni(ks[6], (N_HEADS, D_MODEL, HD), D_MODEL),
            bv=uni(ks[7], (N_HEADS, HD), D_MODEL),
            wo=uni(ks[8], (D_MODEL, D_MODEL), D_MODEL),
            bo=uni(ks[9], (D_MODEL,), D_MODEL),
            ln2_g=1.0 + 0.1 * jax.random.normal(ks[10], (D_MODEL,), dtype=jnp.float32),
            ln2_b=0.1 * jax.random.normal(ks[11], (D_MODEL,), dtype=jnp.float32),
            w1=uni(ks[12], (D_MODEL, D_MODEL), D_MODEL),
            b1=uni(ks[13], (D_MODEL,), D_MODEL),
            w2=uni(ks[14], (D_MODEL, D_MODEL), D_MODEL),
            b2=uni(ks[15], (D_MODEL,), D_MODEL),
        ))

    key, k_g, k_b = jax.random.split(key, 3)
    params = dict(
        tok_emb=tok_emb, pos_emb=pos_emb, layers=layers,
        ln_g=1.0 + 0.1 * jax.random.normal(k_g, (D_MODEL,), dtype=jnp.float32),
        ln_b=0.1 * jax.random.normal(k_b, (D_MODEL,), dtype=jnp.float32),
    )

    # One-time weight fusion/cast (hoisted out of the forward path), then the
    # single fused Pallas kernel call.
    prepped = prepare_params(params, N_HEADS)
    prepped = jax.tree_util.tree_map(jax.block_until_ready, prepped)

    out = encoder_forward(ids, prepped, N_HEADS)
    out = jax.block_until_ready(out)

    ref = _ref_encoder(ids, params, N_HEADS)
    max_err = float(jnp.max(jnp.abs(out - ref)))
    assert jnp.allclose(out, ref, atol=2e-2, rtol=2e-2), \
        f"mismatch vs reference (max abs err {max_err})"

    print("KERNEL_OK")
</pallas_src>

<mosaic_0001>
module attributes {stable_mosaic.version = 11 : i64} {
  func.func @_encoder_kernel(%arg0: memref<16xi32, #tpu.memory_space<smem>>, %arg1: memref<64x128xf32, #tpu.memory_space<vmem>>, %arg2: memref<64x128xf32, #tpu.memory_space<vmem>>, %arg3: memref<2x128x384xbf16, #tpu.memory_space<vmem>>, %arg4: memref<2x128x128xbf16, #tpu.memory_space<vmem>>, %arg5: memref<2x128x128xbf16, #tpu.memory_space<vmem>>, %arg6: memref<2x128x128xbf16, #tpu.memory_space<vmem>>, %arg7: memref<2x9x128xf32, #tpu.memory_space<vmem>>, %arg8: memref<2x128xf32, #tpu.memory_space<vmem>>, %arg9: memref<16x128xf32, #tpu.memory_space<vmem>>, %arg10: memref<16x128xf32, #tpu.memory_space<vmem>>) attributes {dimension_semantics = [], scalar_prefetch = 0 : i64, scratch_operands = 1 : i64, tpu.core_type = #tpu.core_type<tc>} {
    %c0 = arith.constant 0 : index
    %0 = memref.load %arg0[%c0] : memref<16xi32, #tpu.memory_space<smem>>
    %1 = arith.index_cast %0 : i32 to index
    %c0_0 = arith.constant 0 : index
    %2 = vector.load %arg1[%1, %c0_0] : memref<64x128xf32, #tpu.memory_space<vmem>>, vector<1x128xf32>
    %cst = arith.constant 11.3137083 : f32
    %3 = vector.broadcast %cst : f32 to vector<1x128xf32>
    %4 = arith.mulf %2, %3 : vector<1x128xf32>
    %5 = arith.index_cast %0 : i32 to index
    %c0_1 = arith.constant 0 : index
    %6 = vector.load %arg2[%5, %c0_1] : memref<64x128xf32, #tpu.memory_space<vmem>>, vector<1x128xf32>
    %7 = arith.addf %4, %6 : vector<1x128xf32>
    %c0_2 = arith.constant 0 : index
    %c0_3 = arith.constant 0 : index
    %8 = vector.load %arg10[%c0_2, %c0_3] : memref<16x128xf32, #tpu.memory_space<vmem>>, vector<1x128xf32>
    tpu.vector_store %arg10[%c0_2, %c0_3], %7 {strides = array<i32>} : memref<16x128xf32, #tpu.memory_space<vmem>>, vector<1x128xf32>,
    %c1 = arith.constant 1 : index
    %9 = memref.load %arg0[%c1] : memref<16xi32, #tpu.memory_space<smem>>
    %10 = arith.index_cast %9 : i32 to index
    %c0_4 = arith.constant 0 : index
    %11 = vector.load %arg1[%10, %c0_4] : memref<64x128xf32, #tpu.memory_space<vmem>>, vector<1x128xf32>
    %cst_5 = arith.constant 11.3137083 : f32
    %12 = vector.broadcast %cst_5 : f32 to vector<1x128xf32>
    %13 = arith.mulf %11, %12 : vector<1x128xf32>
    %14 = arith.index_cast %9 : i32 to index
    %c0_6 = arith.constant 0 : index
    %15 = vector.load %arg2[%14, %c0_6] : memref<64x128xf32, #tpu.memory_space<vmem>>, vector<1x128xf32>
    %16 = arith.addf %13, %15 : vector<1x128xf32>
    %c1_7 = arith.constant 1 : index
    %c0_8 = arith.constant 0 : index
    %17 = vector.load %arg10[%c1_7, %c0_8] : memref<16x128xf32, #tpu.memory_space<vmem>>, vector<1x128xf32>
    tpu.vector_store %arg10[%c1_7, %c0_8], %16 {strides = array<i32>} : memref<16x128xf32, #tpu.memory_space<vmem>>, vector<1x128xf32>,
    %c2 = arith.constant 2 : index
    %18 = memref.load %arg0[%c2] : memref<16xi32, #tpu.memory_space<smem>>
    %19 = arith.index_cast %18 : i32 to index
    %c0_9 = arith.constant 0 : index
    %20 = vector.load %arg1[%19, %c0_9] : memref<64x128xf32, #tpu.memory_space<vmem>>, vector<1x128xf32>
    %cst_10 = arith.constant 11.3137083 : f32
    %21 = vector.broadcast %cst_10 : f32 to vector<1x128xf32>
    %22 = arith.mulf %20, %21 : vector<1x128xf32>
    %23 = arith.index_cast %18 : i32 to index
    %c0_11 = arith.constant 0 : index
    %24 = vector.load %arg2[%23, %c0_11] : memref<64x128xf32, #tpu.memory_space<vmem>>, vector<1x128xf32>
    %25 = arith.addf %22, %24 : vector<1x128xf32>
    %c2_12 = arith.constant 2 : index
    %c0_13 = arith.constant 0 : index
    %26 = vector.load %arg10[%c2_12, %c0_13] : memref<16x128xf32, #tpu.memory_space<vmem>>, vector<1x128xf32>
    tpu.vector_store %arg10[%c2_12, %c0_13], %25 {strides = array<i32>} : memref<16x128xf32, #tpu.memory_space<vmem>>, vector<1x128xf32>,
    %c3 = arith.constant 3 : index
    %27 = memref.load %arg0[%c3] : memref<16xi32, #tpu.memory_space<smem>>
    %28 = arith.index_cast %27 : i32 to index
    %c0_14 = arith.constant 0 : index
    %29 = vector.load %arg1[%28, %c0_14] : memref<64x128xf32, #tpu.memory_space<vmem>>, vector<1x128xf32>
    %cst_15 = arith.constant 11.3137083 : f32
    %30 = vector.broadcast %cst_15 : f32 to vector<1x128xf32>
    %31 = arith.mulf %29, %30 : vector<1x128xf32>
    %32 = arith.index_cast %27 : i32 to index
    %c0_16 = arith.constant 0 : index
    %33 = vector.load %arg2[%32, %c0_16] : memref<64x128xf32, #tpu.memory_space<vmem>>, vector<1x128xf32>
    %34 = arith.addf %31, %33 : vector<1x128xf32>
    %c3_17 = arith.constant 3 : index
    %c0_18 = arith.constant 0 : index
    %35 = vector.load %arg10[%c3_17, %c0_18] : memref<16x128xf32, #tpu.memory_space<vmem>>, vector<1x128xf32>
    tpu.vector_store %arg10[%c3_17, %c0_18], %34 {strides = array<i32>} : memref<16x128xf32, #tpu.memory_space<vmem>>, vector<1x128xf32>,
    %c4 = arith.constant 4 : index
    %36 = memref.load %arg0[%c4] : memref<16xi32, #tpu.memory_space<smem>>
    %37 = arith.index_cast %36 : i32 to index
    %c0_19 = arith.constant 0 : index
    %38 = vector.load %arg1[%37, %c0_19] : memref<64x128xf32, #tpu.memory_space<vmem>>, vector<1x128xf32>
    %cst_20 = arith.constant 11.3137083 : f32
    %39 = vector.broadcast %cst_20 : f32 to vector<1x128xf32>
    %40 = arith.mulf %38, %39 : vector<1x128xf32>
    %41 = arith.index_cast %36 : i32 to index
    %c0_21 = arith.constant 0 : index
    %42 = vector.load %arg2[%41, %c0_21] : memref<64x128xf32, #tpu.memory_space<vmem>>, vector<1x128xf32>
    %43 = arith.addf %40, %42 : vector<1x128xf32>
    %c4_22 = arith.constant 4 : index
    %c0_23 = arith.constant 0 : index
    %44 = vector.load %arg10[%c4_22, %c0_23] : memref<16x128xf32, #tpu.memory_space<vmem>>, vector<1x128xf32>
    tpu.vector_store %arg10[%c4_22, %c0_23], %43 {strides = array<i32>} : memref<16x128xf32, #tpu.memory_space<vmem>>, vector<1x128xf32>,
    %c5 = arith.constant 5 : index
    %45 = memref.load %arg0[%c5] : memref<16xi32, #tpu.memory_space<smem>>
    %46 = arith.index_cast %45 : i32 to index
    %c0_24 = arith.constant 0 : index
    %47 = vector.load %arg1[%46, %c0_24] : memref<64x128xf32, #tpu.memory_space<vmem>>, vector<1x128xf32>
    %cst_25 = arith.constant 11.3137083 : f32
    %48 = vector.broadcast %cst_25 : f32 to vector<1x128xf32>
    %49 = arith.mulf %47, %48 : vector<1x128xf32>
    %50 = arith.index_cast %45 : i32 to index
    %c0_26 = arith.constant 0 : index
    %51 = vector.load %arg2[%50, %c0_26] : memref<64x128xf32, #tpu.memory_space<vmem>>, vector<1x128xf32>
    %52 = arith.addf %49, %51 : vector<1x128xf32>
    %c5_27 = arith.constant 5 : index
    %c0_28 = arith.constant 0 : index
    %53 = vector.load %arg10[%c5_27, %c0_28] : memref<16x128xf32, #tpu.memory_space<vmem>>, vector<1x128xf32>
    tpu.vector_store %arg10[%c5_27, %c0_28], %52 {strides = array<i32>} : memref<16x128xf32, #tpu.memory_space<vmem>>, vector<1x128xf32>,
    %c6 = arith.constant 6 : index
    %54 = memref.load %arg0[%c6] : memref<16xi32, #tpu.memory_space<smem>>
    %55 = arith.index_cast %54 : i32 to index
    %c0_29 = arith.constant 0 : index
    %56 = vector.load %arg1[%55, %c0_29] : memref<64x128xf32, #tpu.memory_space<vmem>>, vector<1x128xf32>
    %cst_30 = arith.constant 11.3137083 : f32
    %57 = vector.broadcast %cst_30 : f32 to vector<1x128xf32>
    %58 = arith.mulf %56, %57 : vector<1x128xf32>
    %59 = arith.index_cast %54 : i32 to index
    %c0_31 = arith.constant 0 : index
    %60 = vector.load %arg2[%59, %c0_31] : memref<64x128xf32, #tpu.memory_space<vmem>>, vector<1x128xf32>
    %61 = arith.addf %58, %60 : vector<1x128xf32>
    %c6_32 = arith.constant 6 : index
    %c0_33 = arith.constant 0 : index
    %62 = vector.load %arg10[%c6_32, %c0_33] : memref<16x128xf32, #tpu.memory_space<vmem>>, vector<1x128xf32>
    tpu.vector_store %arg10[%c6_32, %c0_33], %61 {strides = array<i32>} : memref<16x128xf32, #tpu.memory_space<vmem>>, vector<1x128xf32>,
    %c7 = arith.constant 7 : index
    %63 = memref.load %arg0[%c7] : memref<16xi32, #tpu.memory_space<smem>>
    %64 = arith.index_cast %63 : i32 to index
    %c0_34 = arith.constant 0 : index
    %65 = vector.load %arg1[%64, %c0_34] : memref<64x128xf32, #tpu.memory_space<vmem>>, vector<1x128xf32>
    %cst_35 = arith.constant 11.3137083 : f32
    %66 = vector.broadcast %cst_35 : f32 to vector<1x128xf32>
    %67 = arith.mulf %65, %66 : vector<1x128xf32>
    %68 = arith.index_cast %63 : i32 to index
    %c0_36 = arith.constant 0 : index
    %69 = vector.load %arg2[%68, %c0_36] : memref<64x128xf32, #tpu.memory_space<vmem>>, vector<1x128xf32>
    %70 = arith.addf %67, %69 : vector<1x128xf32>
    %c7_37 = arith.constant 7 : index
    %c0_38 = arith.constant 0 : index
    %71 = vector.load %arg10[%c7_37, %c0_38] : memref<16x128xf32, #tpu.memory_space<vmem>>, vector<1x128xf32>
    tpu.vector_store %arg10[%c7_37, %c0_38], %70 {strides = array<i32>} : memref<16x128xf32, #tpu.memory_space<vmem>>, vector<1x128xf32>,
    %c8 = arith.constant 8 : index
    %72 = memref.load %arg0[%c8] : memref<16xi32, #tpu.memory_space<smem>>
    %73 = arith.index_cast %72 : i32 to index
    %c0_39 = arith.constant 0 : index
    %74 = vector.load %arg1[%73, %c0_39] : memref<64x128xf32, #tpu.memory_space<vmem>>, vector<1x128xf32>
    %cst_40 = arith.constant 11.3137083 : f32
    %75 = vector.broadcast %cst_40 : f32 to vector<1x128xf32>
    %76 = arith.mulf %74, %75 : vector<1x128xf32>
    %77 = arith.index_cast %72 : i32 to index
    %c0_41 = arith.constant 0 : index
    %78 = vector.load %arg2[%77, %c0_41] : memref<64x128xf32, #tpu.memory_space<vmem>>, vector<1x128xf32>
    %79 = arith.addf %76, %78 : vector<1x128xf32>
    %c8_42 = arith.constant 8 : index
    %c0_43 = arith.constant 0 : index
    %80 = vector.load %arg10[%c8_42, %c0_43] : memref<16x128xf32, #tpu.memory_space<vmem>>, vector<1x128xf32>
    tpu.vector_store %arg10[%c8_42, %c0_43], %79 {strides = array<i32>} : memref<16x128xf32, #tpu.memory_space<vmem>>, vector<1x128xf32>,
    %c9 = arith.constant 9 : index
    %81 = memref.load %arg0[%c9] : memref<16xi32, #tpu.memory_space<smem>>
    %82 = arith.index_cast %81 : i32 to index
    %c0_44 = arith.constant 0 : index
    %83 = vector.load %arg1[%82, %c0_44] : memref<64x128xf32, #tpu.memory_space<vmem>>, vector<1x128xf32>
    %cst_45 = arith.constant 11.3137083 : f32
    %84 = vector.broadcast %cst_45 : f32 to vector<1x128xf32>
    %85 = arith.mulf %83, %84 : vector<1x128xf32>
    %86 = arith.index_cast %81 : i32 to index
    %c0_46 = arith.constant 0 : index
    %87 = vector.load %arg2[%86, %c0_46] : memref<64x128xf32, #tpu.memory_space<vmem>>, vector<1x128xf32>
    %88 = arith.addf %85, %87 : vector<1x128xf32>
    %c9_47 = arith.constant 9 : index
    %c0_48 = arith.constant 0 : index
    %89 = vector.load %arg10[%c9_47, %c0_48] : memref<16x128xf32, #tpu.memory_space<vmem>>, vector<1x128xf32>
    tpu.vector_store %arg10[%c9_47, %c0_48], %88 {strides = array<i32>} : memref<16x128xf32, #tpu.memory_space<vmem>>, vector<1x128xf32>,
    %c10 = arith.constant 10 : index
    %90 = memref.load %arg0[%c10] : memref<16xi32, #tpu.memory_space<smem>>
    %91 = arith.index_cast %90 : i32 to index
    %c0_49 = arith.constant 0 : index
    %92 = vector.load %arg1[%91, %c0_49] : memref<64x128xf32, #tpu.memory_space<vmem>>, vector<1x128xf32>
    %cst_50 = arith.constant 11.3137083 : f32
    %93 = vector.broadcast %cst_50 : f32 to vector<1x128xf32>
    %94 = arith.mulf %92, %93 : vector<1x128xf32>
    %95 = arith.index_cast %90 : i32 to index
    %c0_51 = arith.constant 0 : index
    %96 = vector.load %arg2[%95, %c0_51] : memref<64x128xf32, #tpu.memory_space<vmem>>, vector<1x128xf32>
    %97 = arith.addf %94, %96 : vector<1x128xf32>
    %c10_52 = arith.constant 10 : index
    %c0_53 = arith.constant 0 : index
    %98 = vector.load %arg10[%c10_52, %c0_53] : memref<16x128xf32, #tpu.memory_space<vmem>>, vector<1x128xf32>
    tpu.vector_store %arg10[%c10_52, %c0_53], %97 {strides = array<i32>} : memref<16x128xf32, #tpu.memory_space<vmem>>, vector<1x128xf32>,
    %c11 = arith.constant 11 : index
    %99 = memref.load %arg0[%c11] : memref<16xi32, #tpu.memory_space<smem>>
    %100 = arith.index_cast %99 : i32 to index
    %c0_54 = arith.constant 0 : index
    %101 = vector.load %arg1[%100, %c0_54] : memref<64x128xf32, #tpu.memory_space<vmem>>, vector<1x128xf32>
    %cst_55 = arith.constant 11.3137083 : f32
    %102 = vector.broadcast %cst_55 : f32 to vector<1x128xf32>
    %103 = arith.mulf %101, %102 : vector<1x128xf32>
    %104 = arith.index_cast %99 : i32 to index
    %c0_56 = arith.constant 0 : index
    %105 = vector.load %arg2[%104, %c0_56] : memref<64x128xf32, #tpu.memory_space<vmem>>, vector<1x128xf32>
    %106 = arith.addf %103, %105 : vector<1x128xf32>
    %c11_57 = arith.constant 11 : index
    %c0_58 = arith.constant 0 : index
    %107 = vector.load %arg10[%c11_57, %c0_58] : memref<16x128xf32, #tpu.memory_space<vmem>>, vector<1x128xf32>
    tpu.vector_store %arg10[%c11_57, %c0_58], %106 {strides = array<i32>} : memref<16x128xf32, #tpu.memory_space<vmem>>, vector<1x128xf32>,
    %c12 = arith.constant 12 : index
    %108 = memref.load %arg0[%c12] : memref<16xi32, #tpu.memory_space<smem>>
    %109 = arith.index_cast %108 : i32 to index
    %c0_59 = arith.constant 0 : index
    %110 = vector.load %arg1[%109, %c0_59] : memref<64x128xf32, #tpu.memory_space<vmem>>, vector<1x128xf32>
    %cst_60 = arith.constant 11.3137083 : f32
    %111 = vector.broadcast %cst_60 : f32 to vector<1x128xf32>
    %112 = arith.mulf %110, %111 : vector<1x128xf32>
    %113 = arith.index_cast %108 : i32 to index
    %c0_61 = arith.constant 0 : index
    %114 = vector.load %arg2[%113, %c0_61] : memref<64x128xf32, #tpu.memory_space<vmem>>, vector<1x128xf32>
    %115 = arith.addf %112, %114 : vector<1x128xf32>
    %c12_62 = arith.constant 12 : index
    %c0_63 = arith.constant 0 : index
    %116 = vector.load %arg10[%c12_62, %c0_63] : memref<16x128xf32, #tpu.memory_space<vmem>>, vector<1x128xf32>
    tpu.vector_store %arg10[%c12_62, %c0_63], %115 {strides = array<i32>} : memref<16x128xf32, #tpu.memory_space<vmem>>, vector<1x128xf32>,
    %c13 = arith.constant 13 : index
    %117 = memref.load %arg0[%c13] : memref<16xi32, #tpu.memory_space<smem>>
    %118 = arith.index_cast %117 : i32 to index
    %c0_64 = arith.constant 0 : index
    %119 = vector.load %arg1[%118, %c0_64] : memref<64x128xf32, #tpu.memory_space<vmem>>, vector<1x128xf32>
    %cst_65 = arith.constant 11.3137083 : f32
    %120 = vector.broadcast %cst_65 : f32 to vector<1x128xf32>
    %121 = arith.mulf %119, %120 : vector<1x128xf32>
    %122 = arith.index_cast %117 : i32 to index
    %c0_66 = arith.constant 0 : index
    %123 = vector.load %arg2[%122, %c0_66] : memref<64x128xf32, #tpu.memory_space<vmem>>, vector<1x128xf32>
    %124 = arith.addf %121, %123 : vector<1x128xf32>
    %c13_67 = arith.constant 13 : index
    %c0_68 = arith.constant 0 : index
    %125 = vector.load %arg10[%c13_67, %c0_68] : memref<16x128xf32, #tpu.memory_space<vmem>>, vector<1x128xf32>
    tpu.vector_store %arg10[%c13_67, %c0_68], %124 {strides = array<i32>} : memref<16x128xf32, #tpu.memory_space<vmem>>, vector<1x128xf32>,
    %c14 = arith.constant 14 : index
    %126 = memref.load %arg0[%c14] : memref<16xi32, #tpu.memory_space<smem>>
    %127 = arith.index_cast %126 : i32 to index
    %c0_69 = arith.constant 0 : index
    %128 = vector.load %arg1[%127, %c0_69] : memref<64x128xf32, #tpu.memory_space<vmem>>, vector<1x128xf32>
    %cst_70 = arith.constant 11.3137083 : f32
    %129 = vector.broadcast %cst_70 : f32 to vector<1x128xf32>
    %130 = arith.mulf %128, %129 : vector<1x128xf32>
    %131 = arith.index_cast %126 : i32 to index
    %c0_71 = arith.constant 0 : index
    %132 = vector.load %arg2[%131, %c0_71] : memref<64x128xf32, #tpu.memory_space<vmem>>, vector<1x128xf32>
    %133 = arith.addf %130, %132 : vector<1x128xf32>
    %c14_72 = arith.constant 14 : index
    %c0_73 = arith.constant 0 : index
    %134 = vector.load %arg10[%c14_72, %c0_73] : memref<16x128xf32, #tpu.memory_space<vmem>>, vector<1x128xf32>
    tpu.vector_store %arg10[%c14_72, %c0_73], %133 {strides = array<i32>} : memref<16x128xf32, #tpu.memory_space<vmem>>, vector<1x128xf32>,
    %c15 = arith.constant 15 : index
    %135 = memref.load %arg0[%c15] : memref<16xi32, #tpu.memory_space<smem>>
    %136 = arith.index_cast %135 : i32 to index
    %c0_74 = arith.constant 0 : index
    %137 = vector.load %arg1[%136, %c0_74] : memref<64x128xf32, #tpu.memory_space<vmem>>, vector<1x128xf32>
    %cst_75 = arith.constant 11.3137083 : f32
    %138 = vector.broadcast %cst_75 : f32 to vector<1x128xf32>
    %139 = arith.mulf %137, %138 : vector<1x128xf32>
    %140 = arith.index_cast %135 : i32 to index
    %c0_76 = arith.constant 0 : index
    %141 = vector.load %arg2[%140, %c0_76] : memref<64x128xf32, #tpu.memory_space<vmem>>, vector<1x128xf32>
    %142 = arith.addf %139, %141 : vector<1x128xf32>
    %c15_77 = arith.constant 15 : index
    %c0_78 = arith.constant 0 : index
    %143 = vector.load %arg10[%c15_77, %c0_78] : memref<16x128xf32, #tpu.memory_space<vmem>>, vector<1x128xf32>
    tpu.vector_store %arg10[%c15_77, %c0_78], %142 {strides = array<i32>} : memref<16x128xf32, #tpu.memory_space<vmem>>, vector<1x128xf32>,
    %c0_79 = arith.constant 0 : index
    %c0_80 = arith.constant 0 : index
    %144 = vector.load %arg10[%c0_79, %c0_80] : memref<16x128xf32, #tpu.memory_space<vmem>>, vector<16x128xf32>
    %c0_81 = arith.constant 0 : index
    %c0_82 = arith.constant 0 : index
    %c0_83 = arith.constant 0 : index
    %145 = vector.load %arg7[%c0_81, %c0_82, %c0_83] : memref<2x9x128xf32, #tpu.memory_space<vmem>>, vector<1x9x128xf32>
    %146 = vector.shape_cast %145 : vector<1x9x128xf32> to vector<9x128xf32>
    %147 = vector.extract_strided_slice %146 {offsets = [0, 0], sizes = [1, 128], strides = [1, 1]} : vector<9x128xf32> to vector<1x128xf32>
    %148 = vector.extract_strided_slice %146 {offsets = [1, 0], sizes = [1, 128], strides = [1, 1]} : vector<9x128xf32> to vector<1x128xf32>
    %149 = vector.extract_strided_slice %146 {offsets = [2, 0], sizes = [1, 128], strides = [1, 1]} : vector<9x128xf32> to vector<1x128xf32>
    %150 = vector.extract_strided_slice %146 {offsets = [3, 0], sizes = [1, 128], strides = [1, 1]} : vector<9x128xf32> to vector<1x128xf32>
    %151 = vector.extract_strided_slice %146 {offsets = [4, 0], sizes = [1, 128], strides = [1, 1]} : vector<9x128xf32> to vector<1x128xf32>
    %152 = vector.extract_strided_slice %146 {offsets = [5, 0], sizes = [1, 128], strides = [1, 1]} : vector<9x128xf32> to vector<1x128xf32>
    %153 = vector.extract_strided_slice %146 {offsets = [6, 0], sizes = [1, 128], strides = [1, 1]} : vector<9x128xf32> to vector<1x128xf32>
    %154 = vector.extract_strided_slice %146 {offsets = [7, 0], sizes = [1, 128], strides = [1, 1]} : vector<9x128xf32> to vector<1x128xf32>
    %155 = vector.extract_strided_slice %146 {offsets = [8, 0], sizes = [1, 128], strides = [1, 1]} : vector<9x128xf32> to vector<1x128xf32>
    %cst_84 = arith.constant dense<0.000000e+00> : vector<16xf32>
    %156 = vector.multi_reduction <add>, %144, %cst_84 [1] : vector<16x128xf32> to vector<16xf32>
    %157 = vector.shape_cast %156 : vector<16xf32> to vector<16x1xf32>
    %cst_85 = arith.constant 1.280000e+02 : f32
    %158 = vector.broadcast %cst_85 : f32 to vector<16x1xf32>
    %159 = arith.divf %157, %158 : vector<16x1xf32>
    %160 = vector.broadcast %159 : vector<16x1xf32> to vector<16x128xf32>
    %161 = arith.subf %144, %160 : vector<16x128xf32>
    %162 = arith.mulf %161, %161 : vector<16x128xf32>
    %cst_86 = arith.constant dense<0.000000e+00> : vector<16xf32>
    %163 = vector.multi_reduction <add>, %162, %cst_86 [1] : vector<16x128xf32> to vector<16xf32>
    %164 = vector.shape_cast %163 : vector<16xf32> to vector<16x1xf32>
    %cst_87 = arith.constant 1.280000e+02 : f32
    %165 = vector.broadcast %cst_87 : f32 to vector<16x1xf32>
    %166 = arith.divf %164, %165 : vector<16x1xf32>
    %cst_88 = arith.constant 9.99999974E-6 : f32
    %167 = vector.broadcast %cst_88 : f32 to vector<16x1xf32>
    %168 = arith.addf %166, %167 : vector<16x1xf32>
    %169 = math.rsqrt %168 : vector<16x1xf32>
    %170 = vector.broadcast %169 : vector<16x1xf32> to vector<16x128xf32>
    %171 = arith.mulf %161, %170 : vector<16x128xf32>
    %172 = vector.broadcast %147 : vector<1x128xf32> to vector<16x128xf32>
    %173 = arith.mulf %171, %172 : vector<16x128xf32>
    %174 = vector.broadcast %148 : vector<1x128xf32> to vector<16x128xf32>
    %175 = arith.addf %173, %174 : vector<16x128xf32>
    %176 = arith.truncf %175 : vector<16x128xf32> to vector<16x128xbf16>
    %c0_89 = arith.constant 0 : index
    %c0_90 = arith.constant 0 : index
    %c0_91 = arith.constant 0 : index
    %177 = vector.load %arg3[%c0_89, %c0_90, %c0_91] : memref<2x128x384xbf16, #tpu.memory_space<vmem>>, vector<1x128x384xbf16>
    %178 = vector.shape_cast %177 : vector<1x128x384xbf16> to vector<128x384xbf16>
    %cst_92 = arith.constant dense<0.000000e+00> : vector<16x384xf32>
    %179 = tpu.matmul %176, %178, %cst_92 {dimension_numbers = #tpu.dot_dimension_numbers<[1], [0], [0], [1], [0, 0, 1, 1], [], []>} : vector<16x128xbf16>, vector<128x384xbf16>, vector<16x384xf32> -> vector<16x384xf32>
    %180 = vector.extract_strided_slice %179 {offsets = [0, 0], sizes = [16, 128], strides = [1, 1]} : vector<16x384xf32> to vector<16x128xf32>
    %181 = vector.broadcast %149 : vector<1x128xf32> to vector<16x128xf32>
    %182 = arith.addf %180, %181 : vector<16x128xf32>
    %183 = vector.shape_cast %182 : vector<16x128xf32> to vector<2x8x128xf32>
    %184 = arith.truncf %183 : vector<2x8x128xf32> to vector<2x8x128xbf16>
    %185 = vector.extract_strided_slice %179 {offsets = [0, 128], sizes = [16, 128], strides = [1, 1]} : vector<16x384xf32> to vector<16x128xf32>
    %186 = vector.shape_cast %185 : vector<16x128xf32> to vector<2x8x128xf32>
    %187 = arith.truncf %186 : vector<2x8x128xf32> to vector<2x8x128xbf16>
    %188 = vector.extract_strided_slice %179 {offsets = [0, 256], sizes = [16, 128], strides = [1, 1]} : vector<16x384xf32> to vector<16x128xf32>
    %189 = vector.broadcast %150 : vector<1x128xf32> to vector<16x128xf32>
    %190 = arith.addf %188, %189 : vector<16x128xf32>
    %191 = vector.shape_cast %190 : vector<16x128xf32> to vector<2x8x128xf32>
    %192 = arith.truncf %191 : vector<2x8x128xf32> to vector<2x8x128xbf16>
    %193 = vector.extract_strided_slice %184 {offsets = [0, 0, 0], sizes = [2, 8, 32], strides = [1, 1, 1]} : vector<2x8x128xbf16> to vector<2x8x32xbf16>
    %194 = vector.extract_strided_slice %187 {offsets = [0, 0, 0], sizes = [2, 8, 32], strides = [1, 1, 1]} : vector<2x8x128xbf16> to vector<2x8x32xbf16>
    %cst_93 = arith.constant dense<0.000000e+00> : vector<2x8x8xf32>
    %195 = tpu.matmul %193, %194, %cst_93 {dimension_numbers = #tpu.dot_dimension_numbers<[2], [2], [1], [1], [0, 0, 0, 1, 1, 1], [0], [0]>} : vector<2x8x32xbf16>, vector<2x8x32xbf16>, vector<2x8x8xf32> -> vector<2x8x8xf32>
    %196 = vector.extract_strided_slice %184 {offsets = [0, 0, 32], sizes = [2, 8, 32], strides = [1, 1, 1]} : vector<2x8x128xbf16> to vector<2x8x32xbf16>
    %197 = vector.extract_strided_slice %187 {offsets = [0, 0, 32], sizes = [2, 8, 32], strides = [1, 1, 1]} : vector<2x8x128xbf16> to vector<2x8x32xbf16>
    %cst_94 = arith.constant dense<0.000000e+00> : vector<2x8x8xf32>
    %198 = tpu.matmul %196, %197, %cst_94 {dimension_numbers = #tpu.dot_dimension_numbers<[2], [2], [1], [1], [0, 0, 0, 1, 1, 1], [0], [0]>} : vector<2x8x32xbf16>, vector<2x8x32xbf16>, vector<2x8x8xf32> -> vector<2x8x8xf32>
    %199 = vector.extract_strided_slice %184 {offsets = [0, 0, 64], sizes = [2, 8, 32], strides = [1, 1, 1]} : vector<2x8x128xbf16> to vector<2x8x32xbf16>
    %200 = vector.extract_strided_slice %187 {offsets = [0, 0, 64], sizes = [2, 8, 32], strides = [1, 1, 1]} : vector<2x8x128xbf16> to vector<2x8x32xbf16>
    %cst_95 = arith.constant dense<0.000000e+00> : vector<2x8x8xf32>
    %201 = tpu.matmul %199, %200, %cst_95 {dimension_numbers = #tpu.dot_dimension_numbers<[2], [2], [1], [1], [0, 0, 0, 1, 1, 1], [0], [0]>} : vector<2x8x32xbf16>, vector<2x8x32xbf16>, vector<2x8x8xf32> -> vector<2x8x8xf32>
    %202 = vector.extract_strided_slice %184 {offsets = [0, 0, 96], sizes = [2, 8, 32], strides = [1, 1, 1]} : vector<2x8x128xbf16> to vector<2x8x32xbf16>
    %203 = vector.extract_strided_slice %187 {offsets = [0, 0, 96], sizes = [2, 8, 32], strides = [1, 1, 1]} : vector<2x8x128xbf16> to vector<2x8x32xbf16>
    %cst_96 = arith.constant dense<0.000000e+00> : vector<2x8x8xf32>
    %204 = tpu.matmul %202, %203, %cst_96 {dimension_numbers = #tpu.dot_dimension_numbers<[2], [2], [1], [1], [0, 0, 0, 1, 1, 1], [0], [0]>} : vector<2x8x32xbf16>, vector<2x8x32xbf16>, vector<2x8x8xf32> -> vector<2x8x8xf32>
    %205 = tpu.concatenate %195, %198, %201, %204 in 0 : vector<2x8x8xf32>, vector<2x8x8xf32>, vector<2x8x8xf32>, vector<2x8x8xf32> -> vector<8x8x8xf32>
    %cst_97 = arith.constant dense<0xFF800000> : vector<8x8xf32>
    %206 = vector.multi_reduction <maximumf>, %205, %cst_97 [2] : vector<8x8x8xf32> to vector<8x8xf32>
    %207 = vector.shape_cast %206 : vector<8x8xf32> to vector<8x8x1xf32>
    %208 = vector.broadcast %207 : vector<8x8x1xf32> to vector<8x8x8xf32>
    %209 = arith.subf %205, %208 : vector<8x8x8xf32>
    %210 = math.exp %209 : vector<8x8x8xf32>
    %cst_98 = arith.constant dense<0.000000e+00> : vector<8x8xf32>
    %211 = vector.multi_reduction <add>, %210, %cst_98 [2] : vector<8x8x8xf32> to vector<8x8xf32>
    %212 = vector.shape_cast %211 : vector<8x8xf32> to vector<8x8x1xf32>
    %213 = tpu.reciprocal %212 {approx = true} : vector<8x8x1xf32> -> vector<8x8x1xf32>
    %214 = vector.broadcast %213 : vector<8x8x1xf32> to vector<8x8x8xf32>
    %215 = arith.mulf %210, %214 : vector<8x8x8xf32>
    %216 = arith.truncf %215 : vector<8x8x8xf32> to vector<8x8x8xbf16>
    %217 = vector.extract_strided_slice %216 {offsets = [0, 0, 0], sizes = [2, 8, 8], strides = [1, 1, 1]} : vector<8x8x8xbf16> to vector<2x8x8xbf16>
    %218 = vector.extract_strided_slice %192 {offsets = [0, 0, 0], sizes = [2, 8, 32], strides = [1, 1, 1]} : vector<2x8x128xbf16> to vector<2x8x32xbf16>
    %cst_99 = arith.constant dense<0.000000e+00> : vector<2x8x32xf32>
    %219 = tpu.matmul %217, %218, %cst_99 {dimension_numbers = #tpu.dot_dimension_numbers<[2], [1], [1], [2], [0, 0, 0, 1, 1, 2], [0], [0]>} : vector<2x8x8xbf16>, vector<2x8x32xbf16>, vector<2x8x32xf32> -> vector<2x8x32xf32>
    %220 = vector.extract_strided_slice %216 {offsets = [2, 0, 0], sizes = [2, 8, 8], strides = [1, 1, 1]} : vector<8x8x8xbf16> to vector<2x8x8xbf16>
    %221 = vector.extract_strided_slice %192 {offsets = [0, 0, 32], sizes = [2, 8, 32], strides = [1, 1, 1]} : vector<2x8x128xbf16> to vector<2x8x32xbf16>
    %cst_100 = arith.constant dense<0.000000e+00> : vector<2x8x32xf32>
    %222 = tpu.matmul %220, %221, %cst_100 {dimension_numbers = #tpu.dot_dimension_numbers<[2], [1], [1], [2], [0, 0, 0, 1, 1, 2], [0], [0]>} : vector<2x8x8xbf16>, vector<2x8x32xbf16>, vector<2x8x32xf32> -> vector<2x8x32xf32>
    %223 = vector.extract_strided_slice %216 {offsets = [4, 0, 0], sizes = [2, 8, 8], strides = [1, 1, 1]} : vector<8x8x8xbf16> to vector<2x8x8xbf16>
    %224 = vector.extract_strided_slice %192 {offsets = [0, 0, 64], sizes = [2, 8, 32], strides = [1, 1, 1]} : vector<2x8x128xbf16> to vector<2x8x32xbf16>
    %cst_101 = arith.constant dense<0.000000e+00> : vector<2x8x32xf32>
    %225 = tpu.matmul %223, %224, %cst_101 {dimension_numbers = #tpu.dot_dimension_numbers<[2], [1], [1], [2], [0, 0, 0, 1, 1, 2], [0], [0]>} : vector<2x8x8xbf16>, vector<2x8x32xbf16>, vector<2x8x32xf32> -> vector<2x8x32xf32>
    %226 = vector.extract_strided_slice %216 {offsets = [6, 0, 0], sizes = [2, 8, 8], strides = [1, 1, 1]} : vector<8x8x8xbf16> to vector<2x8x8xbf16>
    %227 = vector.extract_strided_slice %192 {offsets = [0, 0, 96], sizes = [2, 8, 32], strides = [1, 1, 1]} : vector<2x8x128xbf16> to vector<2x8x32xbf16>
    %cst_102 = arith.constant dense<0.000000e+00> : vector<2x8x32xf32>
    %228 = tpu.matmul %226, %227, %cst_102 {dimension_numbers = #tpu.dot_dimension_numbers<[2], [1], [1], [2], [0, 0, 0, 1, 1, 2], [0], [0]>} : vector<2x8x8xbf16>, vector<2x8x32xbf16>, vector<2x8x32xf32> -> vector<2x8x32xf32>
    %229 = tpu.concatenate %219, %222, %225, %228 in 2 : vector<2x8x32xf32>, vector<2x8x32xf32>, vector<2x8x32xf32>, vector<2x8x32xf32> -> vector<2x8x128xf32>
    %230 = vector.shape_cast %229 : vector<2x8x128xf32> to vector<16x128xf32>
    %231 = arith.truncf %230 : vector<16x128xf32> to vector<16x128xbf16>
    %c0_103 = arith.constant 0 : index
    %c0_104 = arith.constant 0 : index
    %c0_105 = arith.constant 0 : index
    %232 = vector.load %arg4[%c0_103, %c0_104, %c0_105] : memref<2x128x128xbf16, #tpu.memory_space<vmem>>, vector<1x128x128xbf16>
    %233 = vector.shape_cast %232 : vector<1x128x128xbf16> to vector<128x128xbf16>
    %cst_106 = arith.constant dense<0.000000e+00> : vector<16x128xf32>
    %234 = tpu.matmul %231, %233, %cst_106 {dimension_numbers = #tpu.dot_dimension_numbers<[1], [0], [0], [1], [0, 0, 1, 1], [], []>} : vector<16x128xbf16>, vector<128x128xbf16>, vector<16x128xf32> -> vector<16x128xf32>
    %235 = vector.broadcast %151 : vector<1x128xf32> to vector<16x128xf32>
    %236 = arith.addf %234, %235 : vector<16x128xf32>
    %237 = arith.addf %144, %236 : vector<16x128xf32>
    %cst_107 = arith.constant dense<0.000000e+00> : vector<16xf32>
    %238 = vector.multi_reduction <add>, %237, %cst_107 [1] : vector<16x128xf32> to vector<16xf32>
    %239 = vector.shape_cast %238 : vector<16xf32> to vector<16x1xf32>
    %cst_108 = arith.constant 1.280000e+02 : f32
    %240 = vector.broadcast %cst_108 : f32 to vector<16x1xf32>
    %241 = arith.divf %239, %240 : vector<16x1xf32>
    %242 = vector.broadcast %241 : vector<16x1xf32> to vector<16x128xf32>
    %243 = arith.subf %237, %242 : vector<16x128xf32>
    %244 = arith.mulf %243, %243 : vector<16x128xf32>
    %cst_109 = arith.constant dense<0.000000e+00> : vector<16xf32>
    %245 = vector.multi_reduction <add>, %244, %cst_109 [1] : vector<16x128xf32> to vector<16xf32>
    %246 = vector.shape_cast %245 : vector<16xf32> to vector<16x1xf32>
    %cst_110 = arith.constant 1.280000e+02 : f32
    %247 = vector.broadcast %cst_110 : f32 to vector<16x1xf32>
    %248 = arith.divf %246, %247 : vector<16x1xf32>
    %cst_111 = arith.constant 9.99999974E-6 : f32
    %249 = vector.broadcast %cst_111 : f32 to vector<16x1xf32>
    %250 = arith.addf %248, %249 : vector<16x1xf32>
    %251 = math.rsqrt %250 : vector<16x1xf32>
    %252 = vector.broadcast %251 : vector<16x1xf32> to vector<16x128xf32>
    %253 = arith.mulf %243, %252 : vector<16x128xf32>
    %254 = vector.broadcast %152 : vector<1x128xf32> to vector<16x128xf32>
    %255 = arith.mulf %253, %254 : vector<16x128xf32>
    %256 = vector.broadcast %153 : vector<1x128xf32> to vector<16x128xf32>
    %257 = arith.addf %255, %256 : vector<16x128xf32>
    %258 = arith.truncf %257 : vector<16x128xf32> to vector<16x128xbf16>
    %c0_112 = arith.constant 0 : index
    %c0_113 = arith.constant 0 : index
    %c0_114 = arith.constant 0 : index
    %259 = vector.load %arg5[%c0_112, %c0_113, %c0_114] : memref<2x128x128xbf16, #tpu.memory_space<vmem>>, vector<1x128x128xbf16>
    %260 = vector.shape_cast %259 : vector<1x128x128xbf16> to vector<128x128xbf16>
    %cst_115 = arith.constant dense<0.000000e+00> : vector<16x128xf32>
    %261 = tpu.matmul %258, %260, %cst_115 {dimension_numbers = #tpu.dot_dimension_numbers<[1], [0], [0], [1], [0, 0, 1, 1], [], []>} : vector<16x128xbf16>, vector<128x128xbf16>, vector<16x128xf32> -> vector<16x128xf32>
    %262 = vector.broadcast %154 : vector<1x128xf32> to vector<16x128xf32>
    %263 = arith.addf %261, %262 : vector<16x128xf32>
    %cst_116 = arith.constant 0.000000e+00 : f32
    %264 = vector.broadcast %cst_116 : f32 to vector<16x128xf32>
    %265 = arith.maximumf %263, %264 : vector<16x128xf32>
    %266 = arith.truncf %265 : vector<16x128xf32> to vector<16x128xbf16>
    %c0_117 = arith.constant 0 : index
    %c0_118 = arith.constant 0 : index
    %c0_119 = arith.constant 0 : index
    %267 = vector.load %arg6[%c0_117, %c0_118, %c0_119] : memref<2x128x128xbf16, #tpu.memory_space<vmem>>, vector<1x128x128xbf16>
    %268 = vector.shape_cast %267 : vector<1x128x128xbf16> to vector<128x128xbf16>
    %cst_120 = arith.constant dense<0.000000e+00> : vector<16x128xf32>
    %269 = tpu.matmul %266, %268, %cst_120 {dimension_numbers = #tpu.dot_dimension_numbers<[1], [0], [0], [1], [0, 0, 1, 1], [], []>} : vector<16x128xbf16>, vector<128x128xbf16>, vector<16x128xf32> -> vector<16x128xf32>
    %270 = vector.broadcast %155 : vector<1x128xf32> to vector<16x128xf32>
    %271 = arith.addf %269, %270 : vector<16x128xf32>
    %272 = arith.addf %237, %271 : vector<16x128xf32>
    %c1_121 = arith.constant 1 : index
    %c0_122 = arith.constant 0 : index
    %c0_123 = arith.constant 0 : index
    %273 = vector.load %arg7[%c1_121, %c0_122, %c0_123] : memref<2x9x128xf32, #tpu.memory_space<vmem>>, vector<1x9x128xf32>
    %274 = vector.shape_cast %273 : vector<1x9x128xf32> to vector<9x128xf32>
    %275 = vector.extract_strided_slice %274 {offsets = [0, 0], sizes = [1, 128], strides = [1, 1]} : vector<9x128xf32> to vector<1x128xf32>
    %276 = vector.extract_strided_slice %274 {offsets = [1, 0], sizes = [1, 128], strides = [1, 1]} : vector<9x128xf32> to vector<1x128xf32>
    %277 = vector.extract_strided_slice %274 {offsets = [2, 0], sizes = [1, 128], strides = [1, 1]} : vector<9x128xf32> to vector<1x128xf32>
    %278 = vector.extract_strided_slice %274 {offsets = [3, 0], sizes = [1, 128], strides = [1, 1]} : vector<9x128xf32> to vector<1x128xf32>
    %279 = vector.extract_strided_slice %274 {offsets = [4, 0], sizes = [1, 128], strides = [1, 1]} : vector<9x128xf32> to vector<1x128xf32>
    %280 = vector.extract_strided_slice %274 {offsets = [5, 0], sizes = [1, 128], strides = [1, 1]} : vector<9x128xf32> to vector<1x128xf32>
    %281 = vector.extract_strided_slice %274 {offsets = [6, 0], sizes = [1, 128], strides = [1, 1]} : vector<9x128xf32> to vector<1x128xf32>
    %282 = vector.extract_strided_slice %274 {offsets = [7, 0], sizes = [1, 128], strides = [1, 1]} : vector<9x128xf32> to vector<1x128xf32>
    %283 = vector.extract_strided_slice %274 {offsets = [8, 0], sizes = [1, 128], strides = [1, 1]} : vector<9x128xf32> to vector<1x128xf32>
    %cst_124 = arith.constant dense<0.000000e+00> : vector<16xf32>
    %284 = vector.multi_reduction <add>, %272, %cst_124 [1] : vector<16x128xf32> to vector<16xf32>
    %285 = vector.shape_cast %284 : vector<16xf32> to vector<16x1xf32>
    %cst_125 = arith.constant 1.280000e+02 : f32
    %286 = vector.broadcast %cst_125 : f32 to vector<16x1xf32>
    %287 = arith.divf %285, %286 : vector<16x1xf32>
    %288 = vector.broadcast %287 : vector<16x1xf32> to vector<16x128xf32>
    %289 = arith.subf %272, %288 : vector<16x128xf32>
    %290 = arith.mulf %289, %289 : vector<16x128xf32>
    %cst_126 = arith.constant dense<0.000000e+00> : vector<16xf32>
    %291 = vector.multi_reduction <add>, %290, %cst_126 [1] : vector<16x128xf32> to vector<16xf32>
    %292 = vector.shape_cast %291 : vector<16xf32> to vector<16x1xf32>
    %cst_127 = arith.constant 1.280000e+02 : f32
    %293 = vector.broadcast %cst_127 : f32 to vector<16x1xf32>
    %294 = arith.divf %292, %293 : vector<16x1xf32>
    %cst_128 = arith.constant 9.99999974E-6 : f32
    %295 = vector.broadcast %cst_128 : f32 to vector<16x1xf32>
    %296 = arith.addf %294, %295 : vector<16x1xf32>
    %297 = math.rsqrt %296 : vector<16x1xf32>
    %298 = vector.broadcast %297 : vector<16x1xf32> to vector<16x128xf32>
    %299 = arith.mulf %289, %298 : vector<16x128xf32>
    %300 = vector.broadcast %275 : vector<1x128xf32> to vector<16x128xf32>
    %301 = arith.mulf %299, %300 : vector<16x128xf32>
    %302 = vector.broadcast %276 : vector<1x128xf32> to vector<16x128xf32>
    %303 = arith.addf %301, %302 : vector<16x128xf32>
    %304 = arith.truncf %303 : vector<16x128xf32> to vector<16x128xbf16>
    %c1_129 = arith.constant 1 : index
    %c0_130 = arith.constant 0 : index
    %c0_131 = arith.constant 0 : index
    %305 = vector.load %arg3[%c1_129, %c0_130, %c0_131] : memref<2x128x384xbf16, #tpu.memory_space<vmem>>, vector<1x128x384xbf16>
    %306 = vector.shape_cast %305 : vector<1x128x384xbf16> to vector<128x384xbf16>
    %cst_132 = arith.constant dense<0.000000e+00> : vector<16x384xf32>
    %307 = tpu.matmul %304, %306, %cst_132 {dimension_numbers = #tpu.dot_dimension_numbers<[1], [0], [0], [1], [0, 0, 1, 1], [], []>} : vector<16x128xbf16>, vector<128x384xbf16>, vector<16x384xf32> -> vector<16x384xf32>
    %308 = vector.extract_strided_slice %307 {offsets = [0, 0], sizes = [16, 128], strides = [1, 1]} : vector<16x384xf32> to vector<16x128xf32>
    %309 = vector.broadcast %277 : vector<1x128xf32> to vector<16x128xf32>
    %310 = arith.addf %308, %309 : vector<16x128xf32>
    %311 = vector.shape_cast %310 : vector<16x128xf32> to vector<2x8x128xf32>
    %312 = arith.truncf %311 : vector<2x8x128xf32> to vector<2x8x128xbf16>
    %313 = vector.extract_strided_slice %307 {offsets = [0, 128], sizes = [16, 128], strides = [1, 1]} : vector<16x384xf32> to vector<16x128xf32>
    %314 = vector.shape_cast %313 : vector<16x128xf32> to vector<2x8x128xf32>
    %315 = arith.truncf %314 : vector<2x8x128xf32> to vector<2x8x128xbf16>
    %316 = vector.extract_strided_slice %307 {offsets = [0, 256], sizes = [16, 128], strides = [1, 1]} : vector<16x384xf32> to vector<16x128xf32>
    %317 = vector.broadcast %278 : vector<1x128xf32> to vector<16x128xf32>
    %318 = arith.addf %316, %317 : vector<16x128xf32>
    %319 = vector.shape_cast %318 : vector<16x128xf32> to vector<2x8x128xf32>
    %320 = arith.truncf %319 : vector<2x8x128xf32> to vector<2x8x128xbf16>
    %321 = vector.extract_strided_slice %312 {offsets = [0, 0, 0], sizes = [2, 8, 32], strides = [1, 1, 1]} : vector<2x8x128xbf16> to vector<2x8x32xbf16>
    %322 = vector.extract_strided_slice %315 {offsets = [0, 0, 0], sizes = [2, 8, 32], strides = [1, 1, 1]} : vector<2x8x128xbf16> to vector<2x8x32xbf16>
    %cst_133 = arith.constant dense<0.000000e+00> : vector<2x8x8xf32>
    %323 = tpu.matmul %321, %322, %cst_133 {dimension_numbers = #tpu.dot_dimension_numbers<[2], [2], [1], [1], [0, 0, 0, 1, 1, 1], [0], [0]>} : vector<2x8x32xbf16>, vector<2x8x32xbf16>, vector<2x8x8xf32> -> vector<2x8x8xf32>
    %324 = vector.extract_strided_slice %312 {offsets = [0, 0, 32], sizes = [2, 8, 32], strides = [1, 1, 1]} : vector<2x8x128xbf16> to vector<2x8x32xbf16>
    %325 = vector.extract_strided_slice %315 {offsets = [0, 0, 32], sizes = [2, 8, 32], strides = [1, 1, 1]} : vector<2x8x128xbf16> to vector<2x8x32xbf16>
    %cst_134 = arith.constant dense<0.000000e+00> : vector<2x8x8xf32>
    %326 = tpu.matmul %324, %325, %cst_134 {dimension_numbers = #tpu.dot_dimension_numbers<[2], [2], [1], [1], [0, 0, 0, 1, 1, 1], [0], [0]>} : vector<2x8x32xbf16>, vector<2x8x32xbf16>, vector<2x8x8xf32> -> vector<2x8x8xf32>
    %327 = vector.extract_strided_slice %312 {offsets = [0, 0, 64], sizes = [2, 8, 32], strides = [1, 1, 1]} : vector<2x8x128xbf16> to vector<2x8x32xbf16>
    %328 = vector.extract_strided_slice %315 {offsets = [0, 0, 64], sizes = [2, 8, 32], strides = [1, 1, 1]} : vector<2x8x128xbf16> to vector<2x8x32xbf16>
    %cst_135 = arith.constant dense<0.000000e+00> : vector<2x8x8xf32>
    %329 = tpu.matmul %327, %328, %cst_135 {dimension_numbers = #tpu.dot_dimension_numbers<[2], [2], [1], [1], [0, 0, 0, 1, 1, 1], [0], [0]>} : vector<2x8x32xbf16>, vector<2x8x32xbf16>, vector<2x8x8xf32> -> vector<2x8x8xf32>
    %330 = vector.extract_strided_slice %312 {offsets = [0, 0, 96], sizes = [2, 8, 32], strides = [1, 1, 1]} : vector<2x8x128xbf16> to vector<2x8x32xbf16>
    %331 = vector.extract_strided_slice %315 {offsets = [0, 0, 96], sizes = [2, 8, 32], strides = [1, 1, 1]} : vector<2x8x128xbf16> to vector<2x8x32xbf16>
    %cst_136 = arith.constant dense<0.000000e+00> : vector<2x8x8xf32>
    %332 = tpu.matmul %330, %331, %cst_136 {dimension_numbers = #tpu.dot_dimension_numbers<[2], [2], [1], [1], [0, 0, 0, 1, 1, 1], [0], [0]>} : vector<2x8x32xbf16>, vector<2x8x32xbf16>, vector<2x8x8xf32> -> vector<2x8x8xf32>
    %333 = tpu.concatenate %323, %326, %329, %332 in 0 : vector<2x8x8xf32>, vector<2x8x8xf32>, vector<2x8x8xf32>, vector<2x8x8xf32> -> vector<8x8x8xf32>
    %cst_137 = arith.constant dense<0xFF800000> : vector<8x8xf32>
    %334 = vector.multi_reduction <maximumf>, %333, %cst_137 [2] : vector<8x8x8xf32> to vector<8x8xf32>
    %335 = vector.shape_cast %334 : vector<8x8xf32> to vector<8x8x1xf32>
    %336 = vector.broadcast %335 : vector<8x8x1xf32> to vector<8x8x8xf32>
    %337 = arith.subf %333, %336 : vector<8x8x8xf32>
    %338 = math.exp %337 : vector<8x8x8xf32>
    %cst_138 = arith.constant dense<0.000000e+00> : vector<8x8xf32>
    %339 = vector.multi_reduction <add>, %338, %cst_138 [2] : vector<8x8x8xf32> to vector<8x8xf32>
    %340 = vector.shape_cast %339 : vector<8x8xf32> to vector<8x8x1xf32>
    %341 = tpu.reciprocal %340 {approx = true} : vector<8x8x1xf32> -> vector<8x8x1xf32>
    %342 = vector.broadcast %341 : vector<8x8x1xf32> to vector<8x8x8xf32>
    %343 = arith.mulf %338, %342 : vector<8x8x8xf32>
    %344 = arith.truncf %343 : vector<8x8x8xf32> to vector<8x8x8xbf16>
    %345 = vector.extract_strided_slice %344 {offsets = [0, 0, 0], sizes = [2, 8, 8], strides = [1, 1, 1]} : vector<8x8x8xbf16> to vector<2x8x8xbf16>
    %346 = vector.extract_strided_slice %320 {offsets = [0, 0, 0], sizes = [2, 8, 32], strides = [1, 1, 1]} : vector<2x8x128xbf16> to vector<2x8x32xbf16>
    %cst_139 = arith.constant dense<0.000000e+00> : vector<2x8x32xf32>
    %347 = tpu.matmul %345, %346, %cst_139 {dimension_numbers = #tpu.dot_dimension_numbers<[2], [1], [1], [2], [0, 0, 0, 1, 1, 2], [0], [0]>} : vector<2x8x8xbf16>, vector<2x8x32xbf16>, vector<2x8x32xf32> -> vector<2x8x32xf32>
    %348 = vector.extract_strided_slice %344 {offsets = [2, 0, 0], sizes = [2, 8, 8], strides = [1, 1, 1]} : vector<8x8x8xbf16> to vector<2x8x8xbf16>
    %349 = vector.extract_strided_slice %320 {offsets = [0, 0, 32], sizes = [2, 8, 32], strides = [1, 1, 1]} : vector<2x8x128xbf16> to vector<2x8x32xbf16>
    %cst_140 = arith.constant dense<0.000000e+00> : vector<2x8x32xf32>
    %350 = tpu.matmul %348, %349, %cst_140 {dimension_numbers = #tpu.dot_dimension_numbers<[2], [1], [1], [2], [0, 0, 0, 1, 1, 2], [0], [0]>} : vector<2x8x8xbf16>, vector<2x8x32xbf16>, vector<2x8x32xf32> -> vector<2x8x32xf32>
    %351 = vector.extract_strided_slice %344 {offsets = [4, 0, 0], sizes = [2, 8, 8], strides = [1, 1, 1]} : vector<8x8x8xbf16> to vector<2x8x8xbf16>
    %352 = vector.extract_strided_slice %320 {offsets = [0, 0, 64], sizes = [2, 8, 32], strides = [1, 1, 1]} : vector<2x8x128xbf16> to vector<2x8x32xbf16>
    %cst_141 = arith.constant dense<0.000000e+00> : vector<2x8x32xf32>
    %353 = tpu.matmul %351, %352, %cst_141 {dimension_numbers = #tpu.dot_dimension_numbers<[2], [1], [1], [2], [0, 0, 0, 1, 1, 2], [0], [0]>} : vector<2x8x8xbf16>, vector<2x8x32xbf16>, vector<2x8x32xf32> -> vector<2x8x32xf32>
    %354 = vector.extract_strided_slice %344 {offsets = [6, 0, 0], sizes = [2, 8, 8], strides = [1, 1, 1]} : vector<8x8x8xbf16> to vector<2x8x8xbf16>
    %355 = vector.extract_strided_slice %320 {offsets = [0, 0, 96], sizes = [2, 8, 32], strides = [1, 1, 1]} : vector<2x8x128xbf16> to vector<2x8x32xbf16>
    %cst_142 = arith.constant dense<0.000000e+00> : vector<2x8x32xf32>
    %356 = tpu.matmul %354, %355, %cst_142 {dimension_numbers = #tpu.dot_dimension_numbers<[2], [1], [1], [2], [0, 0, 0, 1, 1, 2], [0], [0]>} : vector<2x8x8xbf16>, vector<2x8x32xbf16>, vector<2x8x32xf32> -> vector<2x8x32xf32>
    %357 = tpu.concatenate %347, %350, %353, %356 in 2 : vector<2x8x32xf32>, vector<2x8x32xf32>, vector<2x8x32xf32>, vector<2x8x32xf32> -> vector<2x8x128xf32>
    %358 = vector.shape_cast %357 : vector<2x8x128xf32> to vector<16x128xf32>
    %359 = arith.truncf %358 : vector<16x128xf32> to vector<16x128xbf16>
    %c1_143 = arith.constant 1 : index
    %c0_144 = arith.constant 0 : index
    %c0_145 = arith.constant 0 : index
    %360 = vector.load %arg4[%c1_143, %c0_144, %c0_145] : memref<2x128x128xbf16, #tpu.memory_space<vmem>>, vector<1x128x128xbf16>
    %361 = vector.shape_cast %360 : vector<1x128x128xbf16> to vector<128x128xbf16>
    %cst_146 = arith.constant dense<0.000000e+00> : vector<16x128xf32>
    %362 = tpu.matmul %359, %361, %cst_146 {dimension_numbers = #tpu.dot_dimension_numbers<[1], [0], [0], [1], [0, 0, 1, 1], [], []>} : vector<16x128xbf16>, vector<128x128xbf16>, vector<16x128xf32> -> vector<16x128xf32>
    %363 = vector.broadcast %279 : vector<1x128xf32> to vector<16x128xf32>
    %364 = arith.addf %362, %363 : vector<16x128xf32>
    %365 = arith.addf %272, %364 : vector<16x128xf32>
    %cst_147 = arith.constant dense<0.000000e+00> : vector<16xf32>
    %366 = vector.multi_reduction <add>, %365, %cst_147 [1] : vector<16x128xf32> to vector<16xf32>
    %367 = vector.shape_cast %366 : vector<16xf32> to vector<16x1xf32>
    %cst_148 = arith.constant 1.280000e+02 : f32
    %368 = vector.broadcast %cst_148 : f32 to vector<16x1xf32>
    %369 = arith.divf %367, %368 : vector<16x1xf32>
    %370 = vector.broadcast %369 : vector<16x1xf32> to vector<16x128xf32>
    %371 = arith.subf %365, %370 : vector<16x128xf32>
    %372 = arith.mulf %371, %371 : vector<16x128xf32>
    %cst_149 = arith.constant dense<0.000000e+00> : vector<16xf32>
    %373 = vector.multi_reduction <add>, %372, %cst_149 [1] : vector<16x128xf32> to vector<16xf32>
    %374 = vector.shape_cast %373 : vector<16xf32> to vector<16x1xf32>
    %cst_150 = arith.constant 1.280000e+02 : f32
    %375 = vector.broadcast %cst_150 : f32 to vector<16x1xf32>
    %376 = arith.divf %374, %375 : vector<16x1xf32>
    %cst_151 = arith.constant 9.99999974E-6 : f32
    %377 = vector.broadcast %cst_151 : f32 to vector<16x1xf32>
    %378 = arith.addf %376, %377 : vector<16x1xf32>
    %379 = math.rsqrt %378 : vector<16x1xf32>
    %380 = vector.broadcast %379 : vector<16x1xf32> to vector<16x128xf32>
    %381 = arith.mulf %371, %380 : vector<16x128xf32>
    %382 = vector.broadcast %280 : vector<1x128xf32> to vector<16x128xf32>
    %383 = arith.mulf %381, %382 : vector<16x128xf32>
    %384 = vector.broadcast %281 : vector<1x128xf32> to vector<16x128xf32>
    %385 = arith.addf %383, %384 : vector<16x128xf32>
    %386 = arith.truncf %385 : vector<16x128xf32> to vector<16x128xbf16>
    %c1_152 = arith.constant 1 : index
    %c0_153 = arith.constant 0 : index
    %c0_154 = arith.constant 0 : index
    %387 = vector.load %arg5[%c1_152, %c0_153, %c0_154] : memref<2x128x128xbf16, #tpu.memory_space<vmem>>, vector<1x128x128xbf16>
    %388 = vector.shape_cast %387 : vector<1x128x128xbf16> to vector<128x128xbf16>
    %cst_155 = arith.constant dense<0.000000e+00> : vector<16x128xf32>
    %389 = tpu.matmul %386, %388, %cst_155 {dimension_numbers = #tpu.dot_dimension_numbers<[1], [0], [0], [1], [0, 0, 1, 1], [], []>} : vector<16x128xbf16>, vector<128x128xbf16>, vector<16x128xf32> -> vector<16x128xf32>
    %390 = vector.broadcast %282 : vector<1x128xf32> to vector<16x128xf32>
    %391 = arith.addf %389, %390 : vector<16x128xf32>
    %cst_156 = arith.constant 0.000000e+00 : f32
    %392 = vector.broadcast %cst_156 : f32 to vector<16x128xf32>
    %393 = arith.maximumf %391, %392 : vector<16x128xf32>
    %394 = arith.truncf %393 : vector<16x128xf32> to vector<16x128xbf16>
    %c1_157 = arith.constant 1 : index
    %c0_158 = arith.constant 0 : index
    %c0_159 = arith.constant 0 : index
    %395 = vector.load %arg6[%c1_157, %c0_158, %c0_159] : memref<2x128x128xbf16, #tpu.memory_space<vmem>>, vector<1x128x128xbf16>
    %396 = vector.shape_cast %395 : vector<1x128x128xbf16> to vector<128x128xbf16>
    %cst_160 = arith.constant dense<0.000000e+00> : vector<16x128xf32>
    %397 = tpu.matmul %394, %396, %cst_160 {dimension_numbers = #tpu.dot_dimension_numbers<[1], [0], [0], [1], [0, 0, 1, 1], [], []>} : vector<16x128xbf16>, vector<128x128xbf16>, vector<16x128xf32> -> vector<16x128xf32>
    %398 = vector.broadcast %283 : vector<1x128xf32> to vector<16x128xf32>
    %399 = arith.addf %397, %398 : vector<16x128xf32>
    %400 = arith.addf %365, %399 : vector<16x128xf32>
    %c0_161 = arith.constant 0 : index
    %c0_162 = arith.constant 0 : index
    %401 = vector.load %arg8[%c0_161, %c0_162] : memref<2x128xf32, #tpu.memory_space<vmem>>, vector<1x128xf32>
    %c1_163 = arith.constant 1 : index
    %c0_164 = arith.constant 0 : index
    %402 = vector.load %arg8[%c1_163, %c0_164] : memref<2x128xf32, #tpu.memory_space<vmem>>, vector<1x128xf32>
    %cst_165 = arith.constant dense<0.000000e+00> : vector<16xf32>
    %403 = vector.multi_reduction <add>, %400, %cst_165 [1] : vector<16x128xf32> to vector<16xf32>
    %404 = vector.shape_cast %403 : vector<16xf32> to vector<16x1xf32>
    %cst_166 = arith.constant 1.280000e+02 : f32
    %405 = vector.broadcast %cst_166 : f32 to vector<16x1xf32>
    %406 = arith.divf %404, %405 : vector<16x1xf32>
    %407 = vector.broadcast %406 : vector<16x1xf32> to vector<16x128xf32>
    %408 = arith.subf %400, %407 : vector<16x128xf32>
    %409 = arith.mulf %408, %408 : vector<16x128xf32>
    %cst_167 = arith.constant dense<0.000000e+00> : vector<16xf32>
    %410 = vector.multi_reduction <add>, %409, %cst_167 [1] : vector<16x128xf32> to vector<16xf32>
    %411 = vector.shape_cast %410 : vector<16xf32> to vector<16x1xf32>
    %cst_168 = arith.constant 1.280000e+02 : f32
    %412 = vector.broadcast %cst_168 : f32 to vector<16x1xf32>
    %413 = arith.divf %411, %412 : vector<16x1xf32>
    %cst_169 = arith.constant 9.99999974E-6 : f32
    %414 = vector.broadcast %cst_169 : f32 to vector<16x1xf32>
    %415 = arith.addf %413, %414 : vector<16x1xf32>
    %416 = math.rsqrt %415 : vector<16x1xf32>
    %417 = vector.broadcast %416 : vector<16x1xf32> to vector<16x128xf32>
    %418 = arith.mulf %408, %417 : vector<16x128xf32>
    %419 = vector.broadcast %401 : vector<1x128xf32> to vector<16x128xf32>
    %420 = arith.mulf %418, %419 : vector<16x128xf32>
    %421 = vector.broadcast %402 : vector<1x128xf32> to vector<16x128xf32>
    %422 = arith.addf %420, %421 : vector<16x128xf32>
    %c0_170 = arith.constant 0 : index
    %c0_171 = arith.constant 0 : index
    %423 = vector.load %arg9[%c0_170, %c0_171] : memref<16x128xf32, #tpu.memory_space<vmem>>, vector<16x128xf32>
    tpu.vector_store %arg9[%c0_170, %c0_171], %422 {strides = array<i32>} : memref<16x128xf32, #tpu.memory_space<vmem>>, vector<16x128xf32>,
    return
  }
}

</mosaic_0001>

<bundles_post_ra>
// kernel: tpu_custom_call.1
= control target key start
LH: loop header
LB: loop body
LE: loop exit
PB: predicated region body
PF: predicated region fallthrough
CT: control target
= control target key end

     0   :  { %14 = vsyncpa [#allocation6], 0  ;;  %s5238_s0 = inlined_call_operand.vmem [shape: s32[16], index: 0, kind: input, shape index: {}]   ;;  %s5239_s1 = inlined_call_operand.hbm [shape: f32[64,128], index: 1, kind: input, shape index: {}]   ;;  %s5240_s2 = inlined_call_operand.hbm [shape: f32[64,128], index: 2, kind: input, shape index: {}]   ;;  %s5241_s3 = inlined_call_operand.hbm [shape: bf16[2,128,384], index: 3, kind: input, shape index: {}]   ;;  %s5242_s4 = inlined_call_operand.hbm [shape: bf16[2,128,128], index: 4, kind: input, shape index: {}]   ;;  %s5243_s5 = inlined_call_operand.hbm [shape: bf16[2,128,128], index: 5, kind: input, shape index: {}]   ;;  %s5244_s6 = inlined_call_operand.hbm [shape: bf16[2,128,128], index: 6, kind: input, shape index: {}]   ;;  %s5245_s7 = inlined_call_operand.vmem [shape: f32[2,9,128], index: 7, kind: input, shape index: {}]   ;;  %s5246_s8 = inlined_call_operand.vmem [shape: f32[2,128], index: 8, kind: input, shape index: {}]   ;;  %s5247_s9 = inlined_call_operand.hbm [shape: f32[16,128], index: 9, kind: output, shape index: {}]  }
   0x1   :  { %15 = vsyncpa [#allocation4], 0 }
   0x2   :  { %16 = vsyncpa [#allocation9], 0 }
   0x3   :  { %17 = vsyncpa [#allocation12], 0 }
   0x4   :  { %18 = vsyncpa [#allocation15], 0 }
   0x5   :  { %19 = vsyncpa [#allocation5], 0  ;;  %s4555_s30 = smov [#allocation8]   ;;  %s4556_s11 = smov [#allocation11]  }
   0x6   :  { %s47_s10 = sshll.u32 %s4555_s30, 4  ;;  %s71_s12 = sshll.u32 %s4556_s11, 4  ;;  %s48_s10 = int_to_ptr.vmem [resolvable:$true] %s47_s10  ;;  %s72_s12 = int_to_ptr.vmem [resolvable:$true] %s71_s12 }
   0x7   :  { %s4399_s13 = scalar_lea.vmem %s48_s10, 1024  ;;  %p4404_p1 = scmp.lt.s32.totalorder %s48_s10, %s48_s10 }
   0x8   :  { %p4400_p0 = scmp.ne.s32.totalorder %s48_s10, %s4399_s13  ;;  %p4405_p2 = scmp.lt.s32.totalorder %s4399_s13, %s4399_s13 }
   0xa   :  { %p4406_p3 = por %p4405_p2, %p4404_p1 }
   0xc   :  { %p4407_p4 = pnand %p4406_p3, %p4400_p0 }
   0xe   :  { %4410 = shalt.err (!%p4407_p4)
}
   0xf   :  { %s4557_s14 = smov 128   ;;  %s4558_s15 = smov 8  }
  0x10   :  { %53 = dma.hbm_to_vmem [thread:$0]  %s5240_s2, 1024, %s48_s10, [#allocation9], %s4557_s14, %s4557_s14, %s4558_s15  }
  0x11   :  { %s4419_s18 = scalar_lea.vmem %s72_s12, 2048  ;;  %p4424_p6 = scmp.lt.s32.totalorder %s72_s12, %s72_s12 }
  0x12   :  { %p4420_p5 = scmp.ne.s32.totalorder %s72_s12, %s4419_s18  ;;  %p4425_p7 = scmp.lt.s32.totalorder %s4419_s18, %s4419_s18 }
  0x14   :  { %p4426_p8 = por %p4425_p7, %p4424_p6 }
  0x16   :  { %p4427_p9 = pnand %p4426_p8, %p4420_p5 }
  0x18   :  { %4430 = shalt.err (!%p4427_p9)
}
  0x19   :  { %s4559_s19 = smov 64   ;;  %s4560_s20 = smov 4  }
  0x1a   :  { %77 = dma.hbm_to_vmem [thread:$0]  %s5242_s4, 2048, %s72_s12, [#allocation12], %s4559_s19, %s4559_s19, %s4560_s20  }
  0x1b   :  { %s26_s2 = sshll.u32 %s5238_s0, 4  ;;  %s27_s2 = int_to_ptr.vmem [resolvable:$true] %s26_s2 }
  0x1c   :  { %s4431_s25 = scalar_lea.vmem %s27_s2, 16  ;;  %p4436_p11 = scmp.lt.s32.totalorder %s27_s2, %s27_s2 }
  0x1d   :  { %p4432_p10 = scmp.ne.s32.totalorder %s27_s2, %s4431_s25  ;;  %p4437_p12 = scmp.lt.s32.totalorder %s4431_s25, %s4431_s25 }
  0x1f   :  { %p4438_p13 = por %p4437_p12, %p4436_p11 }
  0x21   :  { %p4439_p0 = pnand %p4438_p13, %p4432_p10 }
  0x23   :  { %4442 = shalt.err (!%p4439_p0)
}
  0x24   :  { %s4561_s26 = smov [#allocation3]   ;;  %s4562_s27 = smov [#allocation7]  }
  0x25   :  { %29 = dma.vmem_to_smem %s27_s2, 16, %s4561_s26, [#allocation6]  }
  0x26   :  { %s35_s28 = sshll.u32 %s4562_s27, 4  ;;  %s4563_s29 = smov [#allocation10]   ;;  %s36_s28 = int_to_ptr.vmem [resolvable:$true] %s35_s28 }
  0x27   :  { %s59_s30 = sshll.u32 %s4563_s29, 4  ;;  %s4451_s4 = scalar_lea.vmem %s36_s28, 1024  ;;  %s60_s30 = int_to_ptr.vmem [resolvable:$true] %s59_s30 }
  0x28   :  { %p4452_p1 = scmp.ne.s32.totalorder %s36_s28, %s4451_s4  ;;  %p4456_p2 = scmp.lt.s32.totalorder %s36_s28, %s36_s28 }
  0x29   :  { %p4457_p3 = scmp.lt.s32.totalorder %s4451_s4, %s4451_s4 }
  0x2b   :  { %p4458_p4 = por %p4457_p3, %p4456_p2 }
  0x2d   :  { %p4459_p5 = pnand %p4458_p4, %p4452_p1 }
  0x2f   :  { %4462 = shalt.err (!%p4459_p5)
}
  0x30   :  { %41 = dma.hbm_to_vmem [thread:$0]  %s5239_s1, 1024, %s36_s28, [#allocation4], %s4557_s14, %s4557_s14, %s4558_s15  }
  0x31   :  { %s4471_s11 = scalar_lea.vmem %s60_s30, 6144  ;;  %p4476_p7 = scmp.lt.s32.totalorder %s60_s30, %s60_s30 }
  0x32   :  { %p4472_p6 = scmp.ne.s32.totalorder %s60_s30, %s4471_s11  ;;  %p4477_p8 = scmp.lt.s32.totalorder %s4471_s11, %s4471_s11 }
  0x34   :  { %p4478_p9 = por %p4477_p8, %p4476_p7 }
  0x36   :  { %p4479_p10 = pnand %p4478_p9, %p4472_p6 }
  0x38   :  { %4482 = shalt.err (!%p4479_p10)
}
  0x39   :  { %s4564_s12 = smov 192   ;;  %s4565_s13 = smov 12  }
  0x3a   :  { %65 = dma.hbm_to_vmem [thread:$0]  %s5241_s3, 6144, %s60_s30, [#allocation9], %s4564_s12, %s4564_s12, %s4565_s13  }
  0x3b   :  { %s4566_s18 = smov [#allocation13]   ;;  %s4567_s22 = smov [#allocation14]  }
  0x3c   :  { %s83_s21 = sshll.u32 %s4566_s18, 4  ;;  %s95_s23 = sshll.u32 %s4567_s22, 4  ;;  %s84_s21 = int_to_ptr.vmem [resolvable:$true] %s83_s21  ;;  %s96_s23 = int_to_ptr.vmem [resolvable:$true] %s95_s23 }
  0x3d   :  { %s4491_s1 = scalar_lea.vmem %s84_s21, 2048  ;;  %p4496_p12 = scmp.lt.s32.totalorder %s84_s21, %s84_s21 }
  0x3e   :  { %p4492_p11 = scmp.ne.s32.totalorder %s84_s21, %s4491_s1  ;;  %p4497_p13 = scmp.lt.s32.totalorder %s4491_s1, %s4491_s1 }
  0x40   :  { %p4498_p0 = por %p4497_p13, %p4496_p12 }
  0x42   :  { %p4499_p1 = pnand %p4498_p0, %p4492_p11 }
  0x44   :  { %4502 = shalt.err (!%p4499_p1)
}
  0x45   :  { %89 = dma.hbm_to_vmem [thread:$0]  %s5243_s5, 2048, %s84_s21, [#allocation12], %s4559_s19, %s4559_s19, %s4560_s20  }
  0x46   :  { %s4511_s3 = scalar_lea.vmem %s96_s23, 2048  ;;  %p4516_p3 = scmp.lt.s32.totalorder %s96_s23, %s96_s23 }
  0x47   :  { %p4512_p2 = scmp.ne.s32.totalorder %s96_s23, %s4511_s3  ;;  %p4517_p4 = scmp.lt.s32.totalorder %s4511_s3, %s4511_s3 }
  0x49   :  { %p4518_p5 = por %p4517_p4, %p4516_p3 }
  0x4b   :  { %p4519_p6 = pnand %p4518_p5, %p4512_p2 }
  0x4d   :  { %4522 = shalt.err (!%p4519_p6)
}
  0x4e   :  { %101 = dma.hbm_to_vmem [thread:$0]  %s5244_s6, 2048, %s96_s23, [#allocation15], %s4559_s19, %s4559_s19, %s4560_s20  }
  0x4f   :  { %4543 = dma.done.wait [#allocation6], 16  }
  0x50   :  { %4544 = vsyncadd [#allocation6], 4294967280 }
  0x51   :  { %4545 = dma.done.wait [#allocation4], 1024  }
  0x52   :  { %4546 = vsyncadd [#allocation4], 4294966272 }
  0x53   :  { %4547 = dma.done.wait [#allocation9], 7168  }
  0x54   :  { %4548 = vsyncadd [#allocation9], 4294960128 }
  0x55   :  { %4549 = dma.done.wait [#allocation12], 4096  }
  0x56   :  { %4550 = vsyncadd [#allocation12], 4294963200 }
  0x57   :  { %4551 = dma.done.wait [#allocation15], 2048  }
  0x58   :  { %4552 = vsyncadd [#allocation15], 4294965248 }
  0x59   :  { %127 = sfence }
  0x5a   :  { %s129_s5 = sld [smem:[#allocation3]]  ;;  %vm4570_vm0 = vmmov 0   ;;  %vm559_vm1 = vcmask 261120   ;;  %vm1056_vm2 = vcmask 1043456   ;;  %vm956_vm3 = vcmask 64512  }
  0x5b   :  { %s3507_s27 = sld [smem:[#allocation3 + $0x1]]  ;;  %vm1462_vm4 = vcmask 523264   ;;  %vm1465_vm5 = vcmask 785408  }
  0x5c   :  { %s3508_s28 = sld [smem:[#allocation3 + $0x2]] }
  0x5d   :  { %s3509_s29 = sld [smem:[#allocation3 + $0x3]] }
  0x5e   :  { %s4660_s30 = sld [smem:[#allocation3 + $0x4]] }
  0x5f   :  { %s4662_s4 = sld [smem:[#allocation3 + $0x5]] }
  0x60   :  { %s130_s6 = scalar_lea.vmem [#allocation7], %s129_s5  ;;  %s133_s20 = scalar_lea.vmem [#allocation8], %s129_s5 }
  0x61   :  { %v131_v0 = vld [vmem:[%s130_s6] sm:$0x1]  ;;  %s138_s0 = scalar_lea.vmem [#allocation7], %s3507_s27  ;;  %s141_s10 = scalar_lea.vmem [#allocation8], %s3507_s27 }
  0x62   :  { %v134_v1 = vld [vmem:[%s133_s20] sm:$0x1]  ;;  %v132_v2 = vmul.f32 11.313708, %v131_v0  ;;  %s146_s11 = scalar_lea.vmem [#allocation7], %s3508_s28  ;;  %s149_s12 = scalar_lea.vmem [#allocation8], %s3508_s28 }
  0x63   :  { %v139_v3 = vld [vmem:[%s138_s0] sm:$0x1]  ;;  %s154_s13 = scalar_lea.vmem [#allocation7], %s3509_s29  ;;  %s157_s16 = scalar_lea.vmem [#allocation8], %s3509_s29 }
  0x64   :  { %v142_v4 = vld [vmem:[%s141_s10] sm:$0x1]  ;;  %v140_v5 = vmul.f32 11.313708, %v139_v3  ;;  %v135_v6 = vadd.f32 %v134_v1, %v132_v2  ;;  %s162_s17 = scalar_lea.vmem [#allocation7], %s4660_s30  ;;  %s165_s18 = scalar_lea.vmem [#allocation8], %s4660_s30 }
  0x65   :  { %v147_v7 = vld [vmem:[%s146_s11] sm:$0x1]  ;;  %s170_s21 = scalar_lea.vmem [#allocation7], %s4662_s4  ;;  %s173_s22 = scalar_lea.vmem [#allocation8], %s4662_s4  ;;  %v4193_v2 = vld [vmem:[#allocation10 + $0xac] ss:$12 sps:$4 sm:$0xff]  }
  0x66   :  { %v150_v8 = vld [vmem:[%s149_s12] sm:$0x1]  ;;  %v143_v9 = vadd.f32 %v142_v4, %v140_v5  ;;  %v148_v10 = vmul.f32 11.313708, %v147_v7  ;;  %136 = vst [vmem:[#allocation2] sm:$0x1] %v135_v6  ;;  %457 = vmatprep.subr.bf16.mxu0 %v4193_v2 }
  0x67   :  { %v155_v11 = vld [vmem:[%s154_s13] sm:$0x1]  ;;  %s3512_s23 = sld [smem:[#allocation3 + $0x6]]  ;;  %v4195_v3 = vld [vmem:[#allocation10 + $0xa8] ss:$12 sps:$4 sm:$0xff]   ;;  %v4568_v4 = vmov 0.0  }
  0x68   :  { %v158_v12 = vld [vmem:[%s157_s16] sm:$0x1]  ;;  %v156_v13 = vmul.f32 11.313708, %v155_v11  ;;  %144 = vst [vmem:[#allocation2 + $0x1] sm:$0x1] %v143_v9  ;;  %v151_v14 = vadd.f32 %v150_v8, %v148_v10  ;;  %3792 = vmatprep.subr.bf16.mxu1 %v4568_v4  ;;  %458 = vmatpush1.bf16.msra.mxu0 %v4195_v3 }
  0x69   :  { %v163_v15 = vld [vmem:[%s162_s17] sm:$0x1]  ;;  %s3513_s1 = sld [smem:[#allocation3 + $0x7]]  ;;  %3808 = vmatprep.mubr.msk.bf16.mxu1 %vm4570_vm0, %v4568_v4 }
  0x6a   :  { %v166_v16 = vld [vmem:[%s165_s18] sm:$0x1]  ;;  %v159_v17 = vadd.f32 %v158_v12, %v156_v13  ;;  %v164_v18 = vmul.f32 11.313708, %v163_v15  ;;  %152 = vst [vmem:[#allocation2 + $0x2] sm:$0x1] %v151_v14 }
  0x6b   :  { %v171_v19 = vld [vmem:[%s170_s21] sm:$0x1]  ;;  %s3514_s24 = sld [smem:[#allocation3 + $0x8]]  ;;  %v4197_v13 = vld [vmem:[#allocation10 + $0x94] ss:$12 sps:$4 sm:$0xff]  }
  0x6c   :  { %v174_v20 = vld [vmem:[%s173_s22] sm:$0x1]  ;;  %v172_v21 = vmul.f32 11.313708, %v171_v19  ;;  %160 = vst [vmem:[#allocation2 + $0x3] sm:$0x1] %v159_v17  ;;  %v167_v22 = vadd.f32 %v166_v16, %v164_v18  ;;  %459 = vmatprep.subr.bf16.mxu0 %v4197_v13 }
  0x6d   :  { %s3515_s2 = sld [smem:[#allocation3 + $0x9]]  ;;  %s178_s26 = scalar_lea.vmem [#allocation7], %s3512_s23  ;;  %v4196_v5 = vld [vmem:[#allocation10 + $0xb0] ss:$12 sps:$4 sm:$0xff]   ;;  %v4200_v15 = vld [vmem:[#allocation10 + $0x98] ss:$12 sps:$4 sm:$0xff]  }
  0x6e   :  { %v175_v23 = vadd.f32 %v174_v20, %v172_v21  ;;  %168 = vst [vmem:[#allocation2 + $0x4] sm:$0x1] %v167_v22  ;;  %s4668_s3 = sld [smem:[#allocation3 + $0xa]]  ;;  %v179_v24 = vld [vmem:[%s178_s26] sm:$0x1]  ;;  %s181_s5 = scalar_lea.vmem [#allocation8], %s3512_s23  ;;  %3793 = vmatpush3.bf16.msra.mxu1 %v4196_v5 }
  0x6f   :  { %s4670_s25 = sld [smem:[#allocation3 + $0xb]]  ;;  %v182_v25 = vld [vmem:[%s181_s5] sm:$0x1]  ;;  %v180_v26 = vmul.f32 11.313708, %v179_v24  ;;  %s186_s27 = scalar_lea.vmem [#allocation7], %s3513_s1  ;;  %3794 = vmatprep.subr.bf16.mxu1 %v4568_v4 }
  0x70   :  { %176 = vst [vmem:[#allocation2 + $0x5] sm:$0x1] %v175_v23  ;;  %v187_v27 = vld [vmem:[%s186_s27] sm:$0x1]  ;;  %s189_s28 = scalar_lea.vmem [#allocation8], %s3513_s1  ;;  %s3518_s12 = sld [smem:[#allocation3 + $0xc]] }
  0x71   :  { %v190_v28 = vld [vmem:[%s189_s28] sm:$0x1]  ;;  %v188_v29 = vmul.f32 11.313708, %v187_v27  ;;  %v183_v30 = vadd.f32 %v182_v25, %v180_v26  ;;  %s194_s29 = scalar_lea.vmem [#allocation7], %s3514_s24  ;;  %s197_s30 = scalar_lea.vmem [#allocation8], %s3514_s24 }
  0x72   :  { %v195_v31 = vld [vmem:[%s194_s29] sm:$0x1]  ;;  %s3519_s13 = sld [smem:[#allocation3 + $0xd]]  ;;  %3795 = vmatpush3.bf16.msra.mxu1 %v4200_v15  ;;  %v4201_v17 = vld [vmem:[#allocation10 + $0x7c] ss:$12 sps:$4 sm:$0xff]   ;;  %v4569_v27 = vmov 0  }
  0x73   :  { %v198_v32 = vld [vmem:[%s197_s30] sm:$0x1]  ;;  %v191_v33 = vadd.f32 %v190_v28, %v188_v29  ;;  %v196_v34 = vmul.f32 11.313708, %v195_v31  ;;  %s202_s4 = scalar_lea.vmem [#allocation7], %s3515_s2  ;;  %s205_s6 = scalar_lea.vmem [#allocation8], %s3515_s2  ;;  %3796 = vmatprep.subr.bf16.mxu1 %v4568_v4  ;;  %489 = vmatprep.mubr.bf16.mxu0 %v4569_v27 }
  0x74   :  { %v203_v35 = vld [vmem:[%s202_s4] sm:$0x1]  ;;  %184 = vst [vmem:[#allocation2 + $0x6] sm:$0x1] %v183_v30  ;;  %s210_s20 = scalar_lea.vmem [#allocation7], %s4668_s3  ;;  %s213_s0 = scalar_lea.vmem [#allocation8], %s4668_s3 }
  0x75   :  { %v206_v36 = vld [vmem:[%s205_s6] sm:$0x1]  ;;  %v204_v37 = vmul.f32 11.313708, %v203_v35  ;;  %192 = vst [vmem:[#allocation2 + $0x7] sm:$0x1] %v191_v33  ;;  %v199_v38 = vadd.f32 %v198_v32, %v196_v34 }
  0x76   :  { %v211_v39 = vld [vmem:[%s210_s20] sm:$0x1]  ;;  %s218_s10 = scalar_lea.vmem [#allocation7], %s4670_s25  ;;  %s221_s11 = scalar_lea.vmem [#allocation8], %s4670_s25  ;;  %v4203_v18 = vld [vmem:[#allocation10 + $0x78] ss:$12 sps:$4 sm:$0xff]  }
  0x77   :  { %v214_v40 = vld [vmem:[%s213_s0] sm:$0x1]  ;;  %v207_v41 = vadd.f32 %v206_v36, %v204_v37  ;;  %v212_v42 = vmul.f32 11.313708, %v211_v39  ;;  %200 = vst [vmem:[#allocation2 + $0x8] sm:$0x1] %v199_v38 }
  0x78   :  { %v219_v43 = vld [vmem:[%s218_s10] sm:$0x1]  ;;  %s3520_s16 = sld [smem:[#allocation3 + $0xe]]  ;;  %s226_s18 = scalar_lea.vmem [#allocation7], %s3518_s12  ;;  %v4204_v19 = vld [vmem:[#allocation10 + $0x80] ss:$12 sps:$4 sm:$0xff]  }
  0x79   :  { %v222_v44 = vld [vmem:[%s221_s11] sm:$0x1]  ;;  %v220_v45 = vmul.f32 11.313708, %v219_v43  ;;  %208 = vst [vmem:[#allocation2 + $0x9] sm:$0x1] %v207_v41  ;;  %v215_v46 = vadd.f32 %v214_v40, %v212_v42  ;;  %3797 = vmatpush3.bf16.msra.mxu1 %v4204_v19  ;;  %v284_v42 = vlaneseq }
  0x7a   :  { %s3521_s17 = sld [smem:[#allocation3 + $0xf]]  ;;  %v227_v49 = vld [vmem:[%s226_s18] sm:$0x1]  ;;  %s229_s21 = scalar_lea.vmem [#allocation8], %s3518_s12  ;;  %3798 = vmatprep.subr.bf16.mxu1 %v4568_v4  ;;  %v4207_v21 = vld [vmem:[#allocation10 + $0x60] ss:$12 sps:$4 sm:$0xff]  }
  0x7b   :  { %v223_v47 = vadd.f32 %v222_v44, %v220_v45  ;;  %216 = vst [vmem:[#allocation2 + $0xa] sm:$0x1] %v215_v46  ;;  %v230_v50 = vld [vmem:[%s229_s21] sm:$0x1]  ;;  %v228_v51 = vmul.f32 11.313708, %v227_v49 }
  0x7c   :  { %v257_v48 = vld [vmem:[#allocation2] sm:$0xff]  ;;  %s234_s22 = scalar_lea.vmem [#allocation7], %s3519_s13  ;;  %s237_s23 = scalar_lea.vmem [#allocation8], %s3519_s13  ;;  %v4209_v23 = vld [vmem:[#allocation10 + $0x4c] ss:$12 sps:$4 sm:$0xff]   ;;  %v4697_v43 = vshrl.u32 %v284_v42, 7 }
  0x7d   :  { %224 = vst [vmem:[#allocation2 + $0xb] sm:$0x1] %v223_v47  ;;  %261 = vadd.xlane.f32.xlu0 %v257_v48  ;;  %v235_v52 = vld [vmem:[%s234_s22] sm:$0x1]  ;;  %v231_v55 = vadd.f32 %v230_v50, %v228_v51  ;;  %v4208_v22 = vld [vmem:[#allocation10 + $0x68] ss:$12 sps:$4 sm:$0xff]  }
  0x7e   :  { %v238_v53 = vld [vmem:[%s237_s23] sm:$0x1]  ;;  %v236_v54 = vmul.f32 11.313708, %v235_v52  ;;  %s242_s1 = scalar_lea.vmem [#allocation7], %s3520_s16  ;;  %s245_s24 = scalar_lea.vmem [#allocation8], %s3520_s16  ;;  %3799 = vmatpush3.bf16.msra.mxu1 %v4208_v22 }
  0x7f   :  { %v243_v56 = vld [vmem:[%s242_s1] sm:$0x1]  ;;  %232 = vst [vmem:[#allocation2 + $0xc] sm:$0x1] %v231_v55  ;;  %v4211_v24 = vld [vmem:[#allocation10 + $0x48] ss:$12 sps:$4 sm:$0xff]   ;;  %3800 = vmatprep.subr.bf16.mxu1 %v4568_v4 }
  0x80   :  { %v246_v57 = vld [vmem:[%s245_s24] sm:$0x1]  ;;  %v239_v58 = vadd.f32 %v238_v53, %v236_v54  ;;  %v244_v59 = vmul.f32 11.313708, %v243_v56  ;;  %s250_s2 = scalar_lea.vmem [#allocation7], %s3521_s17  ;;  %s253_s3 = scalar_lea.vmem [#allocation8], %s3521_s17 }
  0x81   :  { %v251_v60 = vld [vmem:[%s250_s2] sm:$0x1]  ;;  %v4213_v26 = vld [vmem:[#allocation10 + $0x34] ss:$12 sps:$4 sm:$0xff]   ;;  %v4216_v29 = vld [vmem:[#allocation10 + $0x38] ss:$12 sps:$4 sm:$0xff]  }
  0x82   :  { %v254_v61 = vld [vmem:[%s253_s3] sm:$0x1]  ;;  %v252_v62 = vmul.f32 11.313708, %v251_v60  ;;  %240 = vst [vmem:[#allocation2 + $0xd] sm:$0x1] %v239_v58  ;;  %v247_v63 = vadd.f32 %v246_v57, %v244_v59 }
  0x83   :  { %v4199_v14 = vld [vmem:[#allocation10 + $0x90] ss:$12 sps:$4 sm:$0xff]   ;;  %v4219_v31 = vld [vmem:[#allocation10 + $0x18] ss:$12 sps:$4 sm:$0xff]   ;;  %v4220_v32 = vld [vmem:[#allocation10 + $0x20] ss:$12 sps:$4 sm:$0xff]  }
  0x84   :  { %v255_v0 = vadd.f32 %v254_v61, %v252_v62  ;;  %248 = vst [vmem:[#allocation2 + $0xe] sm:$0x1] %v247_v63  ;;  %460 = vmatpush1.bf16.msra.mxu0 %v4199_v14  ;;  %v4205_v20 = vld [vmem:[#allocation10 + $0x64] ss:$12 sps:$4 sm:$0xff]   ;;  %v4217_v30 = vld [vmem:[#allocation10 + $0x1c] ss:$12 sps:$4 sm:$0xff]  }
  0x85   :  { %461 = vmatprep.subr.bf16.mxu0 %v4201_v17  ;;  %v4212_v25 = vld [vmem:[#allocation10 + $0x50] ss:$12 sps:$4 sm:$0xff]   ;;  %v4223_v34 = vld [vmem:[#allocation10] ss:$12 sps:$4 sm:$0xff]   ;;  %v4224_v35 = vld [vmem:[#allocation10 + $0x8] ss:$12 sps:$4 sm:$0xff]  }
  0x86   :  { %256 = vst [vmem:[#allocation2 + $0xf] sm:$0x1] %v255_v0  ;;  %3801 = vmatpush3.bf16.msra.mxu1 %v4212_v25  ;;  %v4215_v28 = vld [vmem:[#allocation10 + $0x30] ss:$12 sps:$4 sm:$0xff]   ;;  %v286_v44 = vsub.s32 0, %v4697_v43  ;;  %v292_v49 = vsub.s32 1, %v4697_v43 }
  0x87   :  { %3802 = vmatprep.subr.bf16.mxu1 %v4568_v4  ;;  %v4221_v33 = vld [vmem:[#allocation10 + $0x4] ss:$12 sps:$4 sm:$0xff]   ;;  %v543_v58 = vsub.s32 2, %v4697_v43  ;;  %s4571_s5 = smov 96   ;;  %s4572_s27 = smov 32  }
  0x88   :  { %462 = vmatpush1.bf16.msra.mxu0 %v4203_v18  ;;  %v4703_v46 = vld [vmem:[%s5245_s7] sm:$0xff]  ;;  %v553_v18 = vsub.s32 3, %v4697_v43  ;;  %s4573_s11 = smov [#allocation16]  }
  0x89   :  { %463 = vmatprep.subr.bf16.mxu0 %v4205_v20  ;;  %v293_v53 = vrot.slane %v4703_v46, %v292_v49  ;;  %v544_v59 = vrot.slane %v4703_v46, %v543_v58  ;;  %s3459_s12 = sshll.u32 %s4573_s11, 4  ;;  %s3460_s12 = int_to_ptr.vmem [resolvable:$true] %s3459_s12 }
  0x8a   :  { %3803 = vmatpush3.bf16.msra.mxu1 %v4216_v29  ;;  %s4523_s13 = scalar_lea.vmem %s3460_s12, 256  ;;  %p4528_p8 = scmp.lt.s32.totalorder %s3460_s12, %s3460_s12 }
  0x8b   :  { %3804 = vmatprep.subr.bf16.mxu1 %v4568_v4  ;;  %p4524_p7 = scmp.ne.s32.totalorder %s3460_s12, %s4523_s13  ;;  %p4529_p9 = scmp.lt.s32.totalorder %s4523_s13, %s4523_s13 }
  0x8c   :  { %464 = vmatpush1.bf16.msra.mxu0 %v4207_v21  ;;  %v554_v21 = vrot.slane %v4703_v46, %v553_v18 }
  0x8d   :  { %v258_v1 = vld [vmem:[#allocation2 + $0x8] sm:$0xff]  ;;  %465 = vmatprep.subr.bf16.mxu0 %v4209_v23  ;;  %p4530_p10 = por %p4529_p9, %p4528_p8 }
  0x8e   :  { %263 = vadd.xlane.f32.xlu0 %v258_v1  ;;  %3805 = vmatpush3.bf16.msra.mxu1 %v4220_v32 }
  0x8f   :  { %3806 = vmatprep.subr.bf16.mxu1 %v4568_v4  ;;  %p4531_p11 = pnand %p4530_p10, %p4524_p7 }
  0x90   :  { %466 = vmatpush1.bf16.msra.mxu0 %v4211_v24 }
  0x91   :  { %467 = vmatprep.subr.bf16.mxu0 %v4213_v26 }
  0x92   :  { %3807 = vmatpush3.bf16.msra.mxu1 %v4224_v35 }
  0x93   :  { %3812 = vmatprep.subr.bf16.mxu1 %v4568_v4 }
  0x94   :  { %468 = vmatpush1.bf16.msra.mxu0 %v4215_v28 }
  0x95   :  { %469 = vmatprep.subr.bf16.mxu0 %v4217_v30 }
  0x98   :  { %470 = vmatpush1.bf16.msra.mxu0 %v4219_v31 }
  0x99   :  { %471 = vmatprep.subr.bf16.mxu0 %v4221_v33 }
  0x9c   :  { %472 = vmatpush1.bf16.msra.mxu0 %v4223_v34 }
  0x9d   :  { %3836 = vmatprep.subr.bf16.mxu0 %v4568_v4 }
 0x106   :  { %v262_v6 = vpop.xlane.xlu0 %261 }
 0x107   :  { %v266_v7 = vmul.f32 0.0078125, %v262_v6 }
 0x109   :  { %v4678_v8 = vsub.f32 %v257_v48, %v266_v7  ;;  %v287_v48 = vrot.slane %v4703_v46, %v286_v44 }
 0x10b   :  { %v270_v9 = vmul.f32 %v4678_v8, %v4678_v8 }
 0x10d   :  { %272 = vadd.xlane.f32.xlu1 %v270_v9 }
 0x117   :  { %v264_v10 = vpop.xlane.xlu0 %263 }
 0x118   :  { %v267_v11 = vmul.f32 0.0078125, %v264_v10 }
 0x11a   :  { %v4682_v12 = vsub.f32 %v258_v1, %v267_v11 }
 0x11c   :  { %v271_v16 = vmul.f32 %v4682_v12, %v4682_v12 }
 0x11e   :  { %274 = vadd.xlane.f32.xlu1 %v271_v16 }
 0x196   :  { %v273_v36 = vpop.xlane.xlu1 %272 }
 0x197   :  { %v276_v37 = vmul.f32 0.0078125, %v273_v36 }
 0x199   :  { %v278_v38 = vadd.f32 1e-05, %v276_v37 }
 0x19b   :  { %4305 = vrsqrt.f32 %v278_v38 }
 0x1a7   :  { %v275_v39 = vpop.xlane.xlu1 %274 }
 0x1a8   :  { %v277_v40 = vmul.f32 0.0078125, %v275_v39  ;;  %v4306_v45 = vpop.eup %4305 }
 0x1a9   :  { %v282_v47 = vmul.f32 %v4306_v45, %v4678_v8 }
 0x1aa   :  { %v279_v41 = vadd.f32 1e-05, %v277_v40 }
 0x1ab   :  { %v288_v52 = vmul.f32 %v287_v48, %v282_v47 }
 0x1ac   :  { %4307 = vrsqrt.f32 %v279_v41 }
 0x1ad   :  { %v294_v55 = vadd.f32 %v293_v53, %v288_v52 }
 0x1b9   :  { %v4308_v50 = vpop.eup %4307 }
 0x1ba   :  { %v283_v51 = vmul.f32 %v4308_v50, %v4682_v12 }
 0x1bc   :  { %v289_v54 = vmul.f32 %v287_v48, %v283_v51 }
 0x1be   :  { %v295_v56 = vadd.f32 %v293_v53, %v289_v54 }
 0x1c0   :  { %v296_v57 = vpack.c.bf16 %v295_v56, %v294_v55 }
 0x1c2   :  { %490 = vmatmul.mubr.bf16.vlgmr.msra.gmra.mxu0 %v296_v57  ;;  %3809 = vmatmul.mubr.bf16.vlgmr.msra.gmra.mxu1 %v296_v57 }
 0x1c3   :  { %3814 = vmatprep.mubr.msk.bf16.mxu1 %vm4570_vm0, %v4568_v4  ;;  %3838 = vmatprep.mubr.msk.bf16.mxu0 %vm4570_vm0, %v4568_v4 }
 0x282   :  { %v491_v60 = vpop.f32.mrf.mxu0  ;;  %v534_v61 = vpop.f32.mrf.mxu1 }
 0x283   :  { %v545_v62 = vadd.f32 %v544_v59, %v491_v60  ;;  %v555_v25 = vadd.f32 %v554_v21, %v534_v61 }
 0x284   :  { %v493_v63 = vpop.f32.mrf.mxu0  ;;  %v3810_v0 = vpop.f32.mrf.mxu1 }
 0x285   :  { %v547_v1 = vpack.c.bf16 %v545_v62, %v545_v62  ;;  %v549_v2 = vpack.c.bf16 %v493_v63, %v493_v63  ;;  %v4764_v29 = vpack.c.bf16 %v555_v25, %v555_v25 }
 0x286   :  { %v495_v3 = vpop.f32.mrf.mxu0  ;;  %v4722_v5 = vpop.f32.mrf.mxu1 }
 0x287   :  { %653 = vrot.lane.b32.xlu1 %v547_v1, %s4571_s5  ;;  %656 = vrot.lane.b32.xlu0 %v549_v2, %s4571_s5  ;;  %v564_v6 = vsel %vm559_vm1, %v549_v2, 0  ;;  %v546_v10 = vadd.f32 %v544_v59, %v495_v3  ;;  %v1058_v33 = vsel %vm1056_vm2, %v4764_v29, 0  ;;  %v556_v35 = vadd.f32 %v554_v21, %v4722_v5 }
 0x288   :  { %v497_v7 = vpop.f32.mrf.mxu0  ;;  %v3811_v8 = vpop.f32.mrf.mxu1  ;;  %3813 = vmatpush3.bf16.xpose.msra.mxu1 %v564_v6 }
 0x289   :  { %v550_v9 = vpack.c.bf16 %v497_v7, %v497_v7  ;;  %3818 = vmatprep.subr.bf16.mxu1 %v4568_v4  ;;  %v548_v11 = vpack.c.bf16 %v546_v10, %v546_v10  ;;  %v4783_v37 = vpack.c.bf16 %v556_v35, %v556_v35 }
 0x28b   :  { %758 = vrot.lane.b32.xlu0 %v549_v2, %s4559_s19  ;;  %708 = vrot.lane.b32.xlu1 %v550_v9, %s4571_s5  ;;  %v610_v12 = vsel %vm559_vm1, %v550_v9, 0  ;;  %v1104_v39 = vsel %vm1056_vm2, %v4783_v37, 0 }
 0x28f   :  { %756 = vrot.lane.b32.xlu0 %v547_v1, %s4559_s19  ;;  %3815 = vmatmul.mubr.msk.bf16.vlgmr.msra.gmra.mxu1 %vm559_vm1, %v547_v1 }
 0x290   :  { %705 = vrot.lane.b32.xlu1 %v548_v11, %s4571_s5  ;;  %3819 = vmatpush3.bf16.xpose.msra.mxu1 %v610_v12 }
 0x291   :  { %3820 = vmatprep.mubr.msk.bf16.mxu1 %vm4570_vm0, %v4568_v4  ;;  %3824 = vmatprep.subr.bf16.mxu1 %v4568_v4 }
 0x293   :  { %858 = vrot.lane.b32.xlu0 %v549_v2, %s4572_s27 }
 0x294   :  { %808 = vrot.lane.b32.xlu1 %v550_v9, %s4559_s19 }
 0x297   :  { %856 = vrot.lane.b32.xlu0 %v547_v1, %s4572_s27  ;;  %3821 = vmatmul.mubr.msk.bf16.vlgmr.msra.gmra.mxu1 %vm559_vm1, %v548_v11 }
 0x298   :  { %806 = vrot.lane.b32.xlu1 %v548_v11, %s4559_s19  ;;  %3826 = vmatprep.mubr.msk.bf16.mxu1 %vm4570_vm0, %v4568_v4 }
 0x29c   :  { %908 = vrot.lane.b32.xlu1 %v550_v9, %s4572_s27 }
 0x2a0   :  { %906 = vrot.lane.b32.xlu1 %v548_v11, %s4572_s27 }
 0x2f9   :  { %v654_v13 = vpop.permute.xlu1 %653  ;;  %v657_v14 = vpop.permute.xlu0 %656 }
 0x2fa   :  { %v662_v15 = vsel %vm559_vm1, %v657_v14, 0 }
 0x2fb   :  { %3825 = vmatpush3.bf16.xpose.msra.mxu1 %v662_v15 }
 0x2fc   :  { %3830 = vmatprep.subr.bf16.mxu1 %v4568_v4 }
 0x2fd   :  { %v759_v16 = vpop.permute.xlu0 %758  ;;  %v709_v17 = vpop.permute.xlu1 %708 }
 0x2fe   :  { %v764_v19 = vsel %vm559_vm1, %v759_v16, 0  ;;  %v714_v22 = vsel %vm559_vm1, %v709_v17, 0 }
 0x2ff   :  { %3837 = vmatpush3.bf16.xpose.msra.mxu0 %v764_v19 }
 0x300   :  { %3848 = vmatprep.subr.bf16.mxu0 %v4568_v4 }
 0x301   :  { %v757_v20 = vpop.permute.xlu0 %756 }
 0x302   :  { %v706_v23 = vpop.permute.xlu1 %705  ;;  %3827 = vmatmul.mubr.msk.bf16.vlgmr.msra.gmra.mxu1 %vm559_vm1, %v654_v13 }
 0x303   :  { %3831 = vmatpush3.bf16.xpose.msra.mxu1 %v714_v22  ;;  %3832 = vmatprep.mubr.msk.bf16.mxu1 %vm4570_vm0, %v4568_v4 }
 0x304   :  { %3842 = vmatprep.subr.bf16.mxu1 %v4568_v4 }
 0x305   :  { %v859_v24 = vpop.permute.xlu0 %858 }
 0x306   :  { %v864_v26 = vsel %vm559_vm1, %v859_v24, 0  ;;  %v809_v28 = vpop.permute.xlu1 %808  ;;  %3839 = vmatmul.mubr.msk.bf16.vlgmr.msra.gmra.mxu0 %vm559_vm1, %v757_v20 }
 0x307   :  { %3849 = vmatpush3.bf16.xpose.msra.mxu0 %v864_v26  ;;  %3850 = vmatprep.mubr.msk.bf16.mxu0 %vm4570_vm0, %v4568_v4  ;;  %v814_v30 = vsel %vm559_vm1, %v809_v28, 0 }
 0x308   :  { %3860 = vmatprep.subr.bf16.mxu0 %v4568_v4 }
 0x309   :  { %v857_v32 = vpop.permute.xlu0 %856 }
 0x30a   :  { %v807_v31 = vpop.permute.xlu1 %806  ;;  %3833 = vmatmul.mubr.msk.bf16.vlgmr.msra.gmra.mxu1 %vm559_vm1, %v706_v23 }
 0x30b   :  { %3843 = vmatpush3.bf16.xpose.msra.mxu1 %v814_v30  ;;  %3844 = vmatprep.mubr.msk.bf16.mxu1 %vm4570_vm0, %v4568_v4 }
 0x30c   :  { %3854 = vmatprep.subr.bf16.mxu1 %v4568_v4 }
 0x30e   :  { %3851 = vmatmul.mubr.msk.bf16.vlgmr.msra.gmra.mxu0 %vm559_vm1, %v857_v32  ;;  %v909_v34 = vpop.permute.xlu1 %908 }
 0x30f   :  { %3861 = vmatpush3.bf16.msra.mxu0 %v1058_v33  ;;  %3862 = vmatprep.mubr.msk.bf16.mxu0 %vm4570_vm0, %v4568_v4  ;;  %v914_v36 = vsel %vm559_vm1, %v909_v34, 0 }
 0x310   :  { %3872 = vmatprep.subr.bf16.mxu0 %v4568_v4 }
 0x312   :  { %3845 = vmatmul.mubr.msk.bf16.vlgmr.msra.gmra.mxu1 %vm559_vm1, %v807_v31  ;;  %v907_v38 = vpop.permute.xlu1 %906 }
 0x313   :  { %3855 = vmatpush3.bf16.xpose.msra.mxu1 %v914_v36  ;;  %3856 = vmatprep.mubr.msk.bf16.mxu1 %vm4570_vm0, %v4568_v4 }
 0x314   :  { %3866 = vmatprep.subr.bf16.mxu1 %v4568_v4 }
 0x31a   :  { %3857 = vmatmul.mubr.msk.bf16.vlgmr.msra.gmra.mxu1 %vm559_vm1, %v907_v38 }
 0x31b   :  { %3867 = vmatpush3.bf16.msra.mxu1 %v1104_v39  ;;  %3868 = vmatprep.mubr.msk.bf16.mxu1 %vm4570_vm0, %v4568_v4 }
 0x31c   :  { %3878 = vmatprep.subr.bf16.mxu1 %v4568_v4 }
 0x34f   :  { %v600_v40 = vpop.f32.mrf.mxu1 }
 0x350   :  { %v957_v41 = vsel %vm956_vm3, %v600_v40, -inf }
 0x351   :  { %958 = vmax.xlane.f32.xlu0 %v957_v41  ;;  %v3816_v42 = vpop.f32.mrf.mxu1 }
 0x353   :  { %v603_v45 = vpop.f32.mrf.mxu1 }
 0x355   :  { %v3817_v47 = vpop.f32.mrf.mxu1 }
 0x357   :  { %v646_v48 = vpop.f32.mrf.mxu1 }
 0x358   :  { %v960_v50 = vsel %vm956_vm3, %v646_v48, -inf }
 0x359   :  { %961 = vmax.xlane.f32.xlu1 %v960_v50  ;;  %v3822_v51 = vpop.f32.mrf.mxu1 }
 0x35b   :  { %v649_v52 = vpop.f32.mrf.mxu1 }
 0x35d   :  { %v3823_v53 = vpop.f32.mrf.mxu1 }
 0x3c2   :  { %v698_v54 = vpop.f32.mrf.mxu1 }
 0x3c3   :  { %v963_v55 = vsel %vm956_vm3, %v698_v54, -inf }
 0x3c4   :  { %964 = vmax.xlane.f32.xlu0 %v963_v55  ;;  %v3828_v56 = vpop.f32.mrf.mxu1 }
 0x3c6   :  { %v701_v57 = vpop.f32.mrf.mxu1  ;;  %v4794_v59 = vpop.f32.mrf.mxu0 }
 0x3c7   :  { %v969_v6 = vsel %vm956_vm3, %v4794_v59, -inf }
 0x3c8   :  { %v3829_v60 = vpop.f32.mrf.mxu1  ;;  %v3840_v61 = vpop.f32.mrf.mxu0 }
 0x3ca   :  { %v750_v62 = vpop.f32.mrf.mxu1  ;;  %v803_v63 = vpop.f32.mrf.mxu0 }
 0x3cb   :  { %v966_v0 = vsel %vm956_vm3, %v750_v62, -inf }
 0x3cc   :  { %v3841_v1 = vpop.f32.mrf.mxu0  ;;  %967 = vmax.xlane.f32.xlu0 %v966_v0  ;;  %v3834_v2 = vpop.f32.mrf.mxu1 }
 0x3ce   :  { %v753_v3 = vpop.f32.mrf.mxu1  ;;  %v4797_v5 = vpop.f32.mrf.mxu0 }
 0x3cf   :  { %v975_v11 = vsel %vm956_vm3, %v4797_v5, -inf }
 0x3d0   :  { %v3852_v7 = vpop.f32.mrf.mxu0  ;;  %970 = vmax.xlane.f32.xlu0 %v969_v6  ;;  %v3835_v8 = vpop.f32.mrf.mxu1 }
 0x3d2   :  { %v850_v9 = vpop.f32.mrf.mxu1  ;;  %v903_v10 = vpop.f32.mrf.mxu0 }
 0x3d3   :  { %v972_v12 = vsel %vm956_vm3, %v850_v9, -inf }
 0x3d4   :  { %v3853_v13 = vpop.f32.mrf.mxu0  ;;  %976 = vmax.xlane.f32.xlu0 %v975_v11  ;;  %973 = vmax.xlane.f32.xlu1 %v972_v12  ;;  %v3846_v14 = vpop.f32.mrf.mxu1 }
 0x3d6   :  { %v853_v15 = vpop.f32.mrf.mxu1 }
 0x3d8   :  { %v3847_v16 = vpop.f32.mrf.mxu1 }
 0x3da   :  { %v959_v17 = vpop.xlane.xlu0 %958  ;;  %v950_v19 = vpop.f32.mrf.mxu1 }
 0x3db   :  { %v981_v20 = vsub.f32 %v600_v40, %v959_v17  ;;  %v978_v21 = vsel %vm956_vm3, %v950_v19, -inf }
 0x3dc   :  { %979 = vmax.xlane.f32.xlu1 %v978_v21  ;;  %v3858_v22 = vpop.f32.mrf.mxu1 }
 0x3dd   :  { %v989_v23 = vmul.f32 1.442695, %v981_v20 }
 0x3de   :  { %v953_v24 = vpop.f32.mrf.mxu1 }
 0x3df   :  { %4309 = vpow2.f32 %v989_v23 }
 0x3e0   :  { %v3859_v25 = vpop.f32.mrf.mxu1 }
 0x3e2   :  { %v962_v26 = vpop.xlane.xlu1 %961 }
 0x3e3   :  { %v982_v28 = vsub.f32 %v646_v48, %v962_v26 }
 0x3e5   :  { %v991_v30 = vmul.f32 1.442695, %v982_v28 }
 0x3e7   :  { %4311 = vpow2.f32 %v991_v30 }
 0x3ec   :  { %v4310_v31 = vpop.eup %4309 }
 0x3ed   :  { %v1005_v32 = vsel %vm956_vm3, %v4310_v31, 0.0 }
 0x3ee   :  { %1006 = vadd.xlane.f32.xlu0 %v1005_v32 }
 0x3f4   :  { %v4312_v33 = vpop.eup %4311 }
 0x3f5   :  { %v1008_v34 = vsel %vm956_vm3, %v4312_v33, 0.0 }
 0x3f6   :  { %1009 = vadd.xlane.f32.xlu1 %v1008_v34 }
 0x407   :  { %1196 = vrot.lane.b32.xlu1 %v4783_v37, %s4571_s5 }
 0x40b   :  { %1244 = vrot.lane.b32.xlu1 %v4764_v29, %s4559_s19 }
 0x40f   :  { %1292 = vrot.lane.b32.xlu1 %v4783_v37, %s4559_s19 }
 0x44d   :  { %v965_v35 = vpop.xlane.xlu0 %964 }
 0x44e   :  { %v983_v36 = vsub.f32 %v698_v54, %v965_v35 }
 0x450   :  { %v993_v38 = vmul.f32 1.442695, %v983_v36 }
 0x452   :  { %4313 = vpow2.f32 %v993_v38 }
 0x455   :  { %v968_v39 = vpop.xlane.xlu0 %967 }
 0x456   :  { %v984_v40 = vsub.f32 %v750_v62, %v968_v39 }
 0x458   :  { %v995_v41 = vmul.f32 1.442695, %v984_v40 }
 0x459   :  { %v971_v56 = vpop.xlane.xlu0 %970 }
 0x45a   :  { %4315 = vpow2.f32 %v995_v41  ;;  %v985_v1 = vsub.f32 %v4794_v59, %v971_v56 }
 0x45c   :  { %v997_v3 = vmul.f32 1.442695, %v985_v1 }
 0x45d   :  { %v974_v42 = vpop.xlane.xlu1 %973  ;;  %v977_v61 = vpop.xlane.xlu0 %976 }
 0x45e   :  { %v986_v45 = vsub.f32 %v850_v9, %v974_v42  ;;  %v987_v6 = vsub.f32 %v4797_v5, %v977_v61 }
 0x45f   :  { %v4813_v47 = vpop.eup %4313 }
 0x460   :  { %v999_v48 = vmul.f32 1.442695, %v986_v45  ;;  %v1011_v50 = vsel %vm956_vm3, %v4813_v47, 0.0  ;;  %v1001_v8 = vmul.f32 1.442695, %v987_v6 }
 0x461   :  { %1012 = vadd.xlane.f32.xlu0 %v1011_v50 }
 0x462   :  { %4317 = vpow2.f32 %v999_v48 }
 0x465   :  { %v980_v51 = vpop.xlane.xlu1 %979 }
 0x466   :  { %v988_v52 = vsub.f32 %v950_v19, %v980_v51 }
 0x467   :  { %v4817_v53 = vpop.eup %4315 }
 0x468   :  { %v1003_v54 = vmul.f32 1.442695, %v988_v52  ;;  %v1014_v55 = vsel %vm956_vm3, %v4817_v53, 0.0 }
 0x469   :  { %1015 = vadd.xlane.f32.xlu1 %v1014_v55 }
 0x46a   :  { %4319 = vpow2.f32 %v1003_v54 }
 0x46f   :  { %v4821_v57 = vpop.eup %4317 }
 0x470   :  { %v1020_v60 = vsel %vm956_vm3, %v4821_v57, 0.0 }
 0x471   :  { %1021 = vadd.xlane.f32.xlu1 %v1020_v60 }
 0x477   :  { %v4825_v62 = vpop.eup %4319  ;;  %1147 = vrot.lane.b32.xlu0 %v4764_v29, %s4571_s5  ;;  %v1007_v63 = vpop.xlane.xlu0 %1006 }
 0x478   :  { %4321 = vrcp.f32 %v1007_v63  ;;  %v1026_v0 = vsel %vm956_vm3, %v4825_v62, 0.0 }
 0x479   :  { %1027 = vadd.xlane.f32.xlu1 %v1026_v0 }
 0x47f   :  { %v1010_v2 = vpop.xlane.xlu1 %1009 }
 0x480   :  { %4323 = vrcp.f32 %v1010_v2 }
 0x481   :  { %4325 = vpow2.f32 %v997_v3 }
 0x482   :  { %4327 = vpow2.f32 %v1001_v8 }
 0x483   :  { %v1197_v12 = vpop.permute.xlu1 %1196 }
 0x484   :  { %v1202_v5 = vsel %vm1056_vm2, %v1197_v12, 0 }
 0x485   :  { %v4322_v7 = vpop.eup %4321 }
 0x486   :  { %v1037_v9 = vmul.f32 %v4322_v7, %v4310_v31  ;;  %v4225_v7 = vld [vmem:[#allocation11 + $0x38] sm:$0xff]  }
 0x487   :  { %v1245_v17 = vpop.permute.xlu1 %1244 }
 0x488   :  { %v1045_v10 = vpack.c.bf16 %v1037_v9, %v1037_v9  ;;  %v4226_v9 = vld [vmem:[#allocation11 + $0x30] sm:$0xff]  }
 0x48a   :  { %3863 = vmatmul.mubr.msk.bf16.vlgmr.msra.gmra.mxu0 %vm956_vm3, %v1045_v10  ;;  %1388 = vrot.lane.b32.xlu1 %v4783_v37, %s4572_s27 }
 0x48b   :  { %3874 = vmatprep.mubr.msk.bf16.mxu0 %vm4570_vm0, %v4568_v4  ;;  %v1293_v20 = vpop.permute.xlu1 %1292 }
 0x48c   :  { %v1298_v34 = vsel %vm1056_vm2, %v1293_v20, 0 }
 0x48d   :  { %v4324_v59 = vpop.eup %4323 }
 0x48e   :  { %v1038_v11 = vmul.f32 %v4324_v59, %v4312_v33  ;;  %v4326_v14 = vpop.eup %4325 }
 0x48f   :  { %v1017_v37 = vsel %vm956_vm3, %v4326_v14, 0.0  ;;  %v4328_v15 = vpop.eup %4327 }
 0x490   :  { %v1046_v13 = vpack.c.bf16 %v1038_v11, %v1038_v11  ;;  %v1023_v16 = vsel %vm956_vm3, %v4328_v15, 0.0  ;;  %v4227_v11 = vld [vmem:[#allocation11 + $0x28] sm:$0xff]  }
 0x492   :  { %3869 = vmatmul.mubr.msk.bf16.vlgmr.msra.gmra.mxu1 %vm956_vm3, %v1046_v13 }
 0x493   :  { %3879 = vmatpush3.bf16.msra.mxu1 %v1202_v5  ;;  %3880 = vmatprep.mubr.msk.bf16.mxu1 %vm4570_vm0, %v4568_v4  ;;  %v4228_v5 = vld [vmem:[#allocation11 + $0x20] sm:$0xff]  }
 0x494   :  { %3890 = vmatprep.subr.bf16.mxu1 %v4568_v4 }
 0x496   :  { %1018 = vadd.xlane.f32.xlu0 %v1017_v37 }
 0x49a   :  { %1024 = vadd.xlane.f32.xlu0 %v1023_v16  ;;  %v4229_v16 = vld [vmem:[#allocation11 + $0x18] sm:$0xff]  }
 0x4b0   :  { %1340 = vrot.lane.b32.xlu0 %v4764_v29, %s4572_s27  ;;  %v1250_v29 = vsel %vm1056_vm2, %v1245_v17, 0 }
 0x4ea   :  { %v1013_v19 = vpop.xlane.xlu0 %1012 }
 0x4eb   :  { %4329 = vrcp.f32 %v1013_v19 }
 0x4ee   :  { %v1148_v21 = vpop.permute.xlu0 %1147 }
 0x4ef   :  { %v1153_v22 = vsel %vm1056_vm2, %v1148_v21, 0 }
 0x4f0   :  { %3873 = vmatpush3.bf16.msra.mxu0 %v1153_v22 }
 0x4f1   :  { %3884 = vmatprep.subr.bf16.mxu0 %v4568_v4 }
 0x4f2   :  { %v1016_v23 = vpop.xlane.xlu1 %1015 }
 0x4f3   :  { %4331 = vrcp.f32 %v1016_v23 }
 0x4f8   :  { %v4330_v24 = vpop.eup %4329 }
 0x4f9   :  { %v1039_v25 = vmul.f32 %v4330_v24, %v4813_v47 }
 0x4fa   :  { %v1022_v26 = vpop.xlane.xlu1 %1021 }
 0x4fb   :  { %v1047_v28 = vpack.c.bf16 %v1039_v25, %v1039_v25  ;;  %4333 = vrcp.f32 %v1022_v26  ;;  %v4230_v26 = vld [vmem:[#allocation11 + $0x10] sm:$0xff]  }
 0x4fd   :  { %3875 = vmatmul.mubr.msk.bf16.vlgmr.msra.gmra.mxu0 %vm956_vm3, %v1047_v28  ;;  %v4231_v28 = vld [vmem:[#allocation11 + $0x8] sm:$0xff]  }
 0x4fe   :  { %3885 = vmatpush3.bf16.msra.mxu0 %v1250_v29  ;;  %3886 = vmatprep.mubr.msk.bf16.mxu0 %vm4570_vm0, %v4568_v4 }
 0x4ff   :  { %3896 = vmatprep.subr.bf16.mxu0 %v4568_v4 }
 0x500   :  { %v4332_v30 = vpop.eup %4331 }
 0x501   :  { %v1040_v31 = vmul.f32 %v4332_v30, %v4817_v53  ;;  %v4232_v30 = vld [vmem:[#allocation11] sm:$0xff]  }
 0x502   :  { %v1028_v32 = vpop.xlane.xlu1 %1027 }
 0x503   :  { %4335 = vrcp.f32 %v1028_v32  ;;  %v1048_v33 = vpack.c.bf16 %v1040_v31, %v1040_v31 }
 0x505   :  { %3881 = vmatmul.mubr.msk.bf16.vlgmr.msra.gmra.mxu1 %vm956_vm3, %v1048_v33 }
 0x506   :  { %3891 = vmatpush3.bf16.msra.mxu1 %v1298_v34  ;;  %3892 = vmatprep.mubr.msk.bf16.mxu1 %vm4570_vm0, %v4568_v4  ;;  %v1389_v38 = vpop.permute.xlu1 %1388 }
 0x507   :  { %3902 = vmatprep.subr.bf16.mxu1 %v4568_v4  ;;  %v1394_v40 = vsel %vm1056_vm2, %v1389_v38, 0 }
 0x508   :  { %v4334_v35 = vpop.eup %4333 }
 0x509   :  { %v1042_v36 = vmul.f32 %v4334_v35, %v4821_v57 }
 0x50b   :  { %v1050_v39 = vpack.c.bf16 %v1042_v36, %v1042_v36 }
 0x50d   :  { %3893 = vmatmul.mubr.msk.bf16.vlgmr.msra.gmra.mxu1 %vm956_vm3, %v1050_v39 }
 0x50e   :  { %3903 = vmatpush3.bf16.msra.mxu1 %v1394_v40  ;;  %3904 = vmatprep.mubr.msk.bf16.mxu1 %vm4570_vm0, %v4568_v4 }
 0x50f   :  { %3928 = vmatprep.subr.bf16.mxu1 %v4568_v4 }
 0x510   :  { %v4336_v41 = vpop.eup %4335 }
 0x511   :  { %v1044_v42 = vmul.f32 %v4336_v41, %v4825_v62 }
 0x513   :  { %v1052_v45 = vpack.c.bf16 %v1044_v42, %v1044_v42 }
 0x515   :  { %3905 = vmatmul.mubr.msk.bf16.vlgmr.msra.gmra.mxu1 %vm956_vm3, %v1052_v45 }
 0x516   :  { %3944 = vmatprep.mubr.msk.bf16.mxu1 %vm4570_vm0, %v4568_v4 }
 0x51f   :  { %v1019_v47 = vpop.xlane.xlu0 %1018 }
 0x520   :  { %4337 = vrcp.f32 %v1019_v47 }
 0x523   :  { %v1025_v48 = vpop.xlane.xlu0 %1024 }
 0x524   :  { %4339 = vrcp.f32 %v1025_v48 }
 0x527   :  { %v1341_v52 = vpop.permute.xlu0 %1340 }
 0x528   :  { %v1346_v55 = vsel %vm1056_vm2, %v1341_v52, 0 }
 0x52d   :  { %v4338_v50 = vpop.eup %4337 }
 0x52e   :  { %v1041_v51 = vmul.f32 %v4338_v50, %v4326_v14 }
 0x530   :  { %v1049_v53 = vpack.c.bf16 %v1041_v51, %v1041_v51 }
 0x531   :  { %v4340_v54 = vpop.eup %4339 }
 0x532   :  { %3887 = vmatmul.mubr.msk.bf16.vlgmr.msra.gmra.mxu0 %vm956_vm3, %v1049_v53  ;;  %v1043_v56 = vmul.f32 %v4340_v54, %v4328_v15 }
 0x533   :  { %3897 = vmatpush3.bf16.msra.mxu0 %v1346_v55  ;;  %3898 = vmatprep.mubr.msk.bf16.mxu0 %vm4570_vm0, %v4568_v4 }
 0x534   :  { %3908 = vmatprep.subr.bf16.mxu0 %v4568_v4  ;;  %v1051_v57 = vpack.c.bf16 %v1043_v56, %v1043_v56 }
 0x53a   :  { %3899 = vmatmul.mubr.msk.bf16.vlgmr.msra.gmra.mxu0 %vm956_vm3, %v1051_v57 }
 0x53b   :  { %3924 = vmatprep.mubr.msk.bf16.mxu0 %vm4570_vm0, %v4568_v4  ;;  %3909 = vmatpush3.bf16.msra.mxu0 %v4225_v7 }
 0x53c   :  { %3910 = vmatprep.subr.bf16.mxu0 %v4568_v4 }
 0x53f   :  { %3911 = vmatpush3.bf16.msra.mxu0 %v4226_v9 }
 0x540   :  { %3912 = vmatprep.subr.bf16.mxu0 %v4568_v4 }
 0x543   :  { %3913 = vmatpush3.bf16.msra.mxu0 %v4227_v11 }
 0x544   :  { %3914 = vmatprep.subr.bf16.mxu0 %v4568_v4 }
 0x547   :  { %3915 = vmatpush3.bf16.msra.mxu0 %v4228_v5 }
 0x548   :  { %3916 = vmatprep.subr.bf16.mxu0 %v4568_v4 }
 0x54a   :  { %v4879_v60 = vpop.f32.mrf.mxu0 }
 0x54b   :  { %3917 = vmatpush3.bf16.msra.mxu0 %v4229_v16 }
 0x54c   :  { %v3864_v61 = vpop.f32.mrf.mxu0  ;;  %3918 = vmatprep.subr.bf16.mxu0 %v4568_v4 }
 0x54e   :  { %v1097_v62 = vpop.f32.mrf.mxu0 }
 0x54f   :  { %3919 = vmatpush3.bf16.msra.mxu0 %v4230_v26  ;;  %v4240_v26 = vld [vmem:[#allocation13] sm:$0xff]  }
 0x550   :  { %v3865_v63 = vpop.f32.mrf.mxu0  ;;  %3920 = vmatprep.subr.bf16.mxu0 %v4568_v4 }
 0x552   :  { %v4881_v0 = vpop.f32.mrf.mxu1 }
 0x553   :  { %3921 = vmatpush3.bf16.msra.mxu0 %v4231_v28  ;;  %v4241_v28 = vld [vmem:[#allocation14 + $0x38] sm:$0xff]  }
 0x554   :  { %v3870_v1 = vpop.f32.mrf.mxu1  ;;  %3922 = vmatprep.subr.bf16.mxu0 %v4568_v4 }
 0x556   :  { %v1143_v2 = vpop.f32.mrf.mxu1 }
 0x557   :  { %3923 = vmatpush3.bf16.msra.mxu0 %v4232_v30  ;;  %v4243_v30 = vld [vmem:[#allocation14 + $0x28] sm:$0xff]  }
 0x558   :  { %v3871_v3 = vpop.f32.mrf.mxu1  ;;  %3948 = vmatprep.subr.bf16.mxu0 %v4568_v4 }
 0x5bd   :  { %v1189_v6 = vpop.f32.mrf.mxu0 }
 0x5bf   :  { %v3876_v8 = vpop.f32.mrf.mxu0 }
 0x5c1   :  { %v1192_v10 = vpop.f32.mrf.mxu0 }
 0x5c3   :  { %v3877_v59 = vpop.f32.mrf.mxu0 }
 0x5c4   :  { %v4390_v59 = vld [vmem:[#allocation2 + $0x8] sm:$0xff] }
 0x5c5   :  { %v1238_v12 = vpop.f32.mrf.mxu1 }
 0x5c6   :  { %v4163_v13 = vpack.i.bf16 %v1238_v12, %v1189_v6  ;;  %v4389_v6 = vld [vmem:[#allocation2] sm:$0xff]  ;;  %v4233_v12 = vld [vmem:[#allocation13 + $0x38] sm:$0xff]  }
 0x5c7   :  { %v3882_v14 = vpop.f32.mrf.mxu1  ;;  %3929 = vmatpush3.bf16.msra.mxu1 %v4233_v12  ;;  %v3578_v12 = vld [vmem:[%s5245_s7 + $0x8] ss:$0 sm:$0xff] }
 0x5c8   :  { %4164 = vrot.lane.b32.xlu0 %v4163_v13, %s4572_s27  ;;  %3930 = vmatprep.subr.bf16.mxu1 %v4568_v4 }
 0x5c9   :  { %v1241_v37 = vpop.f32.mrf.mxu1 }
 0x5cb   :  { %v3883_v15 = vpop.f32.mrf.mxu1 }
 0x5cd   :  { %v1334_v17 = vpop.f32.mrf.mxu1 }
 0x5cf   :  { %v3894_v19 = vpop.f32.mrf.mxu1 }
 0x5d1   :  { %v1337_v20 = vpop.f32.mrf.mxu1 }
 0x5d2   :  { %v4234_v20 = vld [vmem:[#allocation13 + $0x30] sm:$0xff]  }
 0x5d3   :  { %v3895_v21 = vpop.f32.mrf.mxu1  ;;  %3931 = vmatpush3.bf16.msra.mxu1 %v4234_v20  ;;  %v4251_v20 = vld [vmem:[#allocation10 + $0x16c] ss:$12 sps:$4 sm:$0xff]  }
 0x5d4   :  { %3932 = vmatprep.subr.bf16.mxu1 %v4568_v4  ;;  %v4235_v21 = vld [vmem:[#allocation13 + $0x28] sm:$0xff]  }
 0x5d5   :  { %v1430_v22 = vpop.f32.mrf.mxu1 }
 0x5d7   :  { %v3906_v23 = vpop.f32.mrf.mxu1  ;;  %3933 = vmatpush3.bf16.msra.mxu1 %v4235_v21  ;;  %v4252_v21 = vld [vmem:[#allocation10 + $0x170] ss:$12 sps:$4 sm:$0xff]  }
 0x5d8   :  { %3934 = vmatprep.subr.bf16.mxu1 %v4568_v4  ;;  %v4237_v23 = vld [vmem:[#allocation13 + $0x18] sm:$0xff]  }
 0x5d9   :  { %v1433_v24 = vpop.f32.mrf.mxu1 }
 0x5da   :  { %v4238_v24 = vld [vmem:[#allocation13 + $0x10] sm:$0xff]  }
 0x5db   :  { %v3907_v25 = vpop.f32.mrf.mxu1 }
 0x5dc   :  { %v4239_v25 = vld [vmem:[#allocation13 + $0x8] sm:$0xff]  }
 0x5f2   :  { %v1286_v29 = vpop.f32.mrf.mxu0 }
 0x5f3   :  { %v4168_v31 = vpack.i.bf16 %v1334_v17, %v1286_v29  ;;  %v4242_v29 = vld [vmem:[#allocation14 + $0x30] sm:$0xff]  }
 0x5f4   :  { %v3888_v32 = vpop.f32.mrf.mxu0 }
 0x5f5   :  { %4169 = vrot.lane.b32.xlu1 %v4168_v31, %s4559_s19  ;;  %v4244_v31 = vld [vmem:[#allocation14 + $0x20] sm:$0xff]   ;;  %v4245_v32 = vld [vmem:[#allocation14 + $0x18] sm:$0xff]  }
 0x5f6   :  { %v1289_v33 = vpop.f32.mrf.mxu0 }
 0x5f8   :  { %v3889_v34 = vpop.f32.mrf.mxu0 }
 0x5fa   :  { %v1382_v35 = vpop.f32.mrf.mxu0 }
 0x5fb   :  { %v4173_v36 = vpack.i.bf16 %v1430_v22, %v1382_v35  ;;  %v4236_v22 = vld [vmem:[#allocation13 + $0x20] sm:$0xff]  }
 0x5fc   :  { %v3900_v38 = vpop.f32.mrf.mxu0  ;;  %3935 = vmatpush3.bf16.msra.mxu1 %v4236_v22 }
 0x5fd   :  { %4174 = vrot.lane.b32.xlu0 %v4173_v36, %s4571_s5  ;;  %3936 = vmatprep.subr.bf16.mxu1 %v4568_v4 }
 0x5fe   :  { %v1385_v39 = vpop.f32.mrf.mxu0 }
 0x600   :  { %v3901_v40 = vpop.f32.mrf.mxu0  ;;  %3937 = vmatpush3.bf16.msra.mxu1 %v4237_v23 }
 0x601   :  { %3938 = vmatprep.subr.bf16.mxu1 %v4568_v4  ;;  %v1604_v40 = vsub.s32 5, %v4697_v43 }
 0x604   :  { %3939 = vmatpush3.bf16.msra.mxu1 %v4238_v24 }
 0x605   :  { %3940 = vmatprep.subr.bf16.mxu1 %v4568_v4 }
 0x608   :  { %3941 = vmatpush3.bf16.msra.mxu1 %v4239_v25 }
 0x609   :  { %3942 = vmatprep.subr.bf16.mxu1 %v4568_v4 }
 0x60c   :  { %3943 = vmatpush3.bf16.msra.mxu1 %v4240_v26 }
 0x60d   :  { %2037 = vmatprep.subr.bf16.mxu1 %v4251_v20 }
 0x63a   :  { %v4165_v41 = vpop.permute.xlu0 %4164 }
 0x63b   :  { %v4167_v45 = vunpack.i.h.bf16 %v4165_v41  ;;  %v4166_v47 = vunpack.i.l.bf16 %v4165_v41 }
 0x63d   :  { %v1461_v52 = vsel %vm559_vm1, %v4881_v0, %v4167_v45  ;;  %v1460_v53 = vsel %vm559_vm1, %v4879_v60, %v4166_v47  ;;  %v1487_v0 = vsub.s32 4, %v4697_v43  ;;  %v1605_v45 = vrot.slane %v4703_v46, %v1604_v40 }
 0x63e   :  { %v1610_v47 = vsub.s32 6, %v4697_v43 }
 0x63f   :  { %v1488_v60 = vrot.slane %v4703_v46, %v1487_v0 }
 0x667   :  { %v4170_v42 = vpop.permute.xlu1 %4169 }
 0x668   :  { %v4172_v48 = vunpack.i.h.bf16 %v4170_v42  ;;  %v4171_v50 = vunpack.i.l.bf16 %v4170_v42 }
 0x66a   :  { %v1464_v56 = vsel %vm1462_vm4, %v1461_v52, %v4172_v48  ;;  %v1463_v57 = vsel %vm1462_vm4, %v1460_v53, %v4171_v50  ;;  %v1611_v52 = vrot.slane %v4703_v46, %v1610_v47 }
 0x66f   :  { %v4175_v51 = vpop.permute.xlu0 %4174 }
 0x670   :  { %v4177_v54 = vunpack.i.h.bf16 %v4175_v51  ;;  %v4176_v55 = vunpack.i.l.bf16 %v4175_v51 }
 0x672   :  { %v1467_v61 = vsel %vm1465_vm5, %v1464_v56, %v4177_v54  ;;  %v1466_v62 = vsel %vm1465_vm5, %v1463_v57, %v4176_v55  ;;  %v4246_v57 = vld [vmem:[#allocation14 + $0x10] sm:$0xff]  }
 0x673   :  { %v1468_v63 = vpack.c.bf16 %v1467_v61, %v1466_v62  ;;  %v4247_v61 = vld [vmem:[#allocation14 + $0x8] sm:$0xff]   ;;  %v4248_v62 = vld [vmem:[#allocation14] sm:$0xff]  }
 0x675   :  { %3925 = vmatmul.mubr.bf16.vlgmr.msra.gmra.mxu0 %v1468_v63  ;;  %v1633_v63 = vsub.s32 7, %v4697_v43 }
 0x676   :  { %3964 = vmatprep.mubr.msk.bf16.mxu0 %vm4570_vm0, %v4568_v4  ;;  %3949 = vmatpush3.bf16.msra.mxu0 %v4241_v28 }
 0x677   :  { %3950 = vmatprep.subr.bf16.mxu0 %v4568_v4 }
 0x67a   :  { %3951 = vmatpush3.bf16.msra.mxu0 %v4242_v29  ;;  %v4255_v29 = vld [vmem:[#allocation10 + $0x154] ss:$12 sps:$4 sm:$0xff]  }
 0x67b   :  { %3952 = vmatprep.subr.bf16.mxu0 %v4568_v4 }
 0x67e   :  { %3953 = vmatpush3.bf16.msra.mxu0 %v4243_v30  ;;  %v4253_v30 = vld [vmem:[#allocation10 + $0x150] ss:$12 sps:$4 sm:$0xff]  }
 0x67f   :  { %3954 = vmatprep.subr.bf16.mxu0 %v4568_v4 }
 0x682   :  { %3955 = vmatpush3.bf16.msra.mxu0 %v4244_v31  ;;  %v4256_v31 = vld [vmem:[#allocation10 + $0x158] ss:$12 sps:$4 sm:$0xff]  }
 0x683   :  { %3956 = vmatprep.subr.bf16.mxu0 %v4568_v4 }
 0x686   :  { %3957 = vmatpush3.bf16.msra.mxu0 %v4245_v32  ;;  %v4259_v32 = vld [vmem:[#allocation10 + $0x13c] ss:$12 sps:$4 sm:$0xff]  }
 0x687   :  { %3958 = vmatprep.subr.bf16.mxu0 %v4568_v4 }
 0x68a   :  { %3959 = vmatpush3.bf16.msra.mxu0 %v4246_v57 }
 0x68b   :  { %3960 = vmatprep.subr.bf16.mxu0 %v4568_v4 }
 0x68e   :  { %3961 = vmatpush3.bf16.msra.mxu0 %v4247_v61 }
 0x68f   :  { %3962 = vmatprep.subr.bf16.mxu0 %v4568_v4 }
 0x692   :  { %3963 = vmatpush3.bf16.msra.mxu0 %v4248_v62 }
 0x693   :  { %3968 = vmatprep.subr.bf16.mxu0 %v4568_v4 }
 0x735   :  { %v1571_v1 = vpop.f32.mrf.mxu0 }
 0x736   :  { %v1572_v2 = vadd.f32 %v1571_v1, %v1488_v60 }
 0x737   :  { %v3926_v3 = vpop.f32.mrf.mxu0 }
 0x738   :  { %v4908_v7 = vadd.f32 %v4389_v6, %v1572_v2 }
 0x739   :  { %v1574_v8 = vpop.f32.mrf.mxu0 }
 0x73a   :  { %v1575_v9 = vadd.f32 %v1574_v8, %v1488_v60  ;;  %1580 = vadd.xlane.f32.xlu1 %v4908_v7  ;;  %v1634_v60 = vrot.slane %v4703_v46, %v1633_v63 }
 0x73b   :  { %v3927_v10 = vpop.f32.mrf.mxu0 }
 0x73c   :  { %v4911_v11 = vadd.f32 %v4390_v59, %v1575_v9 }
 0x73e   :  { %1582 = vadd.xlane.f32.xlu0 %v4911_v11 }
 0x7c3   :  { %v1581_v13 = vpop.xlane.xlu1 %1580 }
 0x7c4   :  { %v1584_v14 = vmul.f32 0.0078125, %v1581_v13 }
 0x7c6   :  { %v1586_v5 = vsub.f32 %v4908_v7, %v1584_v14 }
 0x7c7   :  { %v1583_v37 = vpop.xlane.xlu0 %1582 }
 0x7c8   :  { %v1585_v15 = vmul.f32 0.0078125, %v1583_v37  ;;  %v1588_v16 = vmul.f32 %v1586_v5, %v1586_v5 }
 0x7ca   :  { %v1587_v17 = vsub.f32 %v4911_v11, %v1585_v15  ;;  %1590 = vadd.xlane.f32.xlu0 %v1588_v16 }
 0x7cc   :  { %v1589_v19 = vmul.f32 %v1587_v17, %v1587_v17 }
 0x7ce   :  { %1592 = vadd.xlane.f32.xlu0 %v1589_v19  ;;  %v4249_v19 = vld [vmem:[#allocation10 + $0x168] ss:$12 sps:$4 sm:$0xff]  }
 0x853   :  { %v1591_v33 = vpop.xlane.xlu0 %1590 }
 0x854   :  { %v1594_v34 = vmul.f32 0.0078125, %v1591_v33  ;;  %v4257_v33 = vld [vmem:[#allocation10 + $0x138] ss:$12 sps:$4 sm:$0xff]  }
 0x856   :  { %v1596_v35 = vadd.f32 1e-05, %v1594_v34  ;;  %v4260_v34 = vld [vmem:[#allocation10 + $0x140] ss:$12 sps:$4 sm:$0xff]  }
 0x857   :  { %v1593_v36 = vpop.xlane.xlu0 %1592 }
 0x858   :  { %4341 = vrsqrt.f32 %v1596_v35  ;;  %v1595_v38 = vmul.f32 0.0078125, %v1593_v36  ;;  %v4263_v35 = vld [vmem:[#allocation10 + $0x124] ss:$12 sps:$4 sm:$0xff]   ;;  %v4261_v36 = vld [vmem:[#allocation10 + $0x120] ss:$12 sps:$4 sm:$0xff]  }
 0x85a   :  { %v1597_v39 = vadd.f32 1e-05, %v1595_v38  ;;  %v4264_v38 = vld [vmem:[#allocation10 + $0x128] ss:$12 sps:$4 sm:$0xff]  }
 0x85c   :  { %4343 = vrsqrt.f32 %v1597_v39  ;;  %v4267_v39 = vld [vmem:[#allocation10 + $0x10c] ss:$12 sps:$4 sm:$0xff]  }
 0x865   :  { %v4342_v41 = vpop.eup %4341 }
 0x866   :  { %v1600_v42 = vmul.f32 %v4342_v41, %v1586_v5  ;;  %v4265_v41 = vld [vmem:[#allocation10 + $0x108] ss:$12 sps:$4 sm:$0xff]  }
 0x868   :  { %v1606_v51 = vmul.f32 %v1605_v45, %v1600_v42  ;;  %v4268_v42 = vld [vmem:[#allocation10 + $0x110] ss:$12 sps:$4 sm:$0xff]  }
 0x869   :  { %v4344_v48 = vpop.eup %4343 }
 0x86a   :  { %v1601_v50 = vmul.f32 %v4344_v48, %v1587_v17  ;;  %v1612_v54 = vadd.f32 %v1611_v52, %v1606_v51  ;;  %v4269_v48 = vld [vmem:[#allocation10 + $0xf0] ss:$12 sps:$4 sm:$0xff]  }
 0x86b   :  { %v4275_v51 = vld [vmem:[#allocation10 + $0xdc] ss:$12 sps:$4 sm:$0xff]  }
 0x86c   :  { %v1607_v53 = vmul.f32 %v1605_v45, %v1601_v50  ;;  %v4271_v45 = vld [vmem:[#allocation10 + $0xf4] ss:$12 sps:$4 sm:$0xff]   ;;  %v4272_v50 = vld [vmem:[#allocation10 + $0xf8] ss:$12 sps:$4 sm:$0xff]  }
 0x86e   :  { %v1613_v55 = vadd.f32 %v1611_v52, %v1607_v53  ;;  %v4273_v52 = vld [vmem:[#allocation10 + $0xd8] ss:$12 sps:$4 sm:$0xff]   ;;  %v4276_v53 = vld [vmem:[#allocation10 + $0xe0] ss:$12 sps:$4 sm:$0xff]  }
 0x870   :  { %v1614_v56 = vpack.c.bf16 %v1613_v55, %v1612_v54  ;;  %v4279_v54 = vld [vmem:[#allocation10 + $0xc4] ss:$12 sps:$4 sm:$0xff]   ;;  %v4277_v55 = vld [vmem:[#allocation10 + $0xc0] ss:$12 sps:$4 sm:$0xff]  }
 0x872   :  { %3945 = vmatmul.mubr.bf16.vlgmr.msra.gmra.mxu1 %v1614_v56  ;;  %v4280_v56 = vld [vmem:[#allocation10 + $0xc8] ss:$12 sps:$4 sm:$0xff]  }
 0x873   :  { %2069 = vmatprep.mubr.bf16.mxu1 %v4569_v27  ;;  %2038 = vmatpush1.bf16.msra.mxu1 %v4249_v19 }
 0x874   :  { %2039 = vmatprep.subr.bf16.mxu1 %v4255_v29 }
 0x877   :  { %2040 = vmatpush1.bf16.msra.mxu1 %v4253_v30 }
 0x878   :  { %2041 = vmatprep.subr.bf16.mxu1 %v4259_v32 }
 0x87b   :  { %2042 = vmatpush1.bf16.msra.mxu1 %v4257_v33 }
 0x87c   :  { %2043 = vmatprep.subr.bf16.mxu1 %v4263_v35 }
 0x87f   :  { %2044 = vmatpush1.bf16.msra.mxu1 %v4261_v36 }
 0x880   :  { %2045 = vmatprep.subr.bf16.mxu1 %v4267_v39 }
 0x883   :  { %2046 = vmatpush1.bf16.msra.mxu1 %v4265_v41 }
 0x884   :  { %2047 = vmatprep.subr.bf16.mxu1 %v4271_v45 }
 0x887   :  { %2048 = vmatpush1.bf16.msra.mxu1 %v4269_v48 }
 0x888   :  { %2049 = vmatprep.subr.bf16.mxu1 %v4275_v51 }
 0x88b   :  { %2050 = vmatpush1.bf16.msra.mxu1 %v4273_v52 }
 0x88c   :  { %2051 = vmatprep.subr.bf16.mxu1 %v4279_v54 }
 0x88f   :  { %2052 = vmatpush1.bf16.msra.mxu1 %v4277_v55 }
 0x890   :  { %3988 = vmatprep.subr.bf16.mxu1 %v4568_v4 }
 0x932   :  { %v1717_v1 = vpop.f32.mrf.mxu1 }
 0x933   :  { %v1718_v2 = vadd.f32 %v1717_v1, %v1634_v60 }
 0x934   :  { %v3946_v27 = vpop.f32.mrf.mxu1 }
 0x935   :  { %v1724_v9 = vmax.f32 %v1718_v2, 0.0  ;;  %v4979_v2 = vld [vmem:[%s5245_s7 + $0x10] sm:$0xff] }
 0x936   :  { %v1720_v3 = vpop.f32.mrf.mxu1  ;;  %v2134_v48 = vrot.slane %v4979_v2, %v553_v18 }
 0x937   :  { %v1721_v6 = vadd.f32 %v1720_v3, %v1634_v60 }
 0x938   :  { %v3947_v8 = vpop.f32.mrf.mxu1 }
 0x939   :  { %v1725_v10 = vmax.f32 %v1721_v6, 0.0  ;;  %v1866_v8 = vrot.slane %v4979_v2, %v286_v44  ;;  %v2124_v44 = vrot.slane %v4979_v2, %v543_v58 }
 0x93b   :  { %v1726_v59 = vpack.c.bf16 %v1725_v10, %v1724_v9 }
 0x93d   :  { %3965 = vmatmul.mubr.bf16.vlgmr.msra.gmra.mxu0 %v1726_v59 }
 0x93e   :  { %3984 = vmatprep.mubr.msk.bf16.mxu0 %vm4570_vm0, %v4568_v4  ;;  %3969 = vmatpush3.bf16.msra.mxu0 %v4252_v21 }
 0x93f   :  { %3970 = vmatprep.subr.bf16.mxu0 %v4568_v4 }
 0x942   :  { %3971 = vmatpush3.bf16.msra.mxu0 %v4256_v31 }
 0x943   :  { %3972 = vmatprep.subr.bf16.mxu0 %v4568_v4 }
 0x946   :  { %3973 = vmatpush3.bf16.msra.mxu0 %v4260_v34 }
 0x947   :  { %3974 = vmatprep.subr.bf16.mxu0 %v4568_v4 }
 0x94a   :  { %3975 = vmatpush3.bf16.msra.mxu0 %v4264_v38 }
 0x94b   :  { %3976 = vmatprep.subr.bf16.mxu0 %v4568_v4 }
 0x94e   :  { %3977 = vmatpush3.bf16.msra.mxu0 %v4268_v42 }
 0x94f   :  { %3978 = vmatprep.subr.bf16.mxu0 %v4568_v4 }
 0x952   :  { %3979 = vmatpush3.bf16.msra.mxu0 %v4272_v50 }
 0x953   :  { %3980 = vmatprep.subr.bf16.mxu0 %v4568_v4 }
 0x956   :  { %3981 = vmatpush3.bf16.msra.mxu0 %v4276_v53 }
 0x957   :  { %3982 = vmatprep.subr.bf16.mxu0 %v4568_v4 }
 0x95a   :  { %3983 = vmatpush3.bf16.msra.mxu0 %v4280_v56 }
 0x95b   :  { %4012 = vmatprep.subr.bf16.mxu0 %v4568_v4 }
 0x9fd   :  { %v1829_v13 = vpop.f32.mrf.mxu0 }
 0x9fe   :  { %v1830_v14 = vadd.f32 %v3578_v12, %v1829_v13 }
 0x9ff   :  { %v3966_v46 = vpop.f32.mrf.mxu0 }
 0xa00   :  { %v4950_v5 = vadd.f32 %v1830_v14, %v4908_v7 }
 0xa01   :  { %v1832_v37 = vpop.f32.mrf.mxu0 }
 0xa02   :  { %v1833_v15 = vadd.f32 %v3578_v12, %v1832_v37  ;;  %1841 = vadd.xlane.f32.xlu1 %v4950_v5  ;;  %v1872_v12 = vrot.slane %v4979_v2, %v292_v49 }
 0xa03   :  { %v3967_v16 = vpop.f32.mrf.mxu0 }
 0xa04   :  { %v4954_v17 = vadd.f32 %v1833_v15, %v4911_v11 }
 0xa06   :  { %1843 = vadd.xlane.f32.xlu0 %v4954_v17 }
 0xa8b   :  { %v1842_v7 = vpop.xlane.xlu1 %1841 }
 0xa8c   :  { %v1845_v22 = vmul.f32 0.0078125, %v1842_v7 }
 0xa8e   :  { %v4959_v23 = vsub.f32 %v4950_v5, %v1845_v22 }
 0xa8f   :  { %v1844_v24 = vpop.xlane.xlu0 %1843 }
 0xa90   :  { %v1846_v25 = vmul.f32 0.0078125, %v1844_v24  ;;  %v1849_v11 = vmul.f32 %v4959_v23, %v4959_v23 }
 0xa92   :  { %v4964_v26 = vsub.f32 %v4954_v17, %v1846_v25  ;;  %1851 = vadd.xlane.f32.xlu1 %v1849_v11 }
 0xa94   :  { %v1850_v28 = vmul.f32 %v4964_v26, %v4964_v26 }
 0xa96   :  { %1853 = vadd.xlane.f32.xlu0 %v1850_v28 }
 0xb1b   :  { %v1852_v57 = vpop.xlane.xlu1 %1851 }
 0xb1c   :  { %v1855_v61 = vmul.f32 0.0078125, %v1852_v57 }
 0xb1e   :  { %v1857_v62 = vadd.f32 1e-05, %v1855_v61 }
 0xb1f   :  { %v1854_v60 = vpop.xlane.xlu0 %1853 }
 0xb20   :  { %4345 = vrsqrt.f32 %v1857_v62  ;;  %v1856_v1 = vmul.f32 0.0078125, %v1854_v60 }
 0xb22   :  { %v1858_v27 = vadd.f32 1e-05, %v1856_v1 }
 0xb24   :  { %4347 = vrsqrt.f32 %v1858_v27 }
 0xb2d   :  { %v4346_v3 = vpop.eup %4345 }
 0xb2e   :  { %v1861_v6 = vmul.f32 %v4346_v3, %v4959_v23 }
 0xb30   :  { %v1867_v59 = vmul.f32 %v1866_v8, %v1861_v6 }
 0xb31   :  { %v4348_v9 = vpop.eup %4347 }
 0xb32   :  { %v1862_v10 = vmul.f32 %v4348_v9, %v4964_v26  ;;  %v1873_v14 = vadd.f32 %v1872_v12, %v1867_v59 }
 0xb34   :  { %v1868_v13 = vmul.f32 %v1866_v8, %v1862_v10 }
 0xb36   :  { %v1874_v46 = vadd.f32 %v1872_v12, %v1868_v13 }
 0xb38   :  { %v1875_v37 = vpack.c.bf16 %v1874_v46, %v1873_v14 }
 0xb3a   :  { %2070 = vmatmul.mubr.bf16.vlgmr.msra.gmra.mxu1 %v1875_v37  ;;  %3985 = vmatmul.mubr.bf16.vlgmr.msra.gmra.mxu0 %v1875_v37 }
 0xb3b   :  { %3990 = vmatprep.mubr.msk.bf16.mxu1 %vm4570_vm0, %v4568_v4  ;;  %4014 = vmatprep.mubr.msk.bf16.mxu0 %vm4570_vm0, %v4568_v4 }
 0xbfa   :  { %v2071_v15 = vpop.f32.mrf.mxu1  ;;  %v4996_v16 = vpop.f32.mrf.mxu0 }
 0xbfb   :  { %v2125_v49 = vadd.f32 %v2124_v44, %v2071_v15  ;;  %v2135_v51 = vadd.f32 %v2134_v48, %v4996_v16 }
 0xbfc   :  { %v2073_v19 = vpop.f32.mrf.mxu1  ;;  %v3986_v20 = vpop.f32.mrf.mxu0 }
 0xbfd   :  { %v2127_v21 = vpack.c.bf16 %v2125_v49, %v2125_v49  ;;  %v2129_v7 = vpack.c.bf16 %v2073_v19, %v2073_v19  ;;  %v5045_v55 = vpack.c.bf16 %v2135_v51, %v2135_v51 }
 0xbfe   :  { %v2075_v22 = vpop.f32.mrf.mxu1  ;;  %v2117_v23 = vpop.f32.mrf.mxu0 }
 0xbff   :  { %2232 = vrot.lane.b32.xlu0 %v2127_v21, %s4571_s5  ;;  %2235 = vrot.lane.b32.xlu1 %v2129_v7, %s4571_s5  ;;  %v2143_v24 = vsel %vm559_vm1, %v2129_v7, 0  ;;  %v2126_v58 = vadd.f32 %v2124_v44, %v2075_v22  ;;  %v2136_v18 = vadd.f32 %v2134_v48, %v2117_v23  ;;  %v2635_v61 = vsel %vm1056_vm2, %v5045_v55, 0 }
 0xc00   :  { %v2077_v25 = vpop.f32.mrf.mxu1  ;;  %v3987_v11 = vpop.f32.mrf.mxu0  ;;  %3989 = vmatpush3.bf16.xpose.msra.mxu1 %v2143_v24 }
 0xc01   :  { %v2130_v26 = vpack.c.bf16 %v2077_v25, %v2077_v25  ;;  %3994 = vmatprep.subr.bf16.mxu1 %v4568_v4  ;;  %v2128_v28 = vpack.c.bf16 %v2126_v58, %v2126_v58  ;;  %v5050_v56 = vpack.c.bf16 %v2136_v18, %v2136_v18 }
 0xc03   :  { %2387 = vrot.lane.b32.xlu0 %v2130_v26, %s4559_s19  ;;  %2287 = vrot.lane.b32.xlu1 %v2130_v26, %s4571_s5  ;;  %v2189_v29 = vsel %vm559_vm1, %v2130_v26, 0  ;;  %v2681_v60 = vsel %vm1056_vm2, %v5050_v56, 0 }
 0xc07   :  { %3991 = vmatmul.mubr.msk.bf16.vlgmr.msra.gmra.mxu1 %vm559_vm1, %v2127_v21  ;;  %2385 = vrot.lane.b32.xlu0 %v2128_v28, %s4559_s19 }
 0xc08   :  { %2337 = vrot.lane.b32.xlu1 %v2129_v7, %s4559_s19  ;;  %3995 = vmatpush3.bf16.xpose.msra.mxu1 %v2189_v29 }
 0xc09   :  { %3996 = vmatprep.mubr.msk.bf16.mxu1 %vm4570_vm0, %v4568_v4  ;;  %4000 = vmatprep.subr.bf16.mxu1 %v4568_v4 }
 0xc0b   :  { %2487 = vrot.lane.b32.xlu0 %v2130_v26, %s4572_s27 }
 0xc0c   :  { %2284 = vrot.lane.b32.xlu1 %v2128_v28, %s4571_s5 }
 0xc0f   :  { %2485 = vrot.lane.b32.xlu0 %v2128_v28, %s4572_s27  ;;  %3997 = vmatmul.mubr.msk.bf16.vlgmr.msra.gmra.mxu1 %vm559_vm1, %v2128_v28 }
 0xc10   :  { %2335 = vrot.lane.b32.xlu1 %v2127_v21, %s4559_s19  ;;  %4002 = vmatprep.mubr.msk.bf16.mxu1 %vm4570_vm0, %v4568_v4 }
 0xc14   :  { %2437 = vrot.lane.b32.xlu1 %v2129_v7, %s4572_s27 }
 0xc18   :  { %2435 = vrot.lane.b32.xlu1 %v2127_v21, %s4572_s27 }
 0xc71   :  { %v2236_v30 = vpop.permute.xlu1 %2235  ;;  %v2233_v32 = vpop.permute.xlu0 %2232 }
 0xc72   :  { %v2241_v31 = vsel %vm559_vm1, %v2236_v30, 0 }
 0xc73   :  { %4001 = vmatpush3.bf16.xpose.msra.mxu1 %v2241_v31 }
 0xc74   :  { %4006 = vmatprep.subr.bf16.mxu1 %v4568_v4 }
 0xc75   :  { %v2288_v33 = vpop.permute.xlu1 %2287  ;;  %v2388_v36 = vpop.permute.xlu0 %2387 }
 0xc76   :  { %v2293_v34 = vsel %vm559_vm1, %v2288_v33, 0  ;;  %v2393_v42 = vsel %vm559_vm1, %v2388_v36, 0 }
 0xc79   :  { %v2386_v41 = vpop.permute.xlu0 %2385 }
 0xc7a   :  { %v2338_v35 = vpop.permute.xlu1 %2337  ;;  %4003 = vmatmul.mubr.msk.bf16.vlgmr.msra.gmra.mxu1 %vm559_vm1, %v2233_v32 }
 0xc7b   :  { %v2343_v38 = vsel %vm559_vm1, %v2338_v35, 0  ;;  %4007 = vmatpush3.bf16.xpose.msra.mxu1 %v2293_v34  ;;  %4008 = vmatprep.mubr.msk.bf16.mxu1 %vm4570_vm0, %v4568_v4 }
 0xc7c   :  { %4013 = vmatpush3.bf16.xpose.msra.mxu0 %v2343_v38  ;;  %4018 = vmatprep.subr.bf16.mxu1 %v4568_v4 }
 0xc7d   :  { %4024 = vmatprep.subr.bf16.mxu0 %v4568_v4  ;;  %v2488_v52 = vpop.permute.xlu0 %2487 }
 0xc7e   :  { %v2285_v39 = vpop.permute.xlu1 %2284  ;;  %v2493_v54 = vsel %vm559_vm1, %v2488_v52, 0 }
 0xc81   :  { %v2486_v62 = vpop.permute.xlu0 %2485 }
 0xc82   :  { %v2336_v45 = vpop.permute.xlu1 %2335  ;;  %4009 = vmatmul.mubr.msk.bf16.vlgmr.msra.gmra.mxu1 %vm559_vm1, %v2285_v39 }
 0xc83   :  { %4015 = vmatmul.mubr.msk.bf16.vlgmr.msra.gmra.mxu0 %vm559_vm1, %v2336_v45  ;;  %4019 = vmatpush3.bf16.xpose.msra.mxu1 %v2393_v42 }
 0xc84   :  { %4020 = vmatprep.mubr.msk.bf16.mxu1 %vm4570_vm0, %v4568_v4  ;;  %4030 = vmatprep.subr.bf16.mxu1 %v4568_v4 }
 0xc85   :  { %4026 = vmatprep.mubr.msk.bf16.mxu0 %vm4570_vm0, %v4568_v4 }
 0xc86   :  { %v2438_v50 = vpop.permute.xlu1 %2437 }
 0xc87   :  { %v2443_v53 = vsel %vm559_vm1, %v2438_v50, 0 }
 0xc88   :  { %4025 = vmatpush3.bf16.xpose.msra.mxu0 %v2443_v53 }
 0xc89   :  { %4036 = vmatprep.subr.bf16.mxu0 %v4568_v4 }
 0xc8a   :  { %4021 = vmatmul.mubr.msk.bf16.vlgmr.msra.gmra.mxu1 %vm559_vm1, %v2386_v41  ;;  %v2436_v57 = vpop.permute.xlu1 %2435 }
 0xc8b   :  { %4031 = vmatpush3.bf16.xpose.msra.mxu1 %v2493_v54  ;;  %4032 = vmatprep.mubr.msk.bf16.mxu1 %vm4570_vm0, %v4568_v4 }
 0xc8c   :  { %4042 = vmatprep.subr.bf16.mxu1 %v4568_v4 }
 0xc8f   :  { %4027 = vmatmul.mubr.msk.bf16.vlgmr.msra.gmra.mxu0 %vm559_vm1, %v2436_v57 }
 0xc90   :  { %4037 = vmatpush3.bf16.msra.mxu0 %v2635_v61  ;;  %4038 = vmatprep.mubr.msk.bf16.mxu0 %vm4570_vm0, %v4568_v4 }
 0xc91   :  { %4048 = vmatprep.subr.bf16.mxu0 %v4568_v4 }
 0xc92   :  { %4033 = vmatmul.mubr.msk.bf16.vlgmr.msra.gmra.mxu1 %vm559_vm1, %v2486_v62 }
 0xc93   :  { %4043 = vmatpush3.bf16.msra.mxu1 %v2681_v60  ;;  %4044 = vmatprep.mubr.msk.bf16.mxu1 %vm4570_vm0, %v4568_v4 }
 0xc94   :  { %4054 = vmatprep.subr.bf16.mxu1 %v4568_v4 }
 0xcc7   :  { %v2179_v1 = vpop.f32.mrf.mxu1 }
 0xcc8   :  { %v2535_v27 = vsel %vm956_vm3, %v2179_v1, -inf }
 0xcc9   :  { %v3992_v3 = vpop.f32.mrf.mxu1  ;;  %2536 = vmax.xlane.f32.xlu1 %v2535_v27 }
 0xccb   :  { %v2182_v6 = vpop.f32.mrf.mxu1 }
 0xccd   :  { %v3993_v8 = vpop.f32.mrf.mxu1 }
 0xccf   :  { %v2225_v9 = vpop.f32.mrf.mxu1 }
 0xcd0   :  { %v2538_v10 = vsel %vm956_vm3, %v2225_v9, -inf }
 0xcd1   :  { %2539 = vmax.xlane.f32.xlu0 %v2538_v10  ;;  %v3998_v59 = vpop.f32.mrf.mxu1 }
 0xcd3   :  { %v2228_v12 = vpop.f32.mrf.mxu1 }
 0xcd5   :  { %v3999_v13 = vpop.f32.mrf.mxu1 }
 0xd3a   :  { %v2277_v14 = vpop.f32.mrf.mxu1 }
 0xd3b   :  { %v2541_v46 = vsel %vm956_vm3, %v2277_v14, -inf }
 0xd3c   :  { %2542 = vmax.xlane.f32.xlu0 %v2541_v46  ;;  %v4004_v37 = vpop.f32.mrf.mxu1 }
 0xd3e   :  { %v2280_v44 = vpop.f32.mrf.mxu1 }
 0xd40   :  { %v4005_v15 = vpop.f32.mrf.mxu1 }
 0xd42   :  { %v2329_v16 = vpop.f32.mrf.mxu1 }
 0xd43   :  { %v2379_v49 = vpop.f32.mrf.mxu0  ;;  %v2544_v19 = vsel %vm956_vm3, %v2329_v16, -inf }
 0xd44   :  { %v2547_v20 = vsel %vm956_vm3, %v2379_v49, -inf  ;;  %2545 = vmax.xlane.f32.xlu0 %v2544_v19  ;;  %v4010_v21 = vpop.f32.mrf.mxu1 }
 0xd45   :  { %2548 = vmax.xlane.f32.xlu1 %v2547_v20  ;;  %v4016_v7 = vpop.f32.mrf.mxu0 }
 0xd46   :  { %v2332_v22 = vpop.f32.mrf.mxu1 }
 0xd47   :  { %v2382_v23 = vpop.f32.mrf.mxu0 }
 0xd48   :  { %v4011_v24 = vpop.f32.mrf.mxu1 }
 0xd49   :  { %v4017_v25 = vpop.f32.mrf.mxu0 }
 0xd4a   :  { %v5069_v11 = vpop.f32.mrf.mxu1 }
 0xd4b   :  { %v2550_v58 = vsel %vm956_vm3, %v5069_v11, -inf }
 0xd4c   :  { %2551 = vmax.xlane.f32.xlu0 %v2550_v58  ;;  %v4022_v26 = vpop.f32.mrf.mxu1 }
 0xd4e   :  { %v2432_v28 = vpop.f32.mrf.mxu1 }
 0xd4f   :  { %v5073_v29 = vpop.f32.mrf.mxu0 }
 0xd50   :  { %v2553_v30 = vsel %vm956_vm3, %v5073_v29, -inf  ;;  %v4023_v31 = vpop.f32.mrf.mxu1 }
 0xd51   :  { %2554 = vmax.xlane.f32.xlu1 %v2553_v30  ;;  %v4028_v32 = vpop.f32.mrf.mxu0 }
 0xd52   :  { %v2529_v33 = vpop.f32.mrf.mxu1  ;;  %v2537_v50 = vpop.xlane.xlu1 %2536 }
 0xd53   :  { %v2482_v34 = vpop.f32.mrf.mxu0  ;;  %v2556_v35 = vsel %vm956_vm3, %v2529_v33, -inf  ;;  %v2559_v52 = vsub.f32 %v2179_v1, %v2537_v50 }
 0xd54   :  { %2557 = vmax.xlane.f32.xlu0 %v2556_v35  ;;  %v4034_v36 = vpop.f32.mrf.mxu1 }
 0xd55   :  { %v4029_v38 = vpop.f32.mrf.mxu0  ;;  %v2567_v18 = vmul.f32 1.442695, %v2559_v52 }
 0xd56   :  { %v2532_v39 = vpop.f32.mrf.mxu1 }
 0xd58   :  { %v4035_v41 = vpop.f32.mrf.mxu1 }
 0xd5a   :  { %v2540_v42 = vpop.xlane.xlu0 %2539 }
 0xd5b   :  { %v2560_v45 = vsub.f32 %v2225_v9, %v2540_v42 }
 0xd5d   :  { %v2569_v48 = vmul.f32 1.442695, %v2560_v45 }
 0xd5f   :  { %4349 = vpow2.f32 %v2569_v48 }
 0xd60   :  { %4351 = vpow2.f32 %v2567_v18 }
 0xd62   :  { %2724 = vrot.lane.b32.xlu1 %v5045_v55, %s4571_s5 }
 0xd6c   :  { %v4350_v51 = vpop.eup %4349 }
 0xd6d   :  { %v2586_v53 = vsel %vm956_vm3, %v4350_v51, 0.0  ;;  %v4352_v54 = vpop.eup %4351 }
 0xd6e   :  { %2587 = vadd.xlane.f32.xlu0 %v2586_v53  ;;  %v2583_v57 = vsel %vm956_vm3, %v4352_v54, 0.0 }
 0xd86   :  { %2584 = vadd.xlane.f32.xlu1 %v2583_v57 }
 0xdc5   :  { %v2543_v61 = vpop.xlane.xlu0 %2542 }
 0xdc6   :  { %v2561_v62 = vsub.f32 %v2277_v14, %v2543_v61 }
 0xdc8   :  { %v2571_v60 = vmul.f32 1.442695, %v2561_v62 }
 0xdca   :  { %4353 = vpow2.f32 %v2571_v60 }
 0xdcd   :  { %v2546_v27 = vpop.xlane.xlu0 %2545 }
 0xdce   :  { %v2549_v3 = vpop.xlane.xlu1 %2548  ;;  %v2562_v6 = vsub.f32 %v2329_v16, %v2546_v27 }
 0xdcf   :  { %v2563_v8 = vsub.f32 %v2379_v49, %v2549_v3 }
 0xdd0   :  { %v2573_v9 = vmul.f32 1.442695, %v2562_v6 }
 0xdd1   :  { %v2575_v10 = vmul.f32 1.442695, %v2563_v8 }
 0xdd2   :  { %4355 = vpow2.f32 %v2573_v9 }
 0xdd3   :  { %4357 = vpow2.f32 %v2575_v10 }
 0xdd5   :  { %v2552_v37 = vpop.xlane.xlu0 %2551 }
 0xdd6   :  { %v2564_v16 = vsub.f32 %v5069_v11, %v2552_v37 }
 0xdd7   :  { %v5082_v1 = vpop.eup %4353 }
 0xdd8   :  { %v2589_v59 = vsel %vm956_vm3, %v5082_v1, 0.0  ;;  %v2577_v19 = vmul.f32 1.442695, %v2564_v16 }
 0xdd9   :  { %2590 = vadd.xlane.f32.xlu1 %v2589_v59 }
 0xdda   :  { %v2555_v49 = vpop.xlane.xlu1 %2554 }
 0xddb   :  { %v2565_v21 = vsub.f32 %v5073_v29, %v2555_v49 }
 0xddd   :  { %v2558_v44 = vpop.xlane.xlu0 %2557  ;;  %v2579_v23 = vmul.f32 1.442695, %v2565_v21 }
 0xdde   :  { %v2566_v20 = vsub.f32 %v2529_v33, %v2558_v44  ;;  %v2725_v58 = vpop.permute.xlu1 %2724 }
 0xddf   :  { %v5086_v12 = vpop.eup %4355  ;;  %v2730_v36 = vsel %vm1056_vm2, %v2725_v58, 0  ;;  %v4281_v58 = vld [vmem:[#allocation11 + $0x78] sm:$0xff]  }
 0xde0   :  { %v5088_v13 = vpop.eup %4357  ;;  %v2592_v14 = vsel %vm956_vm3, %v5086_v12, 0.0  ;;  %v2581_v22 = vmul.f32 1.442695, %v2566_v20 }
 0xde1   :  { %v2595_v46 = vsel %vm956_vm3, %v5088_v13, 0.0  ;;  %2593 = vadd.xlane.f32.xlu0 %v2592_v14 }
 0xde2   :  { %2596 = vadd.xlane.f32.xlu1 %v2595_v46 }
 0xdf3   :  { %2821 = vrot.lane.b32.xlu1 %v5045_v55, %s4559_s19 }
 0xdf7   :  { %2869 = vrot.lane.b32.xlu1 %v5050_v56, %s4559_s19  ;;  %2773 = vrot.lane.b32.xlu0 %v5050_v56, %s4571_s5  ;;  %v2588_v15 = vpop.xlane.xlu0 %2587 }
 0xdf8   :  { %4359 = vrcp.f32 %v2588_v15 }
 0xdf9   :  { %4361 = vpow2.f32 %v2577_v19 }
 0xdfa   :  { %4363 = vpow2.f32 %v2581_v22 }
 0xdfb   :  { %4365 = vpow2.f32 %v2579_v23 }
 0xe05   :  { %v4360_v7 = vpop.eup %4359 }
 0xe06   :  { %v2616_v24 = vmul.f32 %v4360_v7, %v4350_v51  ;;  %v5105_v26 = vpop.eup %4361 }
 0xe07   :  { %v2598_v28 = vsel %vm956_vm3, %v5105_v26, 0.0  ;;  %v5109_v29 = vpop.eup %4363 }
 0xe08   :  { %v2624_v25 = vpack.c.bf16 %v2616_v24, %v2616_v24  ;;  %v5111_v30 = vpop.eup %4365  ;;  %v2604_v31 = vsel %vm956_vm3, %v5109_v29, 0.0 }
 0xe09   :  { %v2601_v32 = vsel %vm956_vm3, %v5111_v30, 0.0 }
 0xe0a   :  { %4045 = vmatmul.mubr.msk.bf16.vlgmr.msra.gmra.mxu1 %vm956_vm3, %v2624_v25 }
 0xe0b   :  { %4056 = vmatprep.mubr.msk.bf16.mxu1 %vm4570_vm0, %v4568_v4 }
 0xe0f   :  { %v2585_v11 = vpop.xlane.xlu1 %2584 }
 0xe10   :  { %4367 = vrcp.f32 %v2585_v11 }
 0xe16   :  { %2599 = vadd.xlane.f32.xlu0 %v2598_v28 }
 0xe1a   :  { %2605 = vadd.xlane.f32.xlu0 %v2604_v31 }
 0xe1b   :  { %2602 = vadd.xlane.f32.xlu1 %v2601_v32 }
 0xe1d   :  { %v4368_v33 = vpop.eup %4367 }
 0xe1e   :  { %v2615_v34 = vmul.f32 %v4368_v33, %v4352_v54 }
 0xe20   :  { %v2623_v35 = vpack.c.bf16 %v2615_v34, %v2615_v34 }
 0xe22   :  { %4039 = vmatmul.mubr.msk.bf16.vlgmr.msra.gmra.mxu0 %vm956_vm3, %v2623_v35  ;;  %v4284_v35 = vld [vmem:[#allocation11 + $0x60] sm:$0xff]  }
 0xe23   :  { %4049 = vmatpush3.bf16.msra.mxu0 %v2730_v36  ;;  %4050 = vmatprep.mubr.msk.bf16.mxu0 %vm4570_vm0, %v4568_v4 }
 0xe24   :  { %4060 = vmatprep.subr.bf16.mxu0 %v4568_v4 }
 0xe2c   :  { %2917 = vrot.lane.b32.xlu1 %v5045_v55, %s4572_s27 }
 0xe30   :  { %2965 = vrot.lane.b32.xlu0 %v5050_v56, %s4572_s27 }
 0xe62   :  { %v2591_v38 = vpop.xlane.xlu1 %2590 }
 0xe63   :  { %4369 = vrcp.f32 %v2591_v38 }
 0xe6a   :  { %v2594_v39 = vpop.xlane.xlu0 %2593 }
 0xe6b   :  { %v2597_v41 = vpop.xlane.xlu1 %2596  ;;  %4371 = vrcp.f32 %v2594_v39 }
 0xe6c   :  { %4373 = vrcp.f32 %v2597_v41 }
 0xe6e   :  { %v2774_v42 = vpop.permute.xlu0 %2773 }
 0xe6f   :  { %v2779_v45 = vsel %vm1056_vm2, %v2774_v42, 0  ;;  %v2822_v51 = vpop.permute.xlu1 %2821  ;;  %v4285_v42 = vld [vmem:[#allocation11 + $0x58] sm:$0xff]  }
 0xe70   :  { %v4370_v48 = vpop.eup %4369  ;;  %4055 = vmatpush3.bf16.msra.mxu1 %v2779_v45  ;;  %v2827_v52 = vsel %vm1056_vm2, %v2822_v51, 0 }
 0xe71   :  { %v2617_v50 = vmul.f32 %v4370_v48, %v5082_v1  ;;  %4066 = vmatprep.subr.bf16.mxu1 %v4568_v4  ;;  %v4286_v48 = vld [vmem:[#allocation11 + $0x50] sm:$0xff]  }
 0xe73   :  { %v2625_v55 = vpack.c.bf16 %v2617_v50, %v2617_v50  ;;  %v2870_v54 = vpop.permute.xlu1 %2869  ;;  %v4287_v50 = vld [vmem:[#allocation11 + $0x48] sm:$0xff]  }
 0xe74   :  { %v2875_v60 = vsel %vm1056_vm2, %v2870_v54, 0 }
 0xe75   :  { %4051 = vmatmul.mubr.msk.bf16.vlgmr.msra.gmra.mxu0 %vm956_vm3, %v2625_v55  ;;  %v4288_v55 = vld [vmem:[#allocation11 + $0x40] sm:$0xff]  }
 0xe76   :  { %4061 = vmatpush3.bf16.msra.mxu0 %v2827_v52  ;;  %4062 = vmatprep.mubr.msk.bf16.mxu0 %vm4570_vm0, %v4568_v4 }
 0xe77   :  { %4072 = vmatprep.subr.bf16.mxu0 %v4568_v4 }
 0xe78   :  { %v4372_v56 = vpop.eup %4371 }
 0xe79   :  { %v4374_v53 = vpop.eup %4373  ;;  %v2618_v18 = vmul.f32 %v4372_v56, %v5086_v12 }
 0xe7a   :  { %v2619_v57 = vmul.f32 %v4374_v53, %v5088_v13 }
 0xe7b   :  { %v2626_v61 = vpack.c.bf16 %v2618_v18, %v2618_v18 }
 0xe7c   :  { %v2627_v62 = vpack.c.bf16 %v2619_v57, %v2619_v57 }
 0xe7d   :  { %4057 = vmatmul.mubr.msk.bf16.vlgmr.msra.gmra.mxu1 %vm956_vm3, %v2626_v61 }
 0xe7e   :  { %4063 = vmatmul.mubr.msk.bf16.vlgmr.msra.gmra.mxu0 %vm956_vm3, %v2627_v62  ;;  %4067 = vmatpush3.bf16.msra.mxu1 %v2875_v60 }
 0xe7f   :  { %4068 = vmatprep.mubr.msk.bf16.mxu1 %vm4570_vm0, %v4568_v4  ;;  %4078 = vmatprep.subr.bf16.mxu1 %v4568_v4 }
 0xe80   :  { %4074 = vmatprep.mubr.msk.bf16.mxu0 %vm4570_vm0, %v4568_v4 }
 0xe9f   :  { %v2600_v27 = vpop.xlane.xlu0 %2599 }
 0xea0   :  { %4375 = vrcp.f32 %v2600_v27 }
 0xea3   :  { %v2606_v3 = vpop.xlane.xlu0 %2605 }
 0xea4   :  { %v2603_v6 = vpop.xlane.xlu1 %2602  ;;  %4377 = vrcp.f32 %v2606_v3 }
 0xea5   :  { %4379 = vrcp.f32 %v2603_v6 }
 0xea7   :  { %v2966_v59 = vpop.permute.xlu0 %2965 }
 0xea8   :  { %v2918_v8 = vpop.permute.xlu1 %2917  ;;  %v2971_v46 = vsel %vm1056_vm2, %v2966_v59, 0 }
 0xea9   :  { %v2923_v9 = vsel %vm1056_vm2, %v2918_v8, 0 }
 0xeaa   :  { %4073 = vmatpush3.bf16.msra.mxu0 %v2923_v9 }
 0xeab   :  { %4084 = vmatprep.subr.bf16.mxu0 %v4568_v4 }
 0xead   :  { %v4376_v10 = vpop.eup %4375 }
 0xeae   :  { %v2620_v1 = vmul.f32 %v4376_v10, %v5105_v26  ;;  %v4282_v26 = vld [vmem:[#allocation11 + $0x70] sm:$0xff]  }
 0xeb0   :  { %v2628_v12 = vpack.c.bf16 %v2620_v1, %v2620_v1 }
 0xeb1   :  { %v4378_v13 = vpop.eup %4377 }
 0xeb2   :  { %v4380_v14 = vpop.eup %4379  ;;  %4069 = vmatmul.mubr.msk.bf16.vlgmr.msra.gmra.mxu1 %vm956_vm3, %v2628_v12  ;;  %v2622_v44 = vmul.f32 %v4378_v13, %v5109_v29 }
 0xeb3   :  { %4079 = vmatpush3.bf16.msra.mxu1 %v2971_v46  ;;  %v2621_v37 = vmul.f32 %v4380_v14, %v5111_v30  ;;  %4080 = vmatprep.mubr.msk.bf16.mxu1 %vm4570_vm0, %v4568_v4  ;;  %v4283_v30 = vld [vmem:[#allocation11 + $0x68] sm:$0xff]  }
 0xeb4   :  { %4104 = vmatprep.subr.bf16.mxu1 %v4568_v4  ;;  %v2630_v16 = vpack.c.bf16 %v2622_v44, %v2622_v44 }
 0xeb5   :  { %v2629_v15 = vpack.c.bf16 %v2621_v37, %v2621_v37 }
 0xeb7   :  { %4075 = vmatmul.mubr.msk.bf16.vlgmr.msra.gmra.mxu0 %vm956_vm3, %v2629_v15 }
 0xeb8   :  { %4100 = vmatprep.mubr.msk.bf16.mxu0 %vm4570_vm0, %v4568_v4  ;;  %4085 = vmatpush3.bf16.msra.mxu0 %v4281_v58 }
 0xeb9   :  { %4086 = vmatprep.subr.bf16.mxu0 %v4568_v4 }
 0xeba   :  { %4081 = vmatmul.mubr.msk.bf16.vlgmr.msra.gmra.mxu1 %vm956_vm3, %v2630_v16 }
 0xebb   :  { %4120 = vmatprep.mubr.msk.bf16.mxu1 %vm4570_vm0, %v4568_v4 }
 0xebc   :  { %4087 = vmatpush3.bf16.msra.mxu0 %v4282_v26 }
 0xebd   :  { %4088 = vmatprep.subr.bf16.mxu0 %v4568_v4 }
 0xec0   :  { %4089 = vmatpush3.bf16.msra.mxu0 %v4283_v30 }
 0xec1   :  { %4090 = vmatprep.subr.bf16.mxu0 %v4568_v4 }
 0xec4   :  { %4091 = vmatpush3.bf16.msra.mxu0 %v4284_v35 }
 0xec5   :  { %4092 = vmatprep.subr.bf16.mxu0 %v4568_v4 }
 0xec8   :  { %4093 = vmatpush3.bf16.msra.mxu0 %v4285_v42  ;;  %v4295_v42 = vld [vmem:[#allocation13 + $0x48] sm:$0xff]  }
 0xec9   :  { %4094 = vmatprep.subr.bf16.mxu0 %v4568_v4 }
 0xeca   :  { %v5160_v49 = vpop.f32.mrf.mxu1 }
 0xecc   :  { %v4046_v19 = vpop.f32.mrf.mxu1  ;;  %4095 = vmatpush3.bf16.msra.mxu0 %v4286_v48  ;;  %v4297_v48 = vld [vmem:[#allocation14 + $0x78] sm:$0xff]  }
 0xecd   :  { %4096 = vmatprep.subr.bf16.mxu0 %v4568_v4 }
 0xece   :  { %v2720_v20 = vpop.f32.mrf.mxu1 }
 0xed0   :  { %v4047_v21 = vpop.f32.mrf.mxu1  ;;  %4097 = vmatpush3.bf16.msra.mxu0 %v4287_v50  ;;  %v4298_v50 = vld [vmem:[#allocation14 + $0x70] sm:$0xff]  }
 0xed1   :  { %4098 = vmatprep.subr.bf16.mxu0 %v4568_v4 }
 0xed4   :  { %4099 = vmatpush3.bf16.msra.mxu0 %v4288_v55  ;;  %v4300_v55 = vld [vmem:[#allocation14 + $0x60] sm:$0xff]  }
 0xed5   :  { %4124 = vmatprep.subr.bf16.mxu0 %v4568_v4 }
 0xee2   :  { %v5162_v7 = vpop.f32.mrf.mxu0 }
 0xee4   :  { %v4040_v22 = vpop.f32.mrf.mxu0 }
 0xee6   :  { %v2674_v23 = vpop.f32.mrf.mxu0 }
 0xee8   :  { %v4041_v24 = vpop.f32.mrf.mxu0 }
 0xf35   :  { %v2766_v25 = vpop.f32.mrf.mxu0 }
 0xf37   :  { %v4052_v11 = vpop.f32.mrf.mxu0 }
 0xf39   :  { %v2769_v28 = vpop.f32.mrf.mxu0 }
 0xf3b   :  { %v4053_v29 = vpop.f32.mrf.mxu0 }
 0xf3c   :  { %v4289_v29 = vld [vmem:[#allocation13 + $0x78] sm:$0xff]  }
 0xf3d   :  { %v2815_v31 = vpop.f32.mrf.mxu1  ;;  %4105 = vmatpush3.bf16.msra.mxu1 %v4289_v29 }
 0xf3e   :  { %v4178_v32 = vpack.i.bf16 %v2815_v31, %v2766_v25  ;;  %v2863_v33 = vpop.f32.mrf.mxu0  ;;  %4106 = vmatprep.subr.bf16.mxu1 %v4568_v4 }
 0xf3f   :  { %v4058_v34 = vpop.f32.mrf.mxu1 }
 0xf40   :  { %v4064_v36 = vpop.f32.mrf.mxu0  ;;  %4179 = vrot.lane.b32.xlu1 %v4178_v32, %s4572_s27 }
 0xf41   :  { %v2818_v38 = vpop.f32.mrf.mxu1  ;;  %v4291_v36 = vld [vmem:[#allocation13 + $0x68] sm:$0xff]  }
 0xf42   :  { %v2866_v39 = vpop.f32.mrf.mxu0  ;;  %v4292_v38 = vld [vmem:[#allocation13 + $0x60] sm:$0xff]  }
 0xf43   :  { %v4059_v41 = vpop.f32.mrf.mxu1  ;;  %v4293_v39 = vld [vmem:[#allocation13 + $0x58] sm:$0xff]  }
 0xf44   :  { %v4065_v45 = vpop.f32.mrf.mxu0  ;;  %v4294_v41 = vld [vmem:[#allocation13 + $0x50] sm:$0xff]  }
 0xf45   :  { %v4296_v45 = vld [vmem:[#allocation13 + $0x40] sm:$0xff]  }
 0xf72   :  { %v2911_v51 = vpop.f32.mrf.mxu1 }
 0xf73   :  { %v4183_v52 = vpack.i.bf16 %v2911_v51, %v2863_v33  ;;  %v4299_v51 = vld [vmem:[#allocation14 + $0x68] sm:$0xff]  }
 0xf74   :  { %v4070_v56 = vpop.f32.mrf.mxu1 }
 0xf75   :  { %4184 = vrot.lane.b32.xlu0 %v4183_v52, %s4559_s19  ;;  %v4301_v52 = vld [vmem:[#allocation14 + $0x58] sm:$0xff]  }
 0xf76   :  { %v2914_v53 = vpop.f32.mrf.mxu1 }
 0xf77   :  { %v2959_v18 = vpop.f32.mrf.mxu0 }
 0xf78   :  { %v4071_v54 = vpop.f32.mrf.mxu1 }
 0xf79   :  { %v4076_v57 = vpop.f32.mrf.mxu0 }
 0xf7a   :  { %v3007_v61 = vpop.f32.mrf.mxu1 }
 0xf7b   :  { %v2962_v62 = vpop.f32.mrf.mxu0  ;;  %v4188_v60 = vpack.i.bf16 %v3007_v61, %v2959_v18 }
 0xf7c   :  { %v4082_v27 = vpop.f32.mrf.mxu1 }
 0xf7d   :  { %v4077_v3 = vpop.f32.mrf.mxu0  ;;  %4189 = vrot.lane.b32.xlu1 %v4188_v60, %s4571_s5  ;;  %v3181_v27 = vrot.slane %v4979_v2, %v1604_v40  ;;  %v4304_v40 = vld [vmem:[#allocation14 + $0x40] sm:$0xff]  }
 0xf7e   :  { %v3010_v6 = vpop.f32.mrf.mxu1 }
 0xf80   :  { %v4083_v8 = vpop.f32.mrf.mxu1 }
 0xfb2   :  { %v4180_v9 = vpop.permute.xlu1 %4179 }
 0xfb3   :  { %v4182_v1 = vunpack.i.h.bf16 %v4180_v9  ;;  %v4181_v59 = vunpack.i.l.bf16 %v4180_v9  ;;  %v3187_v9 = vrot.slane %v4979_v2, %v1610_v47 }
 0xfb5   :  { %v3038_v46 = vsel %vm559_vm1, %v5160_v49, %v4182_v1  ;;  %v3037_v37 = vsel %vm559_vm1, %v5162_v7, %v4181_v59  ;;  %v3064_v49 = vrot.slane %v4979_v2, %v1487_v0 }
 0xfe7   :  { %v4185_v10 = vpop.permute.xlu0 %4184 }
 0xfe8   :  { %v4187_v12 = vunpack.i.h.bf16 %v4185_v10  ;;  %v4186_v13 = vunpack.i.l.bf16 %v4185_v10 }
 0xfea   :  { %v3040_v16 = vsel %vm1462_vm4, %v3038_v46, %v4187_v12  ;;  %v3039_v19 = vsel %vm1462_vm4, %v3037_v37, %v4186_v13  ;;  %v4302_v13 = vld [vmem:[#allocation14 + $0x50] sm:$0xff]   ;;  %v3211_v46 = vrot.slane %v4979_v2, %v1633_v63 }
 0xfef   :  { %v4190_v14 = vpop.permute.xlu1 %4189 }
 0xff0   :  { %v4192_v44 = vunpack.i.h.bf16 %v4190_v14  ;;  %v4191_v15 = vunpack.i.l.bf16 %v4190_v14  ;;  %v4303_v14 = vld [vmem:[#allocation14 + $0x48] sm:$0xff]  }
 0xff2   :  { %v3042_v20 = vsel %vm1465_vm5, %v3040_v16, %v4192_v44  ;;  %v3041_v21 = vsel %vm1465_vm5, %v3039_v19, %v4191_v15 }
 0xff3   :  { %v3043_v22 = vpack.c.bf16 %v3042_v20, %v3041_v21 }
 0xff5   :  { %4101 = vmatmul.mubr.bf16.vlgmr.msra.gmra.mxu0 %v3043_v22 }
 0xff6   :  { %4140 = vmatprep.mubr.msk.bf16.mxu0 %vm4570_vm0, %v4568_v4  ;;  %4125 = vmatpush3.bf16.msra.mxu0 %v4297_v48 }
 0xff7   :  { %4126 = vmatprep.subr.bf16.mxu0 %v4568_v4 }
 0xffa   :  { %4127 = vmatpush3.bf16.msra.mxu0 %v4298_v50 }
 0xffb   :  { %4128 = vmatprep.subr.bf16.mxu0 %v4568_v4 }
 0xffe   :  { %4129 = vmatpush3.bf16.msra.mxu0 %v4299_v51 }
 0xfff   :  { %4130 = vmatprep.subr.bf16.mxu0 %v4568_v4 }
0x1002   :  { %4131 = vmatpush3.bf16.msra.mxu0 %v4300_v55 }
0x1003   :  { %4132 = vmatprep.subr.bf16.mxu0 %v4568_v4 }
0x1006   :  { %4133 = vmatpush3.bf16.msra.mxu0 %v4301_v52 }
0x1007   :  { %4134 = vmatprep.subr.bf16.mxu0 %v4568_v4 }
0x100a   :  { %4135 = vmatpush3.bf16.msra.mxu0 %v4302_v13 }
0x100b   :  { %4136 = vmatprep.subr.bf16.mxu0 %v4568_v4 }
0x100e   :  { %4137 = vmatpush3.bf16.msra.mxu0 %v4303_v14 }
0x100f   :  { %4138 = vmatprep.subr.bf16.mxu0 %v4568_v4 }
0x1012   :  { %4139 = vmatpush3.bf16.msra.mxu0 %v4304_v40 }
0x10b5   :  { %v3147_v7 = vpop.f32.mrf.mxu0 }
0x10b6   :  { %v3148_v23 = vadd.f32 %v3147_v7, %v3064_v49 }
0x10b7   :  { %v4102_v24 = vpop.f32.mrf.mxu0 }
0x10b8   :  { %v5189_v25 = vadd.f32 %v3148_v23, %v4950_v5 }
0x10b9   :  { %v3150_v58 = vpop.f32.mrf.mxu0 }
0x10ba   :  { %v3151_v11 = vadd.f32 %v3150_v58, %v3064_v49  ;;  %3156 = vadd.xlane.f32.xlu0 %v5189_v25 }
0x10bb   :  { %v4103_v26 = vpop.f32.mrf.mxu0 }
0x10bc   :  { %v5193_v28 = vadd.f32 %v3151_v11, %v4954_v17  ;;  %v4290_v17 = vld [vmem:[#allocation13 + $0x70] sm:$0xff]  }
0x10bd   :  { %4107 = vmatpush3.bf16.msra.mxu1 %v4290_v17 }
0x10be   :  { %3158 = vadd.xlane.f32.xlu1 %v5193_v28  ;;  %4108 = vmatprep.subr.bf16.mxu1 %v4568_v4 }
0x10c1   :  { %4109 = vmatpush3.bf16.msra.mxu1 %v4291_v36 }
0x10c2   :  { %4110 = vmatprep.subr.bf16.mxu1 %v4568_v4 }
0x10c5   :  { %4111 = vmatpush3.bf16.msra.mxu1 %v4292_v38  ;;  %v3654_v38 = vld [vmem:[%s5246_s8] ss:$0 sm:$0xff] }
0x10c6   :  { %4112 = vmatprep.subr.bf16.mxu1 %v4568_v4 }
0x10c9   :  { %4113 = vmatpush3.bf16.msra.mxu1 %v4293_v39 }
0x10ca   :  { %4114 = vmatprep.subr.bf16.mxu1 %v4568_v4 }
0x10cd   :  { %4115 = vmatpush3.bf16.msra.mxu1 %v4294_v41  ;;  %v3655_v41 = vld [vmem:[%s5246_s8 + $0x1] ss:$0 sm:$0xff] }
0x10ce   :  { %4116 = vmatprep.subr.bf16.mxu1 %v4568_v4 }
0x10d1   :  { %4117 = vmatpush3.bf16.msra.mxu1 %v4295_v42 }
0x10d2   :  { %4118 = vmatprep.subr.bf16.mxu1 %v4568_v4  ;;  %v3645_v4 = vld [vmem:[%s5245_s7 + $0x18] ss:$0 sm:$0xff] }
0x10d5   :  { %4119 = vmatpush3.bf16.msra.mxu1 %v4296_v45 }
0x1143   :  { %v3157_v0 = vpop.xlane.xlu0 %3156 }
0x1144   :  { %v3160_v30 = vmul.f32 0.0078125, %v3157_v0 }
0x1146   :  { %v3162_v31 = vsub.f32 %v5189_v25, %v3160_v30 }
0x1147   :  { %v3159_v5 = vpop.xlane.xlu1 %3158 }
0x1148   :  { %v3161_v32 = vmul.f32 0.0078125, %v3159_v5  ;;  %v3164_v33 = vmul.f32 %v3162_v31, %v3162_v31 }
0x114a   :  { %v3163_v34 = vsub.f32 %v5193_v28, %v3161_v32  ;;  %3166 = vadd.xlane.f32.xlu0 %v3164_v33 }
0x114c   :  { %v3165_v35 = vmul.f32 %v3163_v34, %v3163_v34 }
0x114e   :  { %3168 = vadd.xlane.f32.xlu0 %v3165_v35 }
0x11d3   :  { %v3167_v56 = vpop.xlane.xlu0 %3166 }
0x11d4   :  { %v3170_v53 = vmul.f32 0.0078125, %v3167_v56 }
0x11d6   :  { %v3172_v18 = vadd.f32 1e-05, %v3170_v53 }
0x11d7   :  { %v3169_v54 = vpop.xlane.xlu0 %3168 }
0x11d8   :  { %4381 = vrsqrt.f32 %v3172_v18  ;;  %v3171_v57 = vmul.f32 0.0078125, %v3169_v54 }
0x11da   :  { %v3173_v61 = vadd.f32 1e-05, %v3171_v57 }
0x11dc   :  { %4383 = vrsqrt.f32 %v3173_v61 }
0x11e5   :  { %v4382_v62 = vpop.eup %4381 }
0x11e6   :  { %v3176_v60 = vmul.f32 %v4382_v62, %v3162_v31 }
0x11e8   :  { %v3182_v8 = vmul.f32 %v3181_v27, %v3176_v60 }
0x11e9   :  { %v4384_v3 = vpop.eup %4383 }
0x11ea   :  { %v3177_v6 = vmul.f32 %v4384_v3, %v3163_v34  ;;  %v3188_v1 = vadd.f32 %v3187_v9, %v3182_v8 }
0x11ec   :  { %v3183_v10 = vmul.f32 %v3181_v27, %v3177_v6 }
0x11ee   :  { %v3189_v59 = vadd.f32 %v3187_v9, %v3183_v10 }
0x11f0   :  { %v3190_v12 = vpack.c.bf16 %v3189_v59, %v3188_v1 }
0x11f2   :  { %4121 = vmatmul.mubr.bf16.vlgmr.msra.gmra.mxu1 %v3190_v12 }
0x12b2   :  { %v3294_v47 = vpop.f32.mrf.mxu1 }
0x12b3   :  { %v3295_v44 = vadd.f32 %v3294_v47, %v3211_v46 }
0x12b4   :  { %v4122_v37 = vpop.f32.mrf.mxu1 }
0x12b5   :  { %v3301_v20 = vmax.f32 %v3295_v44, 0.0 }
0x12b6   :  { %v3297_v15 = vpop.f32.mrf.mxu1 }
0x12b7   :  { %v3298_v16 = vadd.f32 %v3297_v15, %v3211_v46 }
0x12b8   :  { %v4123_v19 = vpop.f32.mrf.mxu1 }
0x12b9   :  { %v3302_v21 = vmax.f32 %v3298_v16, 0.0 }
0x12bb   :  { %v3303_v22 = vpack.c.bf16 %v3302_v21, %v3301_v20 }
0x12bd   :  { %4141 = vmatmul.mubr.bf16.vlgmr.msra.gmra.mxu0 %v3303_v22 }
0x137d   :  { %v3407_v49 = vpop.f32.mrf.mxu0 }
0x137e   :  { %v3408_v7 = vadd.f32 %v3645_v4, %v3407_v49 }
0x137f   :  { %v4142_v23 = vpop.f32.mrf.mxu0 }
0x1380   :  { %v3414_v43 = vadd.f32 %v3408_v7, %v5189_v25 }
0x1381   :  { %v3410_v63 = vpop.f32.mrf.mxu0 }
0x1382   :  { %v3411_v2 = vadd.f32 %v3645_v4, %v3410_v63  ;;  %3418 = vadd.xlane.f32.xlu0 %v3414_v43 }
0x1383   :  { %v4143_v24 = vpop.f32.mrf.mxu0 }
0x1384   :  { %v3415_v58 = vadd.f32 %v3411_v2, %v5193_v28 }
0x1386   :  { %3420 = vadd.xlane.f32.xlu1 %v3415_v58 }
0x140b   :  { %v3419_v11 = vpop.xlane.xlu0 %3418 }
0x140c   :  { %v3422_v26 = vmul.f32 0.0078125, %v3419_v11 }
0x140e   :  { %v3424_v29 = vsub.f32 %v3414_v43, %v3422_v26 }
0x140f   :  { %v3421_v0 = vpop.xlane.xlu1 %3420 }
0x1410   :  { %v3423_v30 = vmul.f32 0.0078125, %v3421_v0  ;;  %v3426_v31 = vmul.f32 %v3424_v29, %v3424_v29 }
0x1412   :  { %v3425_v5 = vsub.f32 %v3415_v58, %v3423_v30  ;;  %3428 = vadd.xlane.f32.xlu0 %v3426_v31 }
0x1414   :  { %v3427_v32 = vmul.f32 %v3425_v5, %v3425_v5 }
0x1416   :  { %3430 = vadd.xlane.f32.xlu1 %v3427_v32 }
0x149b   :  { %v3429_v33 = vpop.xlane.xlu0 %3428 }
0x149c   :  { %v3432_v34 = vmul.f32 0.0078125, %v3429_v33 }
0x149e   :  { %v3434_v25 = vadd.f32 1e-05, %v3432_v34 }
0x149f   :  { %v3431_v35 = vpop.xlane.xlu1 %3430 }
0x14a0   :  { %4385 = vrsqrt.f32 %v3434_v25  ;;  %v3433_v17 = vmul.f32 0.0078125, %v3431_v35 }
0x14a2   :  { %v3435_v36 = vadd.f32 1e-05, %v3433_v17 }
0x14a4   :  { %4387 = vrsqrt.f32 %v3435_v36 }
0x14ad   :  { %v4386_v28 = vpop.eup %4385 }
0x14ae   :  { %v3438_v39 = vmul.f32 %v4386_v28, %v3424_v29 }
0x14b0   :  { %v3444_v42 = vmul.f32 %v3654_v38, %v3438_v39 }
0x14b1   :  { %v4388_v45 = vpop.eup %4387 }
0x14b2   :  { %v3439_v48 = vmul.f32 %v4388_v45, %v3425_v5  ;;  %v3450_v50 = vadd.f32 %v3655_v41, %v3444_v42 }
0x14b4   :  { %v3445_v51 = vmul.f32 %v3654_v38, %v3439_v48  ;;  %3452 = vst [vmem:[#allocation16] sm:$0xff] %v3450_v50 }
0x14b6   :  { %v3451_v55 = vadd.f32 %v3655_v41, %v3445_v51 }
0x14b8   :  { %3453 = vst [vmem:[#allocation16 + $0x8] sm:$0xff] %v3451_v55 }
0x14b9   :  { %4534 = shalt.err (!%p4531_p11)
}
0x14ba   :  { %3465 = dma.vmem_to_hbm [thread:$0]  %s3460_s12, 256, %s5247_s9, [#allocation5], %s4557_s14, %s4557_s14, %s4558_s15  }
0x14bb   :  { %4553 = dma.done.wait [#allocation5], 256  }
0x14bc   :  { %4554 = vsyncadd [#allocation5], 4294967040 }
0x14bd   :  { %3469 = vsyncpa [#allocation4], 1 }
0x14be   :  { %3470 = vsyncpa [#allocation9], 1 }
0x14bf   :  { %3471 = vsyncpa [#allocation12], 1 }
0x14c0   :  { %3472 = vsyncpa [#allocation15], 1 }
0x14c1   :  { %3473 = vsyncpa [#allocation5], 1 }
0x14c2   :  { %3474 = vsyncpa [#allocation6], 1 }

</bundles_post_ra>
